<compile_context>
chip_gen: v6e
topology: v6e:2x2x1
jax: 0.10.0
libtpu: 0.0.40
codegen_flags: <defaults>
</compile_context>

<pallas_src>
import functools
from math import sqrt

import jax
import jax.numpy as jnp
from jax.experimental import pallas as pl
from jax.experimental.pallas import tpu as pltpu

HP = dict(d_model=32, num_layers=2, num_heads=4, d_ff=64,
          max_rel_dist=16, max_abs_position=64, vocab_size=48,
          bias=True, dropout=0.1, layernorm_eps=1e-6)

_LANE = 128  # lane-dense padding for the final vocab projection


# ----------------------------- fused Pallas kernel -----------------------------

def _fused_forward_kernel(x_ref, pe_ref, maskb_ref,
                          wqkv_ref, bqkv_ref, wo_ref, bo_ref, g_ref,
                          ln1g_ref, ln1b_ref, w1_ref, b1_ref, w2_ref, b2_ref,
                          ln2g_ref, ln2b_ref,
                          flng_ref, flnb_ref, fw_ref, fb_ref,
                          out_ref, acc_ref,
                          *, num_layers, num_heads, seq_len, eps,
                          emb_scale, att_scale):
    L = seq_len
    H = num_heads
    BL, D = x_ref.shape
    B = BL // L
    Dh = D // H

    def layernorm(y, g, b):
        mean = jnp.mean(y, axis=-1, keepdims=True)
        var = jnp.mean(jnp.square(y - mean), axis=-1, keepdims=True)
        return (y - mean) * jax.lax.rsqrt(var + eps) * g + b

    # embedding scale + absolute positional encoding (input dropout = identity, eval)
    x2 = x_ref[...] * emb_scale + pe_ref[...]            # (B*L, D)
    maskb = maskb_ref[...]                               # (L, L) additive mask bias

    for l in range(num_layers):
        # ----- fused Q/K/V projection: one (B*L, D) @ (D, 3D) matmul -----
        qkv = jnp.dot(x2, wqkv_ref[l], preferred_element_type=jnp.float32) + bqkv_ref[l]
        q = qkv[:, 0 * D:1 * D]
        k = qkv[:, 1 * D:2 * D]
        v = qkv[:, 2 * D:3 * D]
        wo = wo_ref[l]

        # ----- relative multi-head attention + output projection -----
        for b in range(B):
            rows = slice(b * L, (b + 1) * L)
            o_b = None
            for h in range(H):
                cols = slice(h * Dh, (h + 1) * Dh)
                q_bh = q[rows, cols]                     # (L, Dh)
                k_bh = k[rows, cols]
                v_bh = v[rows, cols]
                # Srel[i, j] = q_bh[i, :] . E_rel[L-1-i+j] (head-h slice); the gather
                # over relative distances is precomputed into g_ref as (j, i, d).
                g_t = g_ref[l * H + h]                   # (L_j, L_i, Dh)
                srel_t = jnp.sum(q_bh[None, :, :] * g_t, axis=-1)    # (L_j, L_i)
                srel = srel_t.T                          # (L_i, L_j)
                logits = (jnp.dot(q_bh, k_bh.T, preferred_element_type=jnp.float32)
                          + srel) * att_scale + maskb
                logits = logits - jnp.max(logits, axis=-1, keepdims=True)
                p = jnp.exp(logits)
                p = p / jnp.sum(p, axis=-1, keepdims=True)
                attn_bh = jnp.dot(p, v_bh, preferred_element_type=jnp.float32)   # (L, Dh)
                # head-merge + output projection folded into per-head partial sums
                contrib = jnp.dot(attn_bh, wo[cols, :],
                                  preferred_element_type=jnp.float32)            # (L, D)
                o_b = contrib if o_b is None else o_b + contrib
            acc_ref[rows, :] = o_b
        attn_out = acc_ref[...] + bo_ref[l]              # (B*L, D)
        # dropout1: identity at inference

        out1 = layernorm(attn_out + x2, ln1g_ref[l], ln1b_ref[l])

        # ----- FFN with fused ReLU -----
        f = jnp.dot(out1, w1_ref[l], preferred_element_type=jnp.float32) + b1_ref[l]
        f = jnp.maximum(f, 0.0)
        f = jnp.dot(f, w2_ref[l], preferred_element_type=jnp.float32) + b2_ref[l]
        # dropout2: identity at inference

        x2 = layernorm(f + out1, ln2g_ref[l], ln2b_ref[l])

    # ----- final LayerNorm (no residual) + lane-dense (padded to 128) vocab proj -----
    h_fin = layernorm(x2, flng_ref[...], flnb_ref[...])
    out_ref[...] = (jnp.dot(h_fin, fw_ref[...], preferred_element_type=jnp.float32)
                    + fb_ref[...])


# ----------------------------- JAX glue -----------------------------------

def abs_positional_encoding(max_position, d_model):
    pos = jnp.arange(max_position, dtype=jnp.float32)[:, None]
    i = jnp.arange(d_model, dtype=jnp.float32)[None, :]
    angle_rates = 1.0 / jnp.power(10000.0, (2.0 * jnp.floor(i / 2.0)) / d_model)
    angles = pos * angle_rates
    even = (jnp.arange(d_model) % 2) == 0
    pe = jnp.where(even[None, :], jnp.sin(angles), jnp.cos(angles))
    return pe[None, :, :]  # (1, max_position, d_model)


def get_rel_embeddings(E, seq_len):
    """Last seq_len relative embeddings; clamp to E[0] if seq_len > max_rel_dist."""
    max_rel, D = E.shape
    if seq_len <= max_rel:
        return E[max_rel - seq_len:]
    pad = jnp.broadcast_to(E[0:1], (seq_len - max_rel, D))
    return jnp.concatenate([pad, E], axis=0)


def _pack_layer(p, L, H):
    """Pack one decoder layer's weights for the fused kernel (weight-sized glue)."""
    D = p['wq'].shape[0]
    Dh = D // H
    wqkv = jnp.concatenate([p['wq'], p['wk'], p['wv']], axis=1)          # (D, 3D)
    bqkv = jnp.concatenate([p['bq'], p['bk'], p['bv']])[None, :]         # (1, 3D)
    # Pre-gather relative embeddings: G_T[h, j, i, d] = E_full[L-1-i+j, h*Dh+d].
    # For j > i (future positions, masked in decoder use) the index is clamped;
    # those logits receive -1e9 and underflow to exactly 0 after softmax.
    e_full = get_rel_embeddings(p['E'], L)                               # (L, D)
    ii = jnp.arange(L)[:, None]
    jj = jnp.arange(L)[None, :]
    ridx = jnp.clip(L - 1 - ii + jj, 0, L - 1)                           # (L_i, L_j)
    g_full = e_full[ridx]                                                # (L_i, L_j, D)
    g_t = g_full.reshape(L, L, H, Dh).transpose(2, 1, 0, 3)              # (H, L_j, L_i, Dh)
    return dict(wqkv=wqkv, bqkv=bqkv, wo=p['wo'], bo=p['bo'][None, :], g=g_t,
                ln1g=p['ln1_g'][None, :], ln1b=p['ln1_b'][None, :],
                w1=p['w1'], b1=p['b1'][None, :],
                w2=p['w2'], b2=p['b2'][None, :],
                ln2g=p['ln2_g'][None, :], ln2b=p['ln2_b'][None, :])


def music_transformer_forward(params, tokens, mask=None):
    B, L = tokens.shape
    D, H, NL, V = HP['d_model'], HP['num_heads'], HP['num_layers'], HP['vocab_size']
    eps = HP['layernorm_eps']
    Dh = D // H

    emb = jnp.take(params['embedding'], tokens, axis=0)     # token-embedding gather (glue)
    x_flat = emb.reshape(B * L, D)
    if HP['max_abs_position'] > 0:
        pe_flat = jnp.tile(params['pos_encoding'][0, :L, :], (B, 1))
    else:
        pe_flat = jnp.zeros((B * L, D), jnp.float32)

    if mask is None:
        # TODO(synk): with mask=None the reference skew leaves junk values in the
        # (normally masked) upper triangle; this fused kernel clamps those relative
        # indices instead, so pass a causal/tgt mask for exact parity.
        maskb = jnp.zeros((L, L), jnp.float32)
    else:
        maskb = mask.reshape(-1, L, L)[0].astype(jnp.float32) * (-1e9)

    packed = [_pack_layer(p, L, H) for p in params['layers']]
    stack = lambda name: jnp.stack([pk[name] for pk in packed], axis=0)
    wqkv_all, bqkv_all = stack('wqkv'), stack('bqkv')
    wo_all, bo_all = stack('wo'), stack('bo')
    g_all = stack('g').reshape(NL * H, L, L, Dh)
    ln1g_all, ln1b_all = stack('ln1g'), stack('ln1b')
    w1_all, b1_all = stack('w1'), stack('b1')
    w2_all, b2_all = stack('w2'), stack('b2')
    ln2g_all, ln2b_all = stack('ln2g'), stack('ln2b')

    flng = params['final_ln_g'][None, :]
    flnb = params['final_ln_b'][None, :]
    vpad = ((V + _LANE - 1) // _LANE) * _LANE
    fw_pad = jnp.zeros((D, vpad), jnp.float32).at[:, :V].set(params['final_w'])
    fb_pad = jnp.zeros((1, vpad), jnp.float32).at[:, :V].set(params['final_b'][None, :])

    kernel = functools.partial(
        _fused_forward_kernel,
        num_layers=NL, num_heads=H, seq_len=L, eps=eps,
        emb_scale=float(sqrt(D)), att_scale=1.0 / sqrt(Dh))

    out_pad = pl.pallas_call(
        kernel,
        out_shape=jax.ShapeDtypeStruct((B * L, vpad), jnp.float32),
        scratch_shapes=[pltpu.VMEM((B * L, D), jnp.float32)],
    )(x_flat, pe_flat, maskb,
      wqkv_all, bqkv_all, wo_all, bo_all, g_all,
      ln1g_all, ln1b_all, w1_all, b1_all, w2_all, b2_all,
      ln2g_all, ln2b_all,
      flng, flnb, fw_pad, fb_pad)

    return out_pad[:, :V].reshape(B, L, V)


# ------------------------ pure-JAX reference (for self-check) ------------------------

def _reference_forward(params, tokens, mask):
    B, L = tokens.shape
    D, H = HP['d_model'], HP['num_heads']
    Dh = D // H
    eps = HP['layernorm_eps']

    def ln(y, g, b):
        m = jnp.mean(y, -1, keepdims=True)
        v = jnp.mean(jnp.square(y - m), -1, keepdims=True)
        return (y - m) / jnp.sqrt(v + eps) * g + b

    x = jnp.take(params['embedding'], tokens, axis=0) * sqrt(D)
    x = x + params['pos_encoding'][:, :L, :]
    for p in params['layers']:
        q = x @ p['wq'] + p['bq']
        k = x @ p['wk'] + p['bk']
        v = x @ p['wv'] + p['bv']
        heads = lambda t: t.reshape(B, L, H, Dh).transpose(0, 2, 1, 3)
        qh, kh, vh = heads(q), heads(k), heads(v)
        e = get_rel_embeddings(p['E'], L)                      # (L, D)
        eh = e.reshape(L, H, Dh).transpose(1, 0, 2)            # (H, L, Dh)
        qet = jnp.einsum('bhld,hmd->bhlm', qh, eh)             # (B, H, L, L)
        padded = jnp.pad(qet, ((0, 0), (0, 0), (0, 0), (1, 0)))
        srel = padded.reshape(B, H, L + 1, L)[:, :, 1:, :]     # Huang et al. skew
        logits = (jnp.einsum('bhid,bhjd->bhij', qh, kh) + srel) / sqrt(Dh)
        logits = logits + mask * (-1e9)
        w = jax.nn.softmax(logits, axis=-1)
        attn = jnp.einsum('bhij,bhjd->bhid', w, vh)
        attn = attn.transpose(0, 2, 1, 3).reshape(B, L, D) @ p['wo'] + p['bo']
        x = ln(x + attn, p['ln1_g'], p['ln1_b'])
        f = jax.nn.relu(x @ p['w1'] + p['b1']) @ p['w2'] + p['b2']
        x = ln(x + f, p['ln2_g'], p['ln2_b'])
    x = ln(x, params['final_ln_g'], params['final_ln_b'])
    return x @ params['final_w'] + params['final_b']


# ----------------------------- parameters & driver -----------------------------

def init_params(key):
    D, F, V = HP['d_model'], HP['d_ff'], HP['vocab_size']
    R = HP['max_rel_dist']
    keys = iter(jax.random.split(key, 4 + 8 * HP['num_layers']))

    def w(shape, scale=0.02):
        return jax.random.normal(next(keys), shape, jnp.float32) * scale

    params = dict(
        embedding=w((V, D), 1.0 / sqrt(D)),
        pos_encoding=abs_positional_encoding(HP['max_abs_position'], D),
        layers=[],
        final_ln_g=jnp.ones((D,), jnp.float32),
        final_ln_b=jnp.zeros((D,), jnp.float32),
        final_w=w((D, V)),
        final_b=jnp.zeros((V,), jnp.float32),
    )
    for _ in range(HP['num_layers']):
        params['layers'].append(dict(
            wq=w((D, D)), bq=jnp.zeros((D,), jnp.float32),
            wk=w((D, D)), bk=jnp.zeros((D,), jnp.float32),
            wv=w((D, D)), bv=jnp.zeros((D,), jnp.float32),
            wo=w((D, D)), bo=jnp.zeros((D,), jnp.float32),
            E=w((R, D)),
            ln1_g=jnp.ones((D,), jnp.float32), ln1_b=jnp.zeros((D,), jnp.float32),
            w1=w((D, F)), b1=jnp.zeros((F,), jnp.float32),
            w2=w((F, D)), b2=jnp.zeros((D,), jnp.float32),
            ln2_g=jnp.ones((D,), jnp.float32), ln2_b=jnp.zeros((D,), jnp.float32),
        ))
    return params


if __name__ == "__main__":
    key = jax.random.PRNGKey(0)
    pkey, tkey = jax.random.split(key)
    params = init_params(pkey)

    B, L = 2, 8
    tokens = jax.random.randint(tkey, (B, L), 0, HP['vocab_size'], dtype=jnp.int32)
    # causal look-ahead mask: 1 marks positions to mask out
    causal_mask = jnp.triu(jnp.ones((L, L), jnp.float32), k=1)[None]

    fwd = jax.jit(music_transformer_forward)
    out = jax.block_until_ready(fwd(params, tokens, causal_mask))
    assert out.shape == (B, L, HP['vocab_size'])
    assert bool(jnp.all(jnp.isfinite(out)))

    ref = jax.block_until_ready(_reference_forward(params, tokens, causal_mask))
    assert bool(jnp.allclose(out, ref, atol=5e-4, rtol=5e-3)), "mismatch vs reference"
    print("KERNEL_OK")
</pallas_src>

<mosaic_0001>
module attributes {stable_mosaic.version = 11 : i64} {
  func.func @_fused_forward_kernel(%arg0: memref<16x32xf32, #tpu.memory_space<vmem>>, %arg1: memref<16x32xf32, #tpu.memory_space<vmem>>, %arg2: memref<8x8xf32, #tpu.memory_space<vmem>>, %arg3: memref<2x32x96xf32, #tpu.memory_space<vmem>>, %arg4: memref<2x1x96xf32, #tpu.memory_space<vmem>>, %arg5: memref<2x32x32xf32, #tpu.memory_space<vmem>>, %arg6: memref<2x1x32xf32, #tpu.memory_space<vmem>>, %arg7: memref<8x8x8x8xf32, #tpu.memory_space<vmem>>, %arg8: memref<2x1x32xf32, #tpu.memory_space<vmem>>, %arg9: memref<2x1x32xf32, #tpu.memory_space<vmem>>, %arg10: memref<2x32x64xf32, #tpu.memory_space<vmem>>, %arg11: memref<2x1x64xf32, #tpu.memory_space<vmem>>, %arg12: memref<2x64x32xf32, #tpu.memory_space<vmem>>, %arg13: memref<2x1x32xf32, #tpu.memory_space<vmem>>, %arg14: memref<2x1x32xf32, #tpu.memory_space<vmem>>, %arg15: memref<2x1x32xf32, #tpu.memory_space<vmem>>, %arg16: memref<1x32xf32, #tpu.memory_space<vmem>>, %arg17: memref<1x32xf32, #tpu.memory_space<vmem>>, %arg18: memref<32x128xf32, #tpu.memory_space<vmem>>, %arg19: memref<1x128xf32, #tpu.memory_space<vmem>>, %arg20: memref<16x128xf32, #tpu.memory_space<vmem>>, %arg21: memref<16x32xf32, #tpu.memory_space<vmem>>) attributes {dimension_semantics = [], scalar_prefetch = 0 : i64, scratch_operands = 1 : i64, tpu.core_type = #tpu.core_type<tc>} {
    %c0 = arith.constant 0 : index
    %c0_0 = arith.constant 0 : index
    %0 = vector.load %arg0[%c0, %c0_0] : memref<16x32xf32, #tpu.memory_space<vmem>>, vector<16x32xf32>
    %cst = arith.constant 5.65685415 : f32
    %1 = vector.broadcast %cst : f32 to vector<16x32xf32>
    %2 = arith.mulf %0, %1 : vector<16x32xf32>
    %c0_1 = arith.constant 0 : index
    %c0_2 = arith.constant 0 : index
    %3 = vector.load %arg1[%c0_1, %c0_2] : memref<16x32xf32, #tpu.memory_space<vmem>>, vector<16x32xf32>
    %4 = arith.addf %2, %3 : vector<16x32xf32>
    %c0_3 = arith.constant 0 : index
    %c0_4 = arith.constant 0 : index
    %5 = vector.load %arg2[%c0_3, %c0_4] : memref<8x8xf32, #tpu.memory_space<vmem>>, vector<8x8xf32>
    %c0_5 = arith.constant 0 : index
    %c0_6 = arith.constant 0 : index
    %c0_7 = arith.constant 0 : index
    %6 = vector.load %arg3[%c0_5, %c0_6, %c0_7] : memref<2x32x96xf32, #tpu.memory_space<vmem>>, vector<1x32x96xf32>
    %7 = vector.shape_cast %6 : vector<1x32x96xf32> to vector<32x96xf32>
    %cst_8 = arith.constant dense<0.000000e+00> : vector<16x96xf32>
    %8 = tpu.matmul %4, %7, %cst_8 {dimension_numbers = #tpu.dot_dimension_numbers<[1], [0], [0], [1], [0, 0, 1, 1], [], []>} : vector<16x32xf32>, vector<32x96xf32>, vector<16x96xf32> -> vector<16x96xf32>
    %c0_9 = arith.constant 0 : index
    %c0_10 = arith.constant 0 : index
    %c0_11 = arith.constant 0 : index
    %9 = vector.load %arg4[%c0_9, %c0_10, %c0_11] : memref<2x1x96xf32, #tpu.memory_space<vmem>>, vector<1x1x96xf32>
    %10 = vector.shape_cast %9 : vector<1x1x96xf32> to vector<1x96xf32>
    %11 = vector.broadcast %10 : vector<1x96xf32> to vector<16x96xf32>
    %12 = arith.addf %8, %11 : vector<16x96xf32>
    %13 = vector.extract_strided_slice %12 {offsets = [0, 0], sizes = [16, 32], strides = [1, 1]} : vector<16x96xf32> to vector<16x32xf32>
    %14 = vector.extract_strided_slice %12 {offsets = [0, 32], sizes = [16, 32], strides = [1, 1]} : vector<16x96xf32> to vector<16x32xf32>
    %15 = vector.extract_strided_slice %12 {offsets = [0, 64], sizes = [16, 32], strides = [1, 1]} : vector<16x96xf32> to vector<16x32xf32>
    %c0_12 = arith.constant 0 : index
    %c0_13 = arith.constant 0 : index
    %c0_14 = arith.constant 0 : index
    %16 = vector.load %arg5[%c0_12, %c0_13, %c0_14] : memref<2x32x32xf32, #tpu.memory_space<vmem>>, vector<1x32x32xf32>
    %17 = vector.shape_cast %16 : vector<1x32x32xf32> to vector<32x32xf32>
    %18 = vector.extract_strided_slice %13 {offsets = [0, 0], sizes = [8, 8], strides = [1, 1]} : vector<16x32xf32> to vector<8x8xf32>
    %19 = vector.extract_strided_slice %14 {offsets = [0, 0], sizes = [8, 8], strides = [1, 1]} : vector<16x32xf32> to vector<8x8xf32>
    %20 = vector.extract_strided_slice %15 {offsets = [0, 0], sizes = [8, 8], strides = [1, 1]} : vector<16x32xf32> to vector<8x8xf32>
    %c0_15 = arith.constant 0 : index
    %c0_16 = arith.constant 0 : index
    %c0_17 = arith.constant 0 : index
    %c0_18 = arith.constant 0 : index
    %21 = vector.load %arg7[%c0_15, %c0_16, %c0_17, %c0_18] : memref<8x8x8x8xf32, #tpu.memory_space<vmem>>, vector<1x8x8x8xf32>
    %22 = vector.shape_cast %21 : vector<1x8x8x8xf32> to vector<8x8x8xf32>
    %23 = vector.shape_cast %18 : vector<8x8xf32> to vector<1x8x8xf32>
    %24 = vector.broadcast %23 : vector<1x8x8xf32> to vector<8x8x8xf32>
    %25 = arith.mulf %24, %22 : vector<8x8x8xf32>
    %cst_19 = arith.constant dense<0.000000e+00> : vector<8x8xf32>
    %26 = vector.multi_reduction <add>, %25, %cst_19 [2] : vector<8x8x8xf32> to vector<8x8xf32>
    %27 = tpu.transpose %26, [1, 0] : vector<8x8xf32> -> vector<8x8xf32>
    %28 = tpu.transpose %19, [1, 0] : vector<8x8xf32> -> vector<8x8xf32>
    %cst_20 = arith.constant dense<0.000000e+00> : vector<8x8xf32>
    %29 = tpu.matmul %18, %28, %cst_20 {dimension_numbers = #tpu.dot_dimension_numbers<[1], [0], [0], [1], [0, 0, 1, 1], [], []>} : vector<8x8xf32>, vector<8x8xf32>, vector<8x8xf32> -> vector<8x8xf32>
    %30 = arith.addf %29, %27 : vector<8x8xf32>
    %cst_21 = arith.constant 0.353553385 : f32
    %31 = vector.broadcast %cst_21 : f32 to vector<8x8xf32>
    %32 = arith.mulf %30, %31 : vector<8x8xf32>
    %33 = arith.addf %32, %5 : vector<8x8xf32>
    %cst_22 = arith.constant dense<0xFF800000> : vector<8xf32>
    %34 = vector.multi_reduction <maximumf>, %33, %cst_22 [1] : vector<8x8xf32> to vector<8xf32>
    %35 = vector.shape_cast %34 : vector<8xf32> to vector<8x1xf32>
    %36 = vector.broadcast %35 : vector<8x1xf32> to vector<8x8xf32>
    %37 = arith.subf %33, %36 : vector<8x8xf32>
    %38 = math.exp %37 : vector<8x8xf32>
    %cst_23 = arith.constant dense<0.000000e+00> : vector<8xf32>
    %39 = vector.multi_reduction <add>, %38, %cst_23 [1] : vector<8x8xf32> to vector<8xf32>
    %40 = vector.shape_cast %39 : vector<8xf32> to vector<8x1xf32>
    %41 = vector.broadcast %40 : vector<8x1xf32> to vector<8x8xf32>
    %42 = arith.divf %38, %41 : vector<8x8xf32>
    %cst_24 = arith.constant dense<0.000000e+00> : vector<8x8xf32>
    %43 = tpu.matmul %42, %20, %cst_24 {dimension_numbers = #tpu.dot_dimension_numbers<[1], [0], [0], [1], [0, 0, 1, 1], [], []>} : vector<8x8xf32>, vector<8x8xf32>, vector<8x8xf32> -> vector<8x8xf32>
    %44 = vector.extract_strided_slice %17 {offsets = [0, 0], sizes = [8, 32], strides = [1, 1]} : vector<32x32xf32> to vector<8x32xf32>
    %cst_25 = arith.constant dense<0.000000e+00> : vector<8x32xf32>
    %45 = tpu.matmul %43, %44, %cst_25 {dimension_numbers = #tpu.dot_dimension_numbers<[1], [0], [0], [1], [0, 0, 1, 1], [], []>} : vector<8x8xf32>, vector<8x32xf32>, vector<8x32xf32> -> vector<8x32xf32>
    %46 = vector.extract_strided_slice %13 {offsets = [0, 8], sizes = [8, 8], strides = [1, 1]} : vector<16x32xf32> to vector<8x8xf32>
    %47 = vector.extract_strided_slice %14 {offsets = [0, 8], sizes = [8, 8], strides = [1, 1]} : vector<16x32xf32> to vector<8x8xf32>
    %48 = vector.extract_strided_slice %15 {offsets = [0, 8], sizes = [8, 8], strides = [1, 1]} : vector<16x32xf32> to vector<8x8xf32>
    %c1 = arith.constant 1 : index
    %c0_26 = arith.constant 0 : index
    %c0_27 = arith.constant 0 : index
    %c0_28 = arith.constant 0 : index
    %49 = vector.load %arg7[%c1, %c0_26, %c0_27, %c0_28] : memref<8x8x8x8xf32, #tpu.memory_space<vmem>>, vector<1x8x8x8xf32>
    %50 = vector.shape_cast %49 : vector<1x8x8x8xf32> to vector<8x8x8xf32>
    %51 = vector.shape_cast %46 : vector<8x8xf32> to vector<1x8x8xf32>
    %52 = vector.broadcast %51 : vector<1x8x8xf32> to vector<8x8x8xf32>
    %53 = arith.mulf %52, %50 : vector<8x8x8xf32>
    %cst_29 = arith.constant dense<0.000000e+00> : vector<8x8xf32>
    %54 = vector.multi_reduction <add>, %53, %cst_29 [2] : vector<8x8x8xf32> to vector<8x8xf32>
    %55 = tpu.transpose %54, [1, 0] : vector<8x8xf32> -> vector<8x8xf32>
    %56 = tpu.transpose %47, [1, 0] : vector<8x8xf32> -> vector<8x8xf32>
    %cst_30 = arith.constant dense<0.000000e+00> : vector<8x8xf32>
    %57 = tpu.matmul %46, %56, %cst_30 {dimension_numbers = #tpu.dot_dimension_numbers<[1], [0], [0], [1], [0, 0, 1, 1], [], []>} : vector<8x8xf32>, vector<8x8xf32>, vector<8x8xf32> -> vector<8x8xf32>
    %58 = arith.addf %57, %55 : vector<8x8xf32>
    %cst_31 = arith.constant 0.353553385 : f32
    %59 = vector.broadcast %cst_31 : f32 to vector<8x8xf32>
    %60 = arith.mulf %58, %59 : vector<8x8xf32>
    %61 = arith.addf %60, %5 : vector<8x8xf32>
    %cst_32 = arith.constant dense<0xFF800000> : vector<8xf32>
    %62 = vector.multi_reduction <maximumf>, %61, %cst_32 [1] : vector<8x8xf32> to vector<8xf32>
    %63 = vector.shape_cast %62 : vector<8xf32> to vector<8x1xf32>
    %64 = vector.broadcast %63 : vector<8x1xf32> to vector<8x8xf32>
    %65 = arith.subf %61, %64 : vector<8x8xf32>
    %66 = math.exp %65 : vector<8x8xf32>
    %cst_33 = arith.constant dense<0.000000e+00> : vector<8xf32>
    %67 = vector.multi_reduction <add>, %66, %cst_33 [1] : vector<8x8xf32> to vector<8xf32>
    %68 = vector.shape_cast %67 : vector<8xf32> to vector<8x1xf32>
    %69 = vector.broadcast %68 : vector<8x1xf32> to vector<8x8xf32>
    %70 = arith.divf %66, %69 : vector<8x8xf32>
    %cst_34 = arith.constant dense<0.000000e+00> : vector<8x8xf32>
    %71 = tpu.matmul %70, %48, %cst_34 {dimension_numbers = #tpu.dot_dimension_numbers<[1], [0], [0], [1], [0, 0, 1, 1], [], []>} : vector<8x8xf32>, vector<8x8xf32>, vector<8x8xf32> -> vector<8x8xf32>
    %72 = vector.extract_strided_slice %17 {offsets = [8, 0], sizes = [8, 32], strides = [1, 1]} : vector<32x32xf32> to vector<8x32xf32>
    %cst_35 = arith.constant dense<0.000000e+00> : vector<8x32xf32>
    %73 = tpu.matmul %71, %72, %cst_35 {dimension_numbers = #tpu.dot_dimension_numbers<[1], [0], [0], [1], [0, 0, 1, 1], [], []>} : vector<8x8xf32>, vector<8x32xf32>, vector<8x32xf32> -> vector<8x32xf32>
    %74 = arith.addf %45, %73 : vector<8x32xf32>
    %75 = vector.extract_strided_slice %13 {offsets = [0, 16], sizes = [8, 8], strides = [1, 1]} : vector<16x32xf32> to vector<8x8xf32>
    %76 = vector.extract_strided_slice %14 {offsets = [0, 16], sizes = [8, 8], strides = [1, 1]} : vector<16x32xf32> to vector<8x8xf32>
    %77 = vector.extract_strided_slice %15 {offsets = [0, 16], sizes = [8, 8], strides = [1, 1]} : vector<16x32xf32> to vector<8x8xf32>
    %c2 = arith.constant 2 : index
    %c0_36 = arith.constant 0 : index
    %c0_37 = arith.constant 0 : index
    %c0_38 = arith.constant 0 : index
    %78 = vector.load %arg7[%c2, %c0_36, %c0_37, %c0_38] : memref<8x8x8x8xf32, #tpu.memory_space<vmem>>, vector<1x8x8x8xf32>
    %79 = vector.shape_cast %78 : vector<1x8x8x8xf32> to vector<8x8x8xf32>
    %80 = vector.shape_cast %75 : vector<8x8xf32> to vector<1x8x8xf32>
    %81 = vector.broadcast %80 : vector<1x8x8xf32> to vector<8x8x8xf32>
    %82 = arith.mulf %81, %79 : vector<8x8x8xf32>
    %cst_39 = arith.constant dense<0.000000e+00> : vector<8x8xf32>
    %83 = vector.multi_reduction <add>, %82, %cst_39 [2] : vector<8x8x8xf32> to vector<8x8xf32>
    %84 = tpu.transpose %83, [1, 0] : vector<8x8xf32> -> vector<8x8xf32>
    %85 = tpu.transpose %76, [1, 0] : vector<8x8xf32> -> vector<8x8xf32>
    %cst_40 = arith.constant dense<0.000000e+00> : vector<8x8xf32>
    %86 = tpu.matmul %75, %85, %cst_40 {dimension_numbers = #tpu.dot_dimension_numbers<[1], [0], [0], [1], [0, 0, 1, 1], [], []>} : vector<8x8xf32>, vector<8x8xf32>, vector<8x8xf32> -> vector<8x8xf32>
    %87 = arith.addf %86, %84 : vector<8x8xf32>
    %cst_41 = arith.constant 0.353553385 : f32
    %88 = vector.broadcast %cst_41 : f32 to vector<8x8xf32>
    %89 = arith.mulf %87, %88 : vector<8x8xf32>
    %90 = arith.addf %89, %5 : vector<8x8xf32>
    %cst_42 = arith.constant dense<0xFF800000> : vector<8xf32>
    %91 = vector.multi_reduction <maximumf>, %90, %cst_42 [1] : vector<8x8xf32> to vector<8xf32>
    %92 = vector.shape_cast %91 : vector<8xf32> to vector<8x1xf32>
    %93 = vector.broadcast %92 : vector<8x1xf32> to vector<8x8xf32>
    %94 = arith.subf %90, %93 : vector<8x8xf32>
    %95 = math.exp %94 : vector<8x8xf32>
    %cst_43 = arith.constant dense<0.000000e+00> : vector<8xf32>
    %96 = vector.multi_reduction <add>, %95, %cst_43 [1] : vector<8x8xf32> to vector<8xf32>
    %97 = vector.shape_cast %96 : vector<8xf32> to vector<8x1xf32>
    %98 = vector.broadcast %97 : vector<8x1xf32> to vector<8x8xf32>
    %99 = arith.divf %95, %98 : vector<8x8xf32>
    %cst_44 = arith.constant dense<0.000000e+00> : vector<8x8xf32>
    %100 = tpu.matmul %99, %77, %cst_44 {dimension_numbers = #tpu.dot_dimension_numbers<[1], [0], [0], [1], [0, 0, 1, 1], [], []>} : vector<8x8xf32>, vector<8x8xf32>, vector<8x8xf32> -> vector<8x8xf32>
    %101 = vector.extract_strided_slice %17 {offsets = [16, 0], sizes = [8, 32], strides = [1, 1]} : vector<32x32xf32> to vector<8x32xf32>
    %cst_45 = arith.constant dense<0.000000e+00> : vector<8x32xf32>
    %102 = tpu.matmul %100, %101, %cst_45 {dimension_numbers = #tpu.dot_dimension_numbers<[1], [0], [0], [1], [0, 0, 1, 1], [], []>} : vector<8x8xf32>, vector<8x32xf32>, vector<8x32xf32> -> vector<8x32xf32>
    %103 = arith.addf %74, %102 : vector<8x32xf32>
    %104 = vector.extract_strided_slice %13 {offsets = [0, 24], sizes = [8, 8], strides = [1, 1]} : vector<16x32xf32> to vector<8x8xf32>
    %105 = vector.extract_strided_slice %14 {offsets = [0, 24], sizes = [8, 8], strides = [1, 1]} : vector<16x32xf32> to vector<8x8xf32>
    %106 = vector.extract_strided_slice %15 {offsets = [0, 24], sizes = [8, 8], strides = [1, 1]} : vector<16x32xf32> to vector<8x8xf32>
    %c3 = arith.constant 3 : index
    %c0_46 = arith.constant 0 : index
    %c0_47 = arith.constant 0 : index
    %c0_48 = arith.constant 0 : index
    %107 = vector.load %arg7[%c3, %c0_46, %c0_47, %c0_48] : memref<8x8x8x8xf32, #tpu.memory_space<vmem>>, vector<1x8x8x8xf32>
    %108 = vector.shape_cast %107 : vector<1x8x8x8xf32> to vector<8x8x8xf32>
    %109 = vector.shape_cast %104 : vector<8x8xf32> to vector<1x8x8xf32>
    %110 = vector.broadcast %109 : vector<1x8x8xf32> to vector<8x8x8xf32>
    %111 = arith.mulf %110, %108 : vector<8x8x8xf32>
    %cst_49 = arith.constant dense<0.000000e+00> : vector<8x8xf32>
    %112 = vector.multi_reduction <add>, %111, %cst_49 [2] : vector<8x8x8xf32> to vector<8x8xf32>
    %113 = tpu.transpose %112, [1, 0] : vector<8x8xf32> -> vector<8x8xf32>
    %114 = tpu.transpose %105, [1, 0] : vector<8x8xf32> -> vector<8x8xf32>
    %cst_50 = arith.constant dense<0.000000e+00> : vector<8x8xf32>
    %115 = tpu.matmul %104, %114, %cst_50 {dimension_numbers = #tpu.dot_dimension_numbers<[1], [0], [0], [1], [0, 0, 1, 1], [], []>} : vector<8x8xf32>, vector<8x8xf32>, vector<8x8xf32> -> vector<8x8xf32>
    %116 = arith.addf %115, %113 : vector<8x8xf32>
    %cst_51 = arith.constant 0.353553385 : f32
    %117 = vector.broadcast %cst_51 : f32 to vector<8x8xf32>
    %118 = arith.mulf %116, %117 : vector<8x8xf32>
    %119 = arith.addf %118, %5 : vector<8x8xf32>
    %cst_52 = arith.constant dense<0xFF800000> : vector<8xf32>
    %120 = vector.multi_reduction <maximumf>, %119, %cst_52 [1] : vector<8x8xf32> to vector<8xf32>
    %121 = vector.shape_cast %120 : vector<8xf32> to vector<8x1xf32>
    %122 = vector.broadcast %121 : vector<8x1xf32> to vector<8x8xf32>
    %123 = arith.subf %119, %122 : vector<8x8xf32>
    %124 = math.exp %123 : vector<8x8xf32>
    %cst_53 = arith.constant dense<0.000000e+00> : vector<8xf32>
    %125 = vector.multi_reduction <add>, %124, %cst_53 [1] : vector<8x8xf32> to vector<8xf32>
    %126 = vector.shape_cast %125 : vector<8xf32> to vector<8x1xf32>
    %127 = vector.broadcast %126 : vector<8x1xf32> to vector<8x8xf32>
    %128 = arith.divf %124, %127 : vector<8x8xf32>
    %cst_54 = arith.constant dense<0.000000e+00> : vector<8x8xf32>
    %129 = tpu.matmul %128, %106, %cst_54 {dimension_numbers = #tpu.dot_dimension_numbers<[1], [0], [0], [1], [0, 0, 1, 1], [], []>} : vector<8x8xf32>, vector<8x8xf32>, vector<8x8xf32> -> vector<8x8xf32>
    %130 = vector.extract_strided_slice %17 {offsets = [24, 0], sizes = [8, 32], strides = [1, 1]} : vector<32x32xf32> to vector<8x32xf32>
    %cst_55 = arith.constant dense<0.000000e+00> : vector<8x32xf32>
    %131 = tpu.matmul %129, %130, %cst_55 {dimension_numbers = #tpu.dot_dimension_numbers<[1], [0], [0], [1], [0, 0, 1, 1], [], []>} : vector<8x8xf32>, vector<8x32xf32>, vector<8x32xf32> -> vector<8x32xf32>
    %132 = arith.addf %103, %131 : vector<8x32xf32>
    %c0_56 = arith.constant 0 : index
    %c0_57 = arith.constant 0 : index
    %133 = vector.load %arg21[%c0_56, %c0_57] : memref<16x32xf32, #tpu.memory_space<vmem>>, vector<8x32xf32>
    tpu.vector_store %arg21[%c0_56, %c0_57], %132 {strides = array<i32>} : memref<16x32xf32, #tpu.memory_space<vmem>>, vector<8x32xf32>,
    %134 = vector.extract_strided_slice %13 {offsets = [8, 0], sizes = [8, 8], strides = [1, 1]} : vector<16x32xf32> to vector<8x8xf32>
    %135 = vector.extract_strided_slice %14 {offsets = [8, 0], sizes = [8, 8], strides = [1, 1]} : vector<16x32xf32> to vector<8x8xf32>
    %136 = vector.extract_strided_slice %15 {offsets = [8, 0], sizes = [8, 8], strides = [1, 1]} : vector<16x32xf32> to vector<8x8xf32>
    %c0_58 = arith.constant 0 : index
    %c0_59 = arith.constant 0 : index
    %c0_60 = arith.constant 0 : index
    %c0_61 = arith.constant 0 : index
    %137 = vector.load %arg7[%c0_58, %c0_59, %c0_60, %c0_61] : memref<8x8x8x8xf32, #tpu.memory_space<vmem>>, vector<1x8x8x8xf32>
    %138 = vector.shape_cast %137 : vector<1x8x8x8xf32> to vector<8x8x8xf32>
    %139 = vector.shape_cast %134 : vector<8x8xf32> to vector<1x8x8xf32>
    %140 = vector.broadcast %139 : vector<1x8x8xf32> to vector<8x8x8xf32>
    %141 = arith.mulf %140, %138 : vector<8x8x8xf32>
    %cst_62 = arith.constant dense<0.000000e+00> : vector<8x8xf32>
    %142 = vector.multi_reduction <add>, %141, %cst_62 [2] : vector<8x8x8xf32> to vector<8x8xf32>
    %143 = tpu.transpose %142, [1, 0] : vector<8x8xf32> -> vector<8x8xf32>
    %144 = tpu.transpose %135, [1, 0] : vector<8x8xf32> -> vector<8x8xf32>
    %cst_63 = arith.constant dense<0.000000e+00> : vector<8x8xf32>
    %145 = tpu.matmul %134, %144, %cst_63 {dimension_numbers = #tpu.dot_dimension_numbers<[1], [0], [0], [1], [0, 0, 1, 1], [], []>} : vector<8x8xf32>, vector<8x8xf32>, vector<8x8xf32> -> vector<8x8xf32>
    %146 = arith.addf %145, %143 : vector<8x8xf32>
    %cst_64 = arith.constant 0.353553385 : f32
    %147 = vector.broadcast %cst_64 : f32 to vector<8x8xf32>
    %148 = arith.mulf %146, %147 : vector<8x8xf32>
    %149 = arith.addf %148, %5 : vector<8x8xf32>
    %cst_65 = arith.constant dense<0xFF800000> : vector<8xf32>
    %150 = vector.multi_reduction <maximumf>, %149, %cst_65 [1] : vector<8x8xf32> to vector<8xf32>
    %151 = vector.shape_cast %150 : vector<8xf32> to vector<8x1xf32>
    %152 = vector.broadcast %151 : vector<8x1xf32> to vector<8x8xf32>
    %153 = arith.subf %149, %152 : vector<8x8xf32>
    %154 = math.exp %153 : vector<8x8xf32>
    %cst_66 = arith.constant dense<0.000000e+00> : vector<8xf32>
    %155 = vector.multi_reduction <add>, %154, %cst_66 [1] : vector<8x8xf32> to vector<8xf32>
    %156 = vector.shape_cast %155 : vector<8xf32> to vector<8x1xf32>
    %157 = vector.broadcast %156 : vector<8x1xf32> to vector<8x8xf32>
    %158 = arith.divf %154, %157 : vector<8x8xf32>
    %cst_67 = arith.constant dense<0.000000e+00> : vector<8x8xf32>
    %159 = tpu.matmul %158, %136, %cst_67 {dimension_numbers = #tpu.dot_dimension_numbers<[1], [0], [0], [1], [0, 0, 1, 1], [], []>} : vector<8x8xf32>, vector<8x8xf32>, vector<8x8xf32> -> vector<8x8xf32>
    %160 = vector.extract_strided_slice %17 {offsets = [0, 0], sizes = [8, 32], strides = [1, 1]} : vector<32x32xf32> to vector<8x32xf32>
    %cst_68 = arith.constant dense<0.000000e+00> : vector<8x32xf32>
    %161 = tpu.matmul %159, %160, %cst_68 {dimension_numbers = #tpu.dot_dimension_numbers<[1], [0], [0], [1], [0, 0, 1, 1], [], []>} : vector<8x8xf32>, vector<8x32xf32>, vector<8x32xf32> -> vector<8x32xf32>
    %162 = vector.extract_strided_slice %13 {offsets = [8, 8], sizes = [8, 8], strides = [1, 1]} : vector<16x32xf32> to vector<8x8xf32>
    %163 = vector.extract_strided_slice %14 {offsets = [8, 8], sizes = [8, 8], strides = [1, 1]} : vector<16x32xf32> to vector<8x8xf32>
    %164 = vector.extract_strided_slice %15 {offsets = [8, 8], sizes = [8, 8], strides = [1, 1]} : vector<16x32xf32> to vector<8x8xf32>
    %c1_69 = arith.constant 1 : index
    %c0_70 = arith.constant 0 : index
    %c0_71 = arith.constant 0 : index
    %c0_72 = arith.constant 0 : index
    %165 = vector.load %arg7[%c1_69, %c0_70, %c0_71, %c0_72] : memref<8x8x8x8xf32, #tpu.memory_space<vmem>>, vector<1x8x8x8xf32>
    %166 = vector.shape_cast %165 : vector<1x8x8x8xf32> to vector<8x8x8xf32>
    %167 = vector.shape_cast %162 : vector<8x8xf32> to vector<1x8x8xf32>
    %168 = vector.broadcast %167 : vector<1x8x8xf32> to vector<8x8x8xf32>
    %169 = arith.mulf %168, %166 : vector<8x8x8xf32>
    %cst_73 = arith.constant dense<0.000000e+00> : vector<8x8xf32>
    %170 = vector.multi_reduction <add>, %169, %cst_73 [2] : vector<8x8x8xf32> to vector<8x8xf32>
    %171 = tpu.transpose %170, [1, 0] : vector<8x8xf32> -> vector<8x8xf32>
    %172 = tpu.transpose %163, [1, 0] : vector<8x8xf32> -> vector<8x8xf32>
    %cst_74 = arith.constant dense<0.000000e+00> : vector<8x8xf32>
    %173 = tpu.matmul %162, %172, %cst_74 {dimension_numbers = #tpu.dot_dimension_numbers<[1], [0], [0], [1], [0, 0, 1, 1], [], []>} : vector<8x8xf32>, vector<8x8xf32>, vector<8x8xf32> -> vector<8x8xf32>
    %174 = arith.addf %173, %171 : vector<8x8xf32>
    %cst_75 = arith.constant 0.353553385 : f32
    %175 = vector.broadcast %cst_75 : f32 to vector<8x8xf32>
    %176 = arith.mulf %174, %175 : vector<8x8xf32>
    %177 = arith.addf %176, %5 : vector<8x8xf32>
    %cst_76 = arith.constant dense<0xFF800000> : vector<8xf32>
    %178 = vector.multi_reduction <maximumf>, %177, %cst_76 [1] : vector<8x8xf32> to vector<8xf32>
    %179 = vector.shape_cast %178 : vector<8xf32> to vector<8x1xf32>
    %180 = vector.broadcast %179 : vector<8x1xf32> to vector<8x8xf32>
    %181 = arith.subf %177, %180 : vector<8x8xf32>
    %182 = math.exp %181 : vector<8x8xf32>
    %cst_77 = arith.constant dense<0.000000e+00> : vector<8xf32>
    %183 = vector.multi_reduction <add>, %182, %cst_77 [1] : vector<8x8xf32> to vector<8xf32>
    %184 = vector.shape_cast %183 : vector<8xf32> to vector<8x1xf32>
    %185 = vector.broadcast %184 : vector<8x1xf32> to vector<8x8xf32>
    %186 = arith.divf %182, %185 : vector<8x8xf32>
    %cst_78 = arith.constant dense<0.000000e+00> : vector<8x8xf32>
    %187 = tpu.matmul %186, %164, %cst_78 {dimension_numbers = #tpu.dot_dimension_numbers<[1], [0], [0], [1], [0, 0, 1, 1], [], []>} : vector<8x8xf32>, vector<8x8xf32>, vector<8x8xf32> -> vector<8x8xf32>
    %188 = vector.extract_strided_slice %17 {offsets = [8, 0], sizes = [8, 32], strides = [1, 1]} : vector<32x32xf32> to vector<8x32xf32>
    %cst_79 = arith.constant dense<0.000000e+00> : vector<8x32xf32>
    %189 = tpu.matmul %187, %188, %cst_79 {dimension_numbers = #tpu.dot_dimension_numbers<[1], [0], [0], [1], [0, 0, 1, 1], [], []>} : vector<8x8xf32>, vector<8x32xf32>, vector<8x32xf32> -> vector<8x32xf32>
    %190 = arith.addf %161, %189 : vector<8x32xf32>
    %191 = vector.extract_strided_slice %13 {offsets = [8, 16], sizes = [8, 8], strides = [1, 1]} : vector<16x32xf32> to vector<8x8xf32>
    %192 = vector.extract_strided_slice %14 {offsets = [8, 16], sizes = [8, 8], strides = [1, 1]} : vector<16x32xf32> to vector<8x8xf32>
    %193 = vector.extract_strided_slice %15 {offsets = [8, 16], sizes = [8, 8], strides = [1, 1]} : vector<16x32xf32> to vector<8x8xf32>
    %c2_80 = arith.constant 2 : index
    %c0_81 = arith.constant 0 : index
    %c0_82 = arith.constant 0 : index
    %c0_83 = arith.constant 0 : index
    %194 = vector.load %arg7[%c2_80, %c0_81, %c0_82, %c0_83] : memref<8x8x8x8xf32, #tpu.memory_space<vmem>>, vector<1x8x8x8xf32>
    %195 = vector.shape_cast %194 : vector<1x8x8x8xf32> to vector<8x8x8xf32>
    %196 = vector.shape_cast %191 : vector<8x8xf32> to vector<1x8x8xf32>
    %197 = vector.broadcast %196 : vector<1x8x8xf32> to vector<8x8x8xf32>
    %198 = arith.mulf %197, %195 : vector<8x8x8xf32>
    %cst_84 = arith.constant dense<0.000000e+00> : vector<8x8xf32>
    %199 = vector.multi_reduction <add>, %198, %cst_84 [2] : vector<8x8x8xf32> to vector<8x8xf32>
    %200 = tpu.transpose %199, [1, 0] : vector<8x8xf32> -> vector<8x8xf32>
    %201 = tpu.transpose %192, [1, 0] : vector<8x8xf32> -> vector<8x8xf32>
    %cst_85 = arith.constant dense<0.000000e+00> : vector<8x8xf32>
    %202 = tpu.matmul %191, %201, %cst_85 {dimension_numbers = #tpu.dot_dimension_numbers<[1], [0], [0], [1], [0, 0, 1, 1], [], []>} : vector<8x8xf32>, vector<8x8xf32>, vector<8x8xf32> -> vector<8x8xf32>
    %203 = arith.addf %202, %200 : vector<8x8xf32>
    %cst_86 = arith.constant 0.353553385 : f32
    %204 = vector.broadcast %cst_86 : f32 to vector<8x8xf32>
    %205 = arith.mulf %203, %204 : vector<8x8xf32>
    %206 = arith.addf %205, %5 : vector<8x8xf32>
    %cst_87 = arith.constant dense<0xFF800000> : vector<8xf32>
    %207 = vector.multi_reduction <maximumf>, %206, %cst_87 [1] : vector<8x8xf32> to vector<8xf32>
    %208 = vector.shape_cast %207 : vector<8xf32> to vector<8x1xf32>
    %209 = vector.broadcast %208 : vector<8x1xf32> to vector<8x8xf32>
    %210 = arith.subf %206, %209 : vector<8x8xf32>
    %211 = math.exp %210 : vector<8x8xf32>
    %cst_88 = arith.constant dense<0.000000e+00> : vector<8xf32>
    %212 = vector.multi_reduction <add>, %211, %cst_88 [1] : vector<8x8xf32> to vector<8xf32>
    %213 = vector.shape_cast %212 : vector<8xf32> to vector<8x1xf32>
    %214 = vector.broadcast %213 : vector<8x1xf32> to vector<8x8xf32>
    %215 = arith.divf %211, %214 : vector<8x8xf32>
    %cst_89 = arith.constant dense<0.000000e+00> : vector<8x8xf32>
    %216 = tpu.matmul %215, %193, %cst_89 {dimension_numbers = #tpu.dot_dimension_numbers<[1], [0], [0], [1], [0, 0, 1, 1], [], []>} : vector<8x8xf32>, vector<8x8xf32>, vector<8x8xf32> -> vector<8x8xf32>
    %217 = vector.extract_strided_slice %17 {offsets = [16, 0], sizes = [8, 32], strides = [1, 1]} : vector<32x32xf32> to vector<8x32xf32>
    %cst_90 = arith.constant dense<0.000000e+00> : vector<8x32xf32>
    %218 = tpu.matmul %216, %217, %cst_90 {dimension_numbers = #tpu.dot_dimension_numbers<[1], [0], [0], [1], [0, 0, 1, 1], [], []>} : vector<8x8xf32>, vector<8x32xf32>, vector<8x32xf32> -> vector<8x32xf32>
    %219 = arith.addf %190, %218 : vector<8x32xf32>
    %220 = vector.extract_strided_slice %13 {offsets = [8, 24], sizes = [8, 8], strides = [1, 1]} : vector<16x32xf32> to vector<8x8xf32>
    %221 = vector.extract_strided_slice %14 {offsets = [8, 24], sizes = [8, 8], strides = [1, 1]} : vector<16x32xf32> to vector<8x8xf32>
    %222 = vector.extract_strided_slice %15 {offsets = [8, 24], sizes = [8, 8], strides = [1, 1]} : vector<16x32xf32> to vector<8x8xf32>
    %c3_91 = arith.constant 3 : index
    %c0_92 = arith.constant 0 : index
    %c0_93 = arith.constant 0 : index
    %c0_94 = arith.constant 0 : index
    %223 = vector.load %arg7[%c3_91, %c0_92, %c0_93, %c0_94] : memref<8x8x8x8xf32, #tpu.memory_space<vmem>>, vector<1x8x8x8xf32>
    %224 = vector.shape_cast %223 : vector<1x8x8x8xf32> to vector<8x8x8xf32>
    %225 = vector.shape_cast %220 : vector<8x8xf32> to vector<1x8x8xf32>
    %226 = vector.broadcast %225 : vector<1x8x8xf32> to vector<8x8x8xf32>
    %227 = arith.mulf %226, %224 : vector<8x8x8xf32>
    %cst_95 = arith.constant dense<0.000000e+00> : vector<8x8xf32>
    %228 = vector.multi_reduction <add>, %227, %cst_95 [2] : vector<8x8x8xf32> to vector<8x8xf32>
    %229 = tpu.transpose %228, [1, 0] : vector<8x8xf32> -> vector<8x8xf32>
    %230 = tpu.transpose %221, [1, 0] : vector<8x8xf32> -> vector<8x8xf32>
    %cst_96 = arith.constant dense<0.000000e+00> : vector<8x8xf32>
    %231 = tpu.matmul %220, %230, %cst_96 {dimension_numbers = #tpu.dot_dimension_numbers<[1], [0], [0], [1], [0, 0, 1, 1], [], []>} : vector<8x8xf32>, vector<8x8xf32>, vector<8x8xf32> -> vector<8x8xf32>
    %232 = arith.addf %231, %229 : vector<8x8xf32>
    %cst_97 = arith.constant 0.353553385 : f32
    %233 = vector.broadcast %cst_97 : f32 to vector<8x8xf32>
    %234 = arith.mulf %232, %233 : vector<8x8xf32>
    %235 = arith.addf %234, %5 : vector<8x8xf32>
    %cst_98 = arith.constant dense<0xFF800000> : vector<8xf32>
    %236 = vector.multi_reduction <maximumf>, %235, %cst_98 [1] : vector<8x8xf32> to vector<8xf32>
    %237 = vector.shape_cast %236 : vector<8xf32> to vector<8x1xf32>
    %238 = vector.broadcast %237 : vector<8x1xf32> to vector<8x8xf32>
    %239 = arith.subf %235, %238 : vector<8x8xf32>
    %240 = math.exp %239 : vector<8x8xf32>
    %cst_99 = arith.constant dense<0.000000e+00> : vector<8xf32>
    %241 = vector.multi_reduction <add>, %240, %cst_99 [1] : vector<8x8xf32> to vector<8xf32>
    %242 = vector.shape_cast %241 : vector<8xf32> to vector<8x1xf32>
    %243 = vector.broadcast %242 : vector<8x1xf32> to vector<8x8xf32>
    %244 = arith.divf %240, %243 : vector<8x8xf32>
    %cst_100 = arith.constant dense<0.000000e+00> : vector<8x8xf32>
    %245 = tpu.matmul %244, %222, %cst_100 {dimension_numbers = #tpu.dot_dimension_numbers<[1], [0], [0], [1], [0, 0, 1, 1], [], []>} : vector<8x8xf32>, vector<8x8xf32>, vector<8x8xf32> -> vector<8x8xf32>
    %246 = vector.extract_strided_slice %17 {offsets = [24, 0], sizes = [8, 32], strides = [1, 1]} : vector<32x32xf32> to vector<8x32xf32>
    %cst_101 = arith.constant dense<0.000000e+00> : vector<8x32xf32>
    %247 = tpu.matmul %245, %246, %cst_101 {dimension_numbers = #tpu.dot_dimension_numbers<[1], [0], [0], [1], [0, 0, 1, 1], [], []>} : vector<8x8xf32>, vector<8x32xf32>, vector<8x32xf32> -> vector<8x32xf32>
    %248 = arith.addf %219, %247 : vector<8x32xf32>
    %c8 = arith.constant 8 : index
    %c0_102 = arith.constant 0 : index
    %249 = vector.load %arg21[%c8, %c0_102] : memref<16x32xf32, #tpu.memory_space<vmem>>, vector<8x32xf32>
    tpu.vector_store %arg21[%c8, %c0_102], %248 {strides = array<i32>} : memref<16x32xf32, #tpu.memory_space<vmem>>, vector<8x32xf32>,
    %c0_103 = arith.constant 0 : index
    %c0_104 = arith.constant 0 : index
    %250 = vector.load %arg21[%c0_103, %c0_104] : memref<16x32xf32, #tpu.memory_space<vmem>>, vector<16x32xf32>
    %c0_105 = arith.constant 0 : index
    %c0_106 = arith.constant 0 : index
    %c0_107 = arith.constant 0 : index
    %251 = vector.load %arg6[%c0_105, %c0_106, %c0_107] : memref<2x1x32xf32, #tpu.memory_space<vmem>>, vector<1x1x32xf32>
    %252 = vector.shape_cast %251 : vector<1x1x32xf32> to vector<1x32xf32>
    %253 = vector.broadcast %252 : vector<1x32xf32> to vector<16x32xf32>
    %254 = arith.addf %250, %253 : vector<16x32xf32>
    %255 = arith.addf %254, %4 : vector<16x32xf32>
    %c0_108 = arith.constant 0 : index
    %c0_109 = arith.constant 0 : index
    %c0_110 = arith.constant 0 : index
    %256 = vector.load %arg8[%c0_108, %c0_109, %c0_110] : memref<2x1x32xf32, #tpu.memory_space<vmem>>, vector<1x1x32xf32>
    %257 = vector.shape_cast %256 : vector<1x1x32xf32> to vector<1x32xf32>
    %c0_111 = arith.constant 0 : index
    %c0_112 = arith.constant 0 : index
    %c0_113 = arith.constant 0 : index
    %258 = vector.load %arg9[%c0_111, %c0_112, %c0_113] : memref<2x1x32xf32, #tpu.memory_space<vmem>>, vector<1x1x32xf32>
    %259 = vector.shape_cast %258 : vector<1x1x32xf32> to vector<1x32xf32>
    %cst_114 = arith.constant dense<0.000000e+00> : vector<16xf32>
    %260 = vector.multi_reduction <add>, %255, %cst_114 [1] : vector<16x32xf32> to vector<16xf32>
    %261 = vector.shape_cast %260 : vector<16xf32> to vector<16x1xf32>
    %cst_115 = arith.constant 3.200000e+01 : f32
    %262 = vector.broadcast %cst_115 : f32 to vector<16x1xf32>
    %263 = arith.divf %261, %262 : vector<16x1xf32>
    %264 = vector.broadcast %263 : vector<16x1xf32> to vector<16x32xf32>
    %265 = arith.subf %255, %264 : vector<16x32xf32>
    %266 = arith.mulf %265, %265 : vector<16x32xf32>
    %cst_116 = arith.constant dense<0.000000e+00> : vector<16xf32>
    %267 = vector.multi_reduction <add>, %266, %cst_116 [1] : vector<16x32xf32> to vector<16xf32>
    %268 = vector.shape_cast %267 : vector<16xf32> to vector<16x1xf32>
    %cst_117 = arith.constant 3.200000e+01 : f32
    %269 = vector.broadcast %cst_117 : f32 to vector<16x1xf32>
    %270 = arith.divf %268, %269 : vector<16x1xf32>
    %271 = vector.broadcast %263 : vector<16x1xf32> to vector<16x32xf32>
    %272 = arith.subf %255, %271 : vector<16x32xf32>
    %cst_118 = arith.constant 9.99999997E-7 : f32
    %273 = vector.broadcast %cst_118 : f32 to vector<16x1xf32>
    %274 = arith.addf %270, %273 : vector<16x1xf32>
    %275 = math.rsqrt %274 : vector<16x1xf32>
    %276 = vector.broadcast %275 : vector<16x1xf32> to vector<16x32xf32>
    %277 = arith.mulf %272, %276 : vector<16x32xf32>
    %278 = vector.broadcast %257 : vector<1x32xf32> to vector<16x32xf32>
    %279 = arith.mulf %277, %278 : vector<16x32xf32>
    %280 = vector.broadcast %259 : vector<1x32xf32> to vector<16x32xf32>
    %281 = arith.addf %279, %280 : vector<16x32xf32>
    %c0_119 = arith.constant 0 : index
    %c0_120 = arith.constant 0 : index
    %c0_121 = arith.constant 0 : index
    %282 = vector.load %arg10[%c0_119, %c0_120, %c0_121] : memref<2x32x64xf32, #tpu.memory_space<vmem>>, vector<1x32x64xf32>
    %283 = vector.shape_cast %282 : vector<1x32x64xf32> to vector<32x64xf32>
    %cst_122 = arith.constant dense<0.000000e+00> : vector<16x64xf32>
    %284 = tpu.matmul %281, %283, %cst_122 {dimension_numbers = #tpu.dot_dimension_numbers<[1], [0], [0], [1], [0, 0, 1, 1], [], []>} : vector<16x32xf32>, vector<32x64xf32>, vector<16x64xf32> -> vector<16x64xf32>
    %c0_123 = arith.constant 0 : index
    %c0_124 = arith.constant 0 : index
    %c0_125 = arith.constant 0 : index
    %285 = vector.load %arg11[%c0_123, %c0_124, %c0_125] : memref<2x1x64xf32, #tpu.memory_space<vmem>>, vector<1x1x64xf32>
    %286 = vector.shape_cast %285 : vector<1x1x64xf32> to vector<1x64xf32>
    %287 = vector.broadcast %286 : vector<1x64xf32> to vector<16x64xf32>
    %288 = arith.addf %284, %287 : vector<16x64xf32>
    %cst_126 = arith.constant 0.000000e+00 : f32
    %289 = vector.broadcast %cst_126 : f32 to vector<16x64xf32>
    %290 = arith.maximumf %288, %289 : vector<16x64xf32>
    %c0_127 = arith.constant 0 : index
    %c0_128 = arith.constant 0 : index
    %c0_129 = arith.constant 0 : index
    %291 = vector.load %arg12[%c0_127, %c0_128, %c0_129] : memref<2x64x32xf32, #tpu.memory_space<vmem>>, vector<1x64x32xf32>
    %292 = vector.shape_cast %291 : vector<1x64x32xf32> to vector<64x32xf32>
    %cst_130 = arith.constant dense<0.000000e+00> : vector<16x32xf32>
    %293 = tpu.matmul %290, %292, %cst_130 {dimension_numbers = #tpu.dot_dimension_numbers<[1], [0], [0], [1], [0, 0, 1, 1], [], []>} : vector<16x64xf32>, vector<64x32xf32>, vector<16x32xf32> -> vector<16x32xf32>
    %c0_131 = arith.constant 0 : index
    %c0_132 = arith.constant 0 : index
    %c0_133 = arith.constant 0 : index
    %294 = vector.load %arg13[%c0_131, %c0_132, %c0_133] : memref<2x1x32xf32, #tpu.memory_space<vmem>>, vector<1x1x32xf32>
    %295 = vector.shape_cast %294 : vector<1x1x32xf32> to vector<1x32xf32>
    %296 = vector.broadcast %295 : vector<1x32xf32> to vector<16x32xf32>
    %297 = arith.addf %293, %296 : vector<16x32xf32>
    %298 = arith.addf %297, %281 : vector<16x32xf32>
    %c0_134 = arith.constant 0 : index
    %c0_135 = arith.constant 0 : index
    %c0_136 = arith.constant 0 : index
    %299 = vector.load %arg14[%c0_134, %c0_135, %c0_136] : memref<2x1x32xf32, #tpu.memory_space<vmem>>, vector<1x1x32xf32>
    %300 = vector.shape_cast %299 : vector<1x1x32xf32> to vector<1x32xf32>
    %c0_137 = arith.constant 0 : index
    %c0_138 = arith.constant 0 : index
    %c0_139 = arith.constant 0 : index
    %301 = vector.load %arg15[%c0_137, %c0_138, %c0_139] : memref<2x1x32xf32, #tpu.memory_space<vmem>>, vector<1x1x32xf32>
    %302 = vector.shape_cast %301 : vector<1x1x32xf32> to vector<1x32xf32>
    %cst_140 = arith.constant dense<0.000000e+00> : vector<16xf32>
    %303 = vector.multi_reduction <add>, %298, %cst_140 [1] : vector<16x32xf32> to vector<16xf32>
    %304 = vector.shape_cast %303 : vector<16xf32> to vector<16x1xf32>
    %cst_141 = arith.constant 3.200000e+01 : f32
    %305 = vector.broadcast %cst_141 : f32 to vector<16x1xf32>
    %306 = arith.divf %304, %305 : vector<16x1xf32>
    %307 = vector.broadcast %306 : vector<16x1xf32> to vector<16x32xf32>
    %308 = arith.subf %298, %307 : vector<16x32xf32>
    %309 = arith.mulf %308, %308 : vector<16x32xf32>
    %cst_142 = arith.constant dense<0.000000e+00> : vector<16xf32>
    %310 = vector.multi_reduction <add>, %309, %cst_142 [1] : vector<16x32xf32> to vector<16xf32>
    %311 = vector.shape_cast %310 : vector<16xf32> to vector<16x1xf32>
    %cst_143 = arith.constant 3.200000e+01 : f32
    %312 = vector.broadcast %cst_143 : f32 to vector<16x1xf32>
    %313 = arith.divf %311, %312 : vector<16x1xf32>
    %314 = vector.broadcast %306 : vector<16x1xf32> to vector<16x32xf32>
    %315 = arith.subf %298, %314 : vector<16x32xf32>
    %cst_144 = arith.constant 9.99999997E-7 : f32
    %316 = vector.broadcast %cst_144 : f32 to vector<16x1xf32>
    %317 = arith.addf %313, %316 : vector<16x1xf32>
    %318 = math.rsqrt %317 : vector<16x1xf32>
    %319 = vector.broadcast %318 : vector<16x1xf32> to vector<16x32xf32>
    %320 = arith.mulf %315, %319 : vector<16x32xf32>
    %321 = vector.broadcast %300 : vector<1x32xf32> to vector<16x32xf32>
    %322 = arith.mulf %320, %321 : vector<16x32xf32>
    %323 = vector.broadcast %302 : vector<1x32xf32> to vector<16x32xf32>
    %324 = arith.addf %322, %323 : vector<16x32xf32>
    %c1_145 = arith.constant 1 : index
    %c0_146 = arith.constant 0 : index
    %c0_147 = arith.constant 0 : index
    %325 = vector.load %arg3[%c1_145, %c0_146, %c0_147] : memref<2x32x96xf32, #tpu.memory_space<vmem>>, vector<1x32x96xf32>
    %326 = vector.shape_cast %325 : vector<1x32x96xf32> to vector<32x96xf32>
    %cst_148 = arith.constant dense<0.000000e+00> : vector<16x96xf32>
    %327 = tpu.matmul %324, %326, %cst_148 {dimension_numbers = #tpu.dot_dimension_numbers<[1], [0], [0], [1], [0, 0, 1, 1], [], []>} : vector<16x32xf32>, vector<32x96xf32>, vector<16x96xf32> -> vector<16x96xf32>
    %c1_149 = arith.constant 1 : index
    %c0_150 = arith.constant 0 : index
    %c0_151 = arith.constant 0 : index
    %328 = vector.load %arg4[%c1_149, %c0_150, %c0_151] : memref<2x1x96xf32, #tpu.memory_space<vmem>>, vector<1x1x96xf32>
    %329 = vector.shape_cast %328 : vector<1x1x96xf32> to vector<1x96xf32>
    %330 = vector.broadcast %329 : vector<1x96xf32> to vector<16x96xf32>
    %331 = arith.addf %327, %330 : vector<16x96xf32>
    %332 = vector.extract_strided_slice %331 {offsets = [0, 0], sizes = [16, 32], strides = [1, 1]} : vector<16x96xf32> to vector<16x32xf32>
    %333 = vector.extract_strided_slice %331 {offsets = [0, 32], sizes = [16, 32], strides = [1, 1]} : vector<16x96xf32> to vector<16x32xf32>
    %334 = vector.extract_strided_slice %331 {offsets = [0, 64], sizes = [16, 32], strides = [1, 1]} : vector<16x96xf32> to vector<16x32xf32>
    %c1_152 = arith.constant 1 : index
    %c0_153 = arith.constant 0 : index
    %c0_154 = arith.constant 0 : index
    %335 = vector.load %arg5[%c1_152, %c0_153, %c0_154] : memref<2x32x32xf32, #tpu.memory_space<vmem>>, vector<1x32x32xf32>
    %336 = vector.shape_cast %335 : vector<1x32x32xf32> to vector<32x32xf32>
    %337 = vector.extract_strided_slice %332 {offsets = [0, 0], sizes = [8, 8], strides = [1, 1]} : vector<16x32xf32> to vector<8x8xf32>
    %338 = vector.extract_strided_slice %333 {offsets = [0, 0], sizes = [8, 8], strides = [1, 1]} : vector<16x32xf32> to vector<8x8xf32>
    %339 = vector.extract_strided_slice %334 {offsets = [0, 0], sizes = [8, 8], strides = [1, 1]} : vector<16x32xf32> to vector<8x8xf32>
    %c4 = arith.constant 4 : index
    %c0_155 = arith.constant 0 : index
    %c0_156 = arith.constant 0 : index
    %c0_157 = arith.constant 0 : index
    %340 = vector.load %arg7[%c4, %c0_155, %c0_156, %c0_157] : memref<8x8x8x8xf32, #tpu.memory_space<vmem>>, vector<1x8x8x8xf32>
    %341 = vector.shape_cast %340 : vector<1x8x8x8xf32> to vector<8x8x8xf32>
    %342 = vector.shape_cast %337 : vector<8x8xf32> to vector<1x8x8xf32>
    %343 = vector.broadcast %342 : vector<1x8x8xf32> to vector<8x8x8xf32>
    %344 = arith.mulf %343, %341 : vector<8x8x8xf32>
    %cst_158 = arith.constant dense<0.000000e+00> : vector<8x8xf32>
    %345 = vector.multi_reduction <add>, %344, %cst_158 [2] : vector<8x8x8xf32> to vector<8x8xf32>
    %346 = tpu.transpose %345, [1, 0] : vector<8x8xf32> -> vector<8x8xf32>
    %347 = tpu.transpose %338, [1, 0] : vector<8x8xf32> -> vector<8x8xf32>
    %cst_159 = arith.constant dense<0.000000e+00> : vector<8x8xf32>
    %348 = tpu.matmul %337, %347, %cst_159 {dimension_numbers = #tpu.dot_dimension_numbers<[1], [0], [0], [1], [0, 0, 1, 1], [], []>} : vector<8x8xf32>, vector<8x8xf32>, vector<8x8xf32> -> vector<8x8xf32>
    %349 = arith.addf %348, %346 : vector<8x8xf32>
    %cst_160 = arith.constant 0.353553385 : f32
    %350 = vector.broadcast %cst_160 : f32 to vector<8x8xf32>
    %351 = arith.mulf %349, %350 : vector<8x8xf32>
    %352 = arith.addf %351, %5 : vector<8x8xf32>
    %cst_161 = arith.constant dense<0xFF800000> : vector<8xf32>
    %353 = vector.multi_reduction <maximumf>, %352, %cst_161 [1] : vector<8x8xf32> to vector<8xf32>
    %354 = vector.shape_cast %353 : vector<8xf32> to vector<8x1xf32>
    %355 = vector.broadcast %354 : vector<8x1xf32> to vector<8x8xf32>
    %356 = arith.subf %352, %355 : vector<8x8xf32>
    %357 = math.exp %356 : vector<8x8xf32>
    %cst_162 = arith.constant dense<0.000000e+00> : vector<8xf32>
    %358 = vector.multi_reduction <add>, %357, %cst_162 [1] : vector<8x8xf32> to vector<8xf32>
    %359 = vector.shape_cast %358 : vector<8xf32> to vector<8x1xf32>
    %360 = vector.broadcast %359 : vector<8x1xf32> to vector<8x8xf32>
    %361 = arith.divf %357, %360 : vector<8x8xf32>
    %cst_163 = arith.constant dense<0.000000e+00> : vector<8x8xf32>
    %362 = tpu.matmul %361, %339, %cst_163 {dimension_numbers = #tpu.dot_dimension_numbers<[1], [0], [0], [1], [0, 0, 1, 1], [], []>} : vector<8x8xf32>, vector<8x8xf32>, vector<8x8xf32> -> vector<8x8xf32>
    %363 = vector.extract_strided_slice %336 {offsets = [0, 0], sizes = [8, 32], strides = [1, 1]} : vector<32x32xf32> to vector<8x32xf32>
    %cst_164 = arith.constant dense<0.000000e+00> : vector<8x32xf32>
    %364 = tpu.matmul %362, %363, %cst_164 {dimension_numbers = #tpu.dot_dimension_numbers<[1], [0], [0], [1], [0, 0, 1, 1], [], []>} : vector<8x8xf32>, vector<8x32xf32>, vector<8x32xf32> -> vector<8x32xf32>
    %365 = vector.extract_strided_slice %332 {offsets = [0, 8], sizes = [8, 8], strides = [1, 1]} : vector<16x32xf32> to vector<8x8xf32>
    %366 = vector.extract_strided_slice %333 {offsets = [0, 8], sizes = [8, 8], strides = [1, 1]} : vector<16x32xf32> to vector<8x8xf32>
    %367 = vector.extract_strided_slice %334 {offsets = [0, 8], sizes = [8, 8], strides = [1, 1]} : vector<16x32xf32> to vector<8x8xf32>
    %c5 = arith.constant 5 : index
    %c0_165 = arith.constant 0 : index
    %c0_166 = arith.constant 0 : index
    %c0_167 = arith.constant 0 : index
    %368 = vector.load %arg7[%c5, %c0_165, %c0_166, %c0_167] : memref<8x8x8x8xf32, #tpu.memory_space<vmem>>, vector<1x8x8x8xf32>
    %369 = vector.shape_cast %368 : vector<1x8x8x8xf32> to vector<8x8x8xf32>
    %370 = vector.shape_cast %365 : vector<8x8xf32> to vector<1x8x8xf32>
    %371 = vector.broadcast %370 : vector<1x8x8xf32> to vector<8x8x8xf32>
    %372 = arith.mulf %371, %369 : vector<8x8x8xf32>
    %cst_168 = arith.constant dense<0.000000e+00> : vector<8x8xf32>
    %373 = vector.multi_reduction <add>, %372, %cst_168 [2] : vector<8x8x8xf32> to vector<8x8xf32>
    %374 = tpu.transpose %373, [1, 0] : vector<8x8xf32> -> vector<8x8xf32>
    %375 = tpu.transpose %366, [1, 0] : vector<8x8xf32> -> vector<8x8xf32>
    %cst_169 = arith.constant dense<0.000000e+00> : vector<8x8xf32>
    %376 = tpu.matmul %365, %375, %cst_169 {dimension_numbers = #tpu.dot_dimension_numbers<[1], [0], [0], [1], [0, 0, 1, 1], [], []>} : vector<8x8xf32>, vector<8x8xf32>, vector<8x8xf32> -> vector<8x8xf32>
    %377 = arith.addf %376, %374 : vector<8x8xf32>
    %cst_170 = arith.constant 0.353553385 : f32
    %378 = vector.broadcast %cst_170 : f32 to vector<8x8xf32>
    %379 = arith.mulf %377, %378 : vector<8x8xf32>
    %380 = arith.addf %379, %5 : vector<8x8xf32>
    %cst_171 = arith.constant dense<0xFF800000> : vector<8xf32>
    %381 = vector.multi_reduction <maximumf>, %380, %cst_171 [1] : vector<8x8xf32> to vector<8xf32>
    %382 = vector.shape_cast %381 : vector<8xf32> to vector<8x1xf32>
    %383 = vector.broadcast %382 : vector<8x1xf32> to vector<8x8xf32>
    %384 = arith.subf %380, %383 : vector<8x8xf32>
    %385 = math.exp %384 : vector<8x8xf32>
    %cst_172 = arith.constant dense<0.000000e+00> : vector<8xf32>
    %386 = vector.multi_reduction <add>, %385, %cst_172 [1] : vector<8x8xf32> to vector<8xf32>
    %387 = vector.shape_cast %386 : vector<8xf32> to vector<8x1xf32>
    %388 = vector.broadcast %387 : vector<8x1xf32> to vector<8x8xf32>
    %389 = arith.divf %385, %388 : vector<8x8xf32>
    %cst_173 = arith.constant dense<0.000000e+00> : vector<8x8xf32>
    %390 = tpu.matmul %389, %367, %cst_173 {dimension_numbers = #tpu.dot_dimension_numbers<[1], [0], [0], [1], [0, 0, 1, 1], [], []>} : vector<8x8xf32>, vector<8x8xf32>, vector<8x8xf32> -> vector<8x8xf32>
    %391 = vector.extract_strided_slice %336 {offsets = [8, 0], sizes = [8, 32], strides = [1, 1]} : vector<32x32xf32> to vector<8x32xf32>
    %cst_174 = arith.constant dense<0.000000e+00> : vector<8x32xf32>
    %392 = tpu.matmul %390, %391, %cst_174 {dimension_numbers = #tpu.dot_dimension_numbers<[1], [0], [0], [1], [0, 0, 1, 1], [], []>} : vector<8x8xf32>, vector<8x32xf32>, vector<8x32xf32> -> vector<8x32xf32>
    %393 = arith.addf %364, %392 : vector<8x32xf32>
    %394 = vector.extract_strided_slice %332 {offsets = [0, 16], sizes = [8, 8], strides = [1, 1]} : vector<16x32xf32> to vector<8x8xf32>
    %395 = vector.extract_strided_slice %333 {offsets = [0, 16], sizes = [8, 8], strides = [1, 1]} : vector<16x32xf32> to vector<8x8xf32>
    %396 = vector.extract_strided_slice %334 {offsets = [0, 16], sizes = [8, 8], strides = [1, 1]} : vector<16x32xf32> to vector<8x8xf32>
    %c6 = arith.constant 6 : index
    %c0_175 = arith.constant 0 : index
    %c0_176 = arith.constant 0 : index
    %c0_177 = arith.constant 0 : index
    %397 = vector.load %arg7[%c6, %c0_175, %c0_176, %c0_177] : memref<8x8x8x8xf32, #tpu.memory_space<vmem>>, vector<1x8x8x8xf32>
    %398 = vector.shape_cast %397 : vector<1x8x8x8xf32> to vector<8x8x8xf32>
    %399 = vector.shape_cast %394 : vector<8x8xf32> to vector<1x8x8xf32>
    %400 = vector.broadcast %399 : vector<1x8x8xf32> to vector<8x8x8xf32>
    %401 = arith.mulf %400, %398 : vector<8x8x8xf32>
    %cst_178 = arith.constant dense<0.000000e+00> : vector<8x8xf32>
    %402 = vector.multi_reduction <add>, %401, %cst_178 [2] : vector<8x8x8xf32> to vector<8x8xf32>
    %403 = tpu.transpose %402, [1, 0] : vector<8x8xf32> -> vector<8x8xf32>
    %404 = tpu.transpose %395, [1, 0] : vector<8x8xf32> -> vector<8x8xf32>
    %cst_179 = arith.constant dense<0.000000e+00> : vector<8x8xf32>
    %405 = tpu.matmul %394, %404, %cst_179 {dimension_numbers = #tpu.dot_dimension_numbers<[1], [0], [0], [1], [0, 0, 1, 1], [], []>} : vector<8x8xf32>, vector<8x8xf32>, vector<8x8xf32> -> vector<8x8xf32>
    %406 = arith.addf %405, %403 : vector<8x8xf32>
    %cst_180 = arith.constant 0.353553385 : f32
    %407 = vector.broadcast %cst_180 : f32 to vector<8x8xf32>
    %408 = arith.mulf %406, %407 : vector<8x8xf32>
    %409 = arith.addf %408, %5 : vector<8x8xf32>
    %cst_181 = arith.constant dense<0xFF800000> : vector<8xf32>
    %410 = vector.multi_reduction <maximumf>, %409, %cst_181 [1] : vector<8x8xf32> to vector<8xf32>
    %411 = vector.shape_cast %410 : vector<8xf32> to vector<8x1xf32>
    %412 = vector.broadcast %411 : vector<8x1xf32> to vector<8x8xf32>
    %413 = arith.subf %409, %412 : vector<8x8xf32>
    %414 = math.exp %413 : vector<8x8xf32>
    %cst_182 = arith.constant dense<0.000000e+00> : vector<8xf32>
    %415 = vector.multi_reduction <add>, %414, %cst_182 [1] : vector<8x8xf32> to vector<8xf32>
    %416 = vector.shape_cast %415 : vector<8xf32> to vector<8x1xf32>
    %417 = vector.broadcast %416 : vector<8x1xf32> to vector<8x8xf32>
    %418 = arith.divf %414, %417 : vector<8x8xf32>
    %cst_183 = arith.constant dense<0.000000e+00> : vector<8x8xf32>
    %419 = tpu.matmul %418, %396, %cst_183 {dimension_numbers = #tpu.dot_dimension_numbers<[1], [0], [0], [1], [0, 0, 1, 1], [], []>} : vector<8x8xf32>, vector<8x8xf32>, vector<8x8xf32> -> vector<8x8xf32>
    %420 = vector.extract_strided_slice %336 {offsets = [16, 0], sizes = [8, 32], strides = [1, 1]} : vector<32x32xf32> to vector<8x32xf32>
    %cst_184 = arith.constant dense<0.000000e+00> : vector<8x32xf32>
    %421 = tpu.matmul %419, %420, %cst_184 {dimension_numbers = #tpu.dot_dimension_numbers<[1], [0], [0], [1], [0, 0, 1, 1], [], []>} : vector<8x8xf32>, vector<8x32xf32>, vector<8x32xf32> -> vector<8x32xf32>
    %422 = arith.addf %393, %421 : vector<8x32xf32>
    %423 = vector.extract_strided_slice %332 {offsets = [0, 24], sizes = [8, 8], strides = [1, 1]} : vector<16x32xf32> to vector<8x8xf32>
    %424 = vector.extract_strided_slice %333 {offsets = [0, 24], sizes = [8, 8], strides = [1, 1]} : vector<16x32xf32> to vector<8x8xf32>
    %425 = vector.extract_strided_slice %334 {offsets = [0, 24], sizes = [8, 8], strides = [1, 1]} : vector<16x32xf32> to vector<8x8xf32>
    %c7 = arith.constant 7 : index
    %c0_185 = arith.constant 0 : index
    %c0_186 = arith.constant 0 : index
    %c0_187 = arith.constant 0 : index
    %426 = vector.load %arg7[%c7, %c0_185, %c0_186, %c0_187] : memref<8x8x8x8xf32, #tpu.memory_space<vmem>>, vector<1x8x8x8xf32>
    %427 = vector.shape_cast %426 : vector<1x8x8x8xf32> to vector<8x8x8xf32>
    %428 = vector.shape_cast %423 : vector<8x8xf32> to vector<1x8x8xf32>
    %429 = vector.broadcast %428 : vector<1x8x8xf32> to vector<8x8x8xf32>
    %430 = arith.mulf %429, %427 : vector<8x8x8xf32>
    %cst_188 = arith.constant dense<0.000000e+00> : vector<8x8xf32>
    %431 = vector.multi_reduction <add>, %430, %cst_188 [2] : vector<8x8x8xf32> to vector<8x8xf32>
    %432 = tpu.transpose %431, [1, 0] : vector<8x8xf32> -> vector<8x8xf32>
    %433 = tpu.transpose %424, [1, 0] : vector<8x8xf32> -> vector<8x8xf32>
    %cst_189 = arith.constant dense<0.000000e+00> : vector<8x8xf32>
    %434 = tpu.matmul %423, %433, %cst_189 {dimension_numbers = #tpu.dot_dimension_numbers<[1], [0], [0], [1], [0, 0, 1, 1], [], []>} : vector<8x8xf32>, vector<8x8xf32>, vector<8x8xf32> -> vector<8x8xf32>
    %435 = arith.addf %434, %432 : vector<8x8xf32>
    %cst_190 = arith.constant 0.353553385 : f32
    %436 = vector.broadcast %cst_190 : f32 to vector<8x8xf32>
    %437 = arith.mulf %435, %436 : vector<8x8xf32>
    %438 = arith.addf %437, %5 : vector<8x8xf32>
    %cst_191 = arith.constant dense<0xFF800000> : vector<8xf32>
    %439 = vector.multi_reduction <maximumf>, %438, %cst_191 [1] : vector<8x8xf32> to vector<8xf32>
    %440 = vector.shape_cast %439 : vector<8xf32> to vector<8x1xf32>
    %441 = vector.broadcast %440 : vector<8x1xf32> to vector<8x8xf32>
    %442 = arith.subf %438, %441 : vector<8x8xf32>
    %443 = math.exp %442 : vector<8x8xf32>
    %cst_192 = arith.constant dense<0.000000e+00> : vector<8xf32>
    %444 = vector.multi_reduction <add>, %443, %cst_192 [1] : vector<8x8xf32> to vector<8xf32>
    %445 = vector.shape_cast %444 : vector<8xf32> to vector<8x1xf32>
    %446 = vector.broadcast %445 : vector<8x1xf32> to vector<8x8xf32>
    %447 = arith.divf %443, %446 : vector<8x8xf32>
    %cst_193 = arith.constant dense<0.000000e+00> : vector<8x8xf32>
    %448 = tpu.matmul %447, %425, %cst_193 {dimension_numbers = #tpu.dot_dimension_numbers<[1], [0], [0], [1], [0, 0, 1, 1], [], []>} : vector<8x8xf32>, vector<8x8xf32>, vector<8x8xf32> -> vector<8x8xf32>
    %449 = vector.extract_strided_slice %336 {offsets = [24, 0], sizes = [8, 32], strides = [1, 1]} : vector<32x32xf32> to vector<8x32xf32>
    %cst_194 = arith.constant dense<0.000000e+00> : vector<8x32xf32>
    %450 = tpu.matmul %448, %449, %cst_194 {dimension_numbers = #tpu.dot_dimension_numbers<[1], [0], [0], [1], [0, 0, 1, 1], [], []>} : vector<8x8xf32>, vector<8x32xf32>, vector<8x32xf32> -> vector<8x32xf32>
    %451 = arith.addf %422, %450 : vector<8x32xf32>
    %c0_195 = arith.constant 0 : index
    %c0_196 = arith.constant 0 : index
    %452 = vector.load %arg21[%c0_195, %c0_196] : memref<16x32xf32, #tpu.memory_space<vmem>>, vector<8x32xf32>
    tpu.vector_store %arg21[%c0_195, %c0_196], %451 {strides = array<i32>} : memref<16x32xf32, #tpu.memory_space<vmem>>, vector<8x32xf32>,
    %453 = vector.extract_strided_slice %332 {offsets = [8, 0], sizes = [8, 8], strides = [1, 1]} : vector<16x32xf32> to vector<8x8xf32>
    %454 = vector.extract_strided_slice %333 {offsets = [8, 0], sizes = [8, 8], strides = [1, 1]} : vector<16x32xf32> to vector<8x8xf32>
    %455 = vector.extract_strided_slice %334 {offsets = [8, 0], sizes = [8, 8], strides = [1, 1]} : vector<16x32xf32> to vector<8x8xf32>
    %c4_197 = arith.constant 4 : index
    %c0_198 = arith.constant 0 : index
    %c0_199 = arith.constant 0 : index
    %c0_200 = arith.constant 0 : index
    %456 = vector.load %arg7[%c4_197, %c0_198, %c0_199, %c0_200] : memref<8x8x8x8xf32, #tpu.memory_space<vmem>>, vector<1x8x8x8xf32>
    %457 = vector.shape_cast %456 : vector<1x8x8x8xf32> to vector<8x8x8xf32>
    %458 = vector.shape_cast %453 : vector<8x8xf32> to vector<1x8x8xf32>
    %459 = vector.broadcast %458 : vector<1x8x8xf32> to vector<8x8x8xf32>
    %460 = arith.mulf %459, %457 : vector<8x8x8xf32>
    %cst_201 = arith.constant dense<0.000000e+00> : vector<8x8xf32>
    %461 = vector.multi_reduction <add>, %460, %cst_201 [2] : vector<8x8x8xf32> to vector<8x8xf32>
    %462 = tpu.transpose %461, [1, 0] : vector<8x8xf32> -> vector<8x8xf32>
    %463 = tpu.transpose %454, [1, 0] : vector<8x8xf32> -> vector<8x8xf32>
    %cst_202 = arith.constant dense<0.000000e+00> : vector<8x8xf32>
    %464 = tpu.matmul %453, %463, %cst_202 {dimension_numbers = #tpu.dot_dimension_numbers<[1], [0], [0], [1], [0, 0, 1, 1], [], []>} : vector<8x8xf32>, vector<8x8xf32>, vector<8x8xf32> -> vector<8x8xf32>
    %465 = arith.addf %464, %462 : vector<8x8xf32>
    %cst_203 = arith.constant 0.353553385 : f32
    %466 = vector.broadcast %cst_203 : f32 to vector<8x8xf32>
    %467 = arith.mulf %465, %466 : vector<8x8xf32>
    %468 = arith.addf %467, %5 : vector<8x8xf32>
    %cst_204 = arith.constant dense<0xFF800000> : vector<8xf32>
    %469 = vector.multi_reduction <maximumf>, %468, %cst_204 [1] : vector<8x8xf32> to vector<8xf32>
    %470 = vector.shape_cast %469 : vector<8xf32> to vector<8x1xf32>
    %471 = vector.broadcast %470 : vector<8x1xf32> to vector<8x8xf32>
    %472 = arith.subf %468, %471 : vector<8x8xf32>
    %473 = math.exp %472 : vector<8x8xf32>
    %cst_205 = arith.constant dense<0.000000e+00> : vector<8xf32>
    %474 = vector.multi_reduction <add>, %473, %cst_205 [1] : vector<8x8xf32> to vector<8xf32>
    %475 = vector.shape_cast %474 : vector<8xf32> to vector<8x1xf32>
    %476 = vector.broadcast %475 : vector<8x1xf32> to vector<8x8xf32>
    %477 = arith.divf %473, %476 : vector<8x8xf32>
    %cst_206 = arith.constant dense<0.000000e+00> : vector<8x8xf32>
    %478 = tpu.matmul %477, %455, %cst_206 {dimension_numbers = #tpu.dot_dimension_numbers<[1], [0], [0], [1], [0, 0, 1, 1], [], []>} : vector<8x8xf32>, vector<8x8xf32>, vector<8x8xf32> -> vector<8x8xf32>
    %479 = vector.extract_strided_slice %336 {offsets = [0, 0], sizes = [8, 32], strides = [1, 1]} : vector<32x32xf32> to vector<8x32xf32>
    %cst_207 = arith.constant dense<0.000000e+00> : vector<8x32xf32>
    %480 = tpu.matmul %478, %479, %cst_207 {dimension_numbers = #tpu.dot_dimension_numbers<[1], [0], [0], [1], [0, 0, 1, 1], [], []>} : vector<8x8xf32>, vector<8x32xf32>, vector<8x32xf32> -> vector<8x32xf32>
    %481 = vector.extract_strided_slice %332 {offsets = [8, 8], sizes = [8, 8], strides = [1, 1]} : vector<16x32xf32> to vector<8x8xf32>
    %482 = vector.extract_strided_slice %333 {offsets = [8, 8], sizes = [8, 8], strides = [1, 1]} : vector<16x32xf32> to vector<8x8xf32>
    %483 = vector.extract_strided_slice %334 {offsets = [8, 8], sizes = [8, 8], strides = [1, 1]} : vector<16x32xf32> to vector<8x8xf32>
    %c5_208 = arith.constant 5 : index
    %c0_209 = arith.constant 0 : index
    %c0_210 = arith.constant 0 : index
    %c0_211 = arith.constant 0 : index
    %484 = vector.load %arg7[%c5_208, %c0_209, %c0_210, %c0_211] : memref<8x8x8x8xf32, #tpu.memory_space<vmem>>, vector<1x8x8x8xf32>
    %485 = vector.shape_cast %484 : vector<1x8x8x8xf32> to vector<8x8x8xf32>
    %486 = vector.shape_cast %481 : vector<8x8xf32> to vector<1x8x8xf32>
    %487 = vector.broadcast %486 : vector<1x8x8xf32> to vector<8x8x8xf32>
    %488 = arith.mulf %487, %485 : vector<8x8x8xf32>
    %cst_212 = arith.constant dense<0.000000e+00> : vector<8x8xf32>
    %489 = vector.multi_reduction <add>, %488, %cst_212 [2] : vector<8x8x8xf32> to vector<8x8xf32>
    %490 = tpu.transpose %489, [1, 0] : vector<8x8xf32> -> vector<8x8xf32>
    %491 = tpu.transpose %482, [1, 0] : vector<8x8xf32> -> vector<8x8xf32>
    %cst_213 = arith.constant dense<0.000000e+00> : vector<8x8xf32>
    %492 = tpu.matmul %481, %491, %cst_213 {dimension_numbers = #tpu.dot_dimension_numbers<[1], [0], [0], [1], [0, 0, 1, 1], [], []>} : vector<8x8xf32>, vector<8x8xf32>, vector<8x8xf32> -> vector<8x8xf32>
    %493 = arith.addf %492, %490 : vector<8x8xf32>
    %cst_214 = arith.constant 0.353553385 : f32
    %494 = vector.broadcast %cst_214 : f32 to vector<8x8xf32>
    %495 = arith.mulf %493, %494 : vector<8x8xf32>
    %496 = arith.addf %495, %5 : vector<8x8xf32>
    %cst_215 = arith.constant dense<0xFF800000> : vector<8xf32>
    %497 = vector.multi_reduction <maximumf>, %496, %cst_215 [1] : vector<8x8xf32> to vector<8xf32>
    %498 = vector.shape_cast %497 : vector<8xf32> to vector<8x1xf32>
    %499 = vector.broadcast %498 : vector<8x1xf32> to vector<8x8xf32>
    %500 = arith.subf %496, %499 : vector<8x8xf32>
    %501 = math.exp %500 : vector<8x8xf32>
    %cst_216 = arith.constant dense<0.000000e+00> : vector<8xf32>
    %502 = vector.multi_reduction <add>, %501, %cst_216 [1] : vector<8x8xf32> to vector<8xf32>
    %503 = vector.shape_cast %502 : vector<8xf32> to vector<8x1xf32>
    %504 = vector.broadcast %503 : vector<8x1xf32> to vector<8x8xf32>
    %505 = arith.divf %501, %504 : vector<8x8xf32>
    %cst_217 = arith.constant dense<0.000000e+00> : vector<8x8xf32>
    %506 = tpu.matmul %505, %483, %cst_217 {dimension_numbers = #tpu.dot_dimension_numbers<[1], [0], [0], [1], [0, 0, 1, 1], [], []>} : vector<8x8xf32>, vector<8x8xf32>, vector<8x8xf32> -> vector<8x8xf32>
    %507 = vector.extract_strided_slice %336 {offsets = [8, 0], sizes = [8, 32], strides = [1, 1]} : vector<32x32xf32> to vector<8x32xf32>
    %cst_218 = arith.constant dense<0.000000e+00> : vector<8x32xf32>
    %508 = tpu.matmul %506, %507, %cst_218 {dimension_numbers = #tpu.dot_dimension_numbers<[1], [0], [0], [1], [0, 0, 1, 1], [], []>} : vector<8x8xf32>, vector<8x32xf32>, vector<8x32xf32> -> vector<8x32xf32>
    %509 = arith.addf %480, %508 : vector<8x32xf32>
    %510 = vector.extract_strided_slice %332 {offsets = [8, 16], sizes = [8, 8], strides = [1, 1]} : vector<16x32xf32> to vector<8x8xf32>
    %511 = vector.extract_strided_slice %333 {offsets = [8, 16], sizes = [8, 8], strides = [1, 1]} : vector<16x32xf32> to vector<8x8xf32>
    %512 = vector.extract_strided_slice %334 {offsets = [8, 16], sizes = [8, 8], strides = [1, 1]} : vector<16x32xf32> to vector<8x8xf32>
    %c6_219 = arith.constant 6 : index
    %c0_220 = arith.constant 0 : index
    %c0_221 = arith.constant 0 : index
    %c0_222 = arith.constant 0 : index
    %513 = vector.load %arg7[%c6_219, %c0_220, %c0_221, %c0_222] : memref<8x8x8x8xf32, #tpu.memory_space<vmem>>, vector<1x8x8x8xf32>
    %514 = vector.shape_cast %513 : vector<1x8x8x8xf32> to vector<8x8x8xf32>
    %515 = vector.shape_cast %510 : vector<8x8xf32> to vector<1x8x8xf32>
    %516 = vector.broadcast %515 : vector<1x8x8xf32> to vector<8x8x8xf32>
    %517 = arith.mulf %516, %514 : vector<8x8x8xf32>
    %cst_223 = arith.constant dense<0.000000e+00> : vector<8x8xf32>
    %518 = vector.multi_reduction <add>, %517, %cst_223 [2] : vector<8x8x8xf32> to vector<8x8xf32>
    %519 = tpu.transpose %518, [1, 0] : vector<8x8xf32> -> vector<8x8xf32>
    %520 = tpu.transpose %511, [1, 0] : vector<8x8xf32> -> vector<8x8xf32>
    %cst_224 = arith.constant dense<0.000000e+00> : vector<8x8xf32>
    %521 = tpu.matmul %510, %520, %cst_224 {dimension_numbers = #tpu.dot_dimension_numbers<[1], [0], [0], [1], [0, 0, 1, 1], [], []>} : vector<8x8xf32>, vector<8x8xf32>, vector<8x8xf32> -> vector<8x8xf32>
    %522 = arith.addf %521, %519 : vector<8x8xf32>
    %cst_225 = arith.constant 0.353553385 : f32
    %523 = vector.broadcast %cst_225 : f32 to vector<8x8xf32>
    %524 = arith.mulf %522, %523 : vector<8x8xf32>
    %525 = arith.addf %524, %5 : vector<8x8xf32>
    %cst_226 = arith.constant dense<0xFF800000> : vector<8xf32>
    %526 = vector.multi_reduction <maximumf>, %525, %cst_226 [1] : vector<8x8xf32> to vector<8xf32>
    %527 = vector.shape_cast %526 : vector<8xf32> to vector<8x1xf32>
    %528 = vector.broadcast %527 : vector<8x1xf32> to vector<8x8xf32>
    %529 = arith.subf %525, %528 : vector<8x8xf32>
    %530 = math.exp %529 : vector<8x8xf32>
    %cst_227 = arith.constant dense<0.000000e+00> : vector<8xf32>
    %531 = vector.multi_reduction <add>, %530, %cst_227 [1] : vector<8x8xf32> to vector<8xf32>
    %532 = vector.shape_cast %531 : vector<8xf32> to vector<8x1xf32>
    %533 = vector.broadcast %532 : vector<8x1xf32> to vector<8x8xf32>
    %534 = arith.divf %530, %533 : vector<8x8xf32>
    %cst_228 = arith.constant dense<0.000000e+00> : vector<8x8xf32>
    %535 = tpu.matmul %534, %512, %cst_228 {dimension_numbers = #tpu.dot_dimension_numbers<[1], [0], [0], [1], [0, 0, 1, 1], [], []>} : vector<8x8xf32>, vector<8x8xf32>, vector<8x8xf32> -> vector<8x8xf32>
    %536 = vector.extract_strided_slice %336 {offsets = [16, 0], sizes = [8, 32], strides = [1, 1]} : vector<32x32xf32> to vector<8x32xf32>
    %cst_229 = arith.constant dense<0.000000e+00> : vector<8x32xf32>
    %537 = tpu.matmul %535, %536, %cst_229 {dimension_numbers = #tpu.dot_dimension_numbers<[1], [0], [0], [1], [0, 0, 1, 1], [], []>} : vector<8x8xf32>, vector<8x32xf32>, vector<8x32xf32> -> vector<8x32xf32>
    %538 = arith.addf %509, %537 : vector<8x32xf32>
    %539 = vector.extract_strided_slice %332 {offsets = [8, 24], sizes = [8, 8], strides = [1, 1]} : vector<16x32xf32> to vector<8x8xf32>
    %540 = vector.extract_strided_slice %333 {offsets = [8, 24], sizes = [8, 8], strides = [1, 1]} : vector<16x32xf32> to vector<8x8xf32>
    %541 = vector.extract_strided_slice %334 {offsets = [8, 24], sizes = [8, 8], strides = [1, 1]} : vector<16x32xf32> to vector<8x8xf32>
    %c7_230 = arith.constant 7 : index
    %c0_231 = arith.constant 0 : index
    %c0_232 = arith.constant 0 : index
    %c0_233 = arith.constant 0 : index
    %542 = vector.load %arg7[%c7_230, %c0_231, %c0_232, %c0_233] : memref<8x8x8x8xf32, #tpu.memory_space<vmem>>, vector<1x8x8x8xf32>
    %543 = vector.shape_cast %542 : vector<1x8x8x8xf32> to vector<8x8x8xf32>
    %544 = vector.shape_cast %539 : vector<8x8xf32> to vector<1x8x8xf32>
    %545 = vector.broadcast %544 : vector<1x8x8xf32> to vector<8x8x8xf32>
    %546 = arith.mulf %545, %543 : vector<8x8x8xf32>
    %cst_234 = arith.constant dense<0.000000e+00> : vector<8x8xf32>
    %547 = vector.multi_reduction <add>, %546, %cst_234 [2] : vector<8x8x8xf32> to vector<8x8xf32>
    %548 = tpu.transpose %547, [1, 0] : vector<8x8xf32> -> vector<8x8xf32>
    %549 = tpu.transpose %540, [1, 0] : vector<8x8xf32> -> vector<8x8xf32>
    %cst_235 = arith.constant dense<0.000000e+00> : vector<8x8xf32>
    %550 = tpu.matmul %539, %549, %cst_235 {dimension_numbers = #tpu.dot_dimension_numbers<[1], [0], [0], [1], [0, 0, 1, 1], [], []>} : vector<8x8xf32>, vector<8x8xf32>, vector<8x8xf32> -> vector<8x8xf32>
    %551 = arith.addf %550, %548 : vector<8x8xf32>
    %cst_236 = arith.constant 0.353553385 : f32
    %552 = vector.broadcast %cst_236 : f32 to vector<8x8xf32>
    %553 = arith.mulf %551, %552 : vector<8x8xf32>
    %554 = arith.addf %553, %5 : vector<8x8xf32>
    %cst_237 = arith.constant dense<0xFF800000> : vector<8xf32>
    %555 = vector.multi_reduction <maximumf>, %554, %cst_237 [1] : vector<8x8xf32> to vector<8xf32>
    %556 = vector.shape_cast %555 : vector<8xf32> to vector<8x1xf32>
    %557 = vector.broadcast %556 : vector<8x1xf32> to vector<8x8xf32>
    %558 = arith.subf %554, %557 : vector<8x8xf32>
    %559 = math.exp %558 : vector<8x8xf32>
    %cst_238 = arith.constant dense<0.000000e+00> : vector<8xf32>
    %560 = vector.multi_reduction <add>, %559, %cst_238 [1] : vector<8x8xf32> to vector<8xf32>
    %561 = vector.shape_cast %560 : vector<8xf32> to vector<8x1xf32>
    %562 = vector.broadcast %561 : vector<8x1xf32> to vector<8x8xf32>
    %563 = arith.divf %559, %562 : vector<8x8xf32>
    %cst_239 = arith.constant dense<0.000000e+00> : vector<8x8xf32>
    %564 = tpu.matmul %563, %541, %cst_239 {dimension_numbers = #tpu.dot_dimension_numbers<[1], [0], [0], [1], [0, 0, 1, 1], [], []>} : vector<8x8xf32>, vector<8x8xf32>, vector<8x8xf32> -> vector<8x8xf32>
    %565 = vector.extract_strided_slice %336 {offsets = [24, 0], sizes = [8, 32], strides = [1, 1]} : vector<32x32xf32> to vector<8x32xf32>
    %cst_240 = arith.constant dense<0.000000e+00> : vector<8x32xf32>
    %566 = tpu.matmul %564, %565, %cst_240 {dimension_numbers = #tpu.dot_dimension_numbers<[1], [0], [0], [1], [0, 0, 1, 1], [], []>} : vector<8x8xf32>, vector<8x32xf32>, vector<8x32xf32> -> vector<8x32xf32>
    %567 = arith.addf %538, %566 : vector<8x32xf32>
    %c8_241 = arith.constant 8 : index
    %c0_242 = arith.constant 0 : index
    %568 = vector.load %arg21[%c8_241, %c0_242] : memref<16x32xf32, #tpu.memory_space<vmem>>, vector<8x32xf32>
    tpu.vector_store %arg21[%c8_241, %c0_242], %567 {strides = array<i32>} : memref<16x32xf32, #tpu.memory_space<vmem>>, vector<8x32xf32>,
    %c0_243 = arith.constant 0 : index
    %c0_244 = arith.constant 0 : index
    %569 = vector.load %arg21[%c0_243, %c0_244] : memref<16x32xf32, #tpu.memory_space<vmem>>, vector<16x32xf32>
    %c1_245 = arith.constant 1 : index
    %c0_246 = arith.constant 0 : index
    %c0_247 = arith.constant 0 : index
    %570 = vector.load %arg6[%c1_245, %c0_246, %c0_247] : memref<2x1x32xf32, #tpu.memory_space<vmem>>, vector<1x1x32xf32>
    %571 = vector.shape_cast %570 : vector<1x1x32xf32> to vector<1x32xf32>
    %572 = vector.broadcast %571 : vector<1x32xf32> to vector<16x32xf32>
    %573 = arith.addf %569, %572 : vector<16x32xf32>
    %574 = arith.addf %573, %324 : vector<16x32xf32>
    %c1_248 = arith.constant 1 : index
    %c0_249 = arith.constant 0 : index
    %c0_250 = arith.constant 0 : index
    %575 = vector.load %arg8[%c1_248, %c0_249, %c0_250] : memref<2x1x32xf32, #tpu.memory_space<vmem>>, vector<1x1x32xf32>
    %576 = vector.shape_cast %575 : vector<1x1x32xf32> to vector<1x32xf32>
    %c1_251 = arith.constant 1 : index
    %c0_252 = arith.constant 0 : index
    %c0_253 = arith.constant 0 : index
    %577 = vector.load %arg9[%c1_251, %c0_252, %c0_253] : memref<2x1x32xf32, #tpu.memory_space<vmem>>, vector<1x1x32xf32>
    %578 = vector.shape_cast %577 : vector<1x1x32xf32> to vector<1x32xf32>
    %cst_254 = arith.constant dense<0.000000e+00> : vector<16xf32>
    %579 = vector.multi_reduction <add>, %574, %cst_254 [1] : vector<16x32xf32> to vector<16xf32>
    %580 = vector.shape_cast %579 : vector<16xf32> to vector<16x1xf32>
    %cst_255 = arith.constant 3.200000e+01 : f32
    %581 = vector.broadcast %cst_255 : f32 to vector<16x1xf32>
    %582 = arith.divf %580, %581 : vector<16x1xf32>
    %583 = vector.broadcast %582 : vector<16x1xf32> to vector<16x32xf32>
    %584 = arith.subf %574, %583 : vector<16x32xf32>
    %585 = arith.mulf %584, %584 : vector<16x32xf32>
    %cst_256 = arith.constant dense<0.000000e+00> : vector<16xf32>
    %586 = vector.multi_reduction <add>, %585, %cst_256 [1] : vector<16x32xf32> to vector<16xf32>
    %587 = vector.shape_cast %586 : vector<16xf32> to vector<16x1xf32>
    %cst_257 = arith.constant 3.200000e+01 : f32
    %588 = vector.broadcast %cst_257 : f32 to vector<16x1xf32>
    %589 = arith.divf %587, %588 : vector<16x1xf32>
    %590 = vector.broadcast %582 : vector<16x1xf32> to vector<16x32xf32>
    %591 = arith.subf %574, %590 : vector<16x32xf32>
    %cst_258 = arith.constant 9.99999997E-7 : f32
    %592 = vector.broadcast %cst_258 : f32 to vector<16x1xf32>
    %593 = arith.addf %589, %592 : vector<16x1xf32>
    %594 = math.rsqrt %593 : vector<16x1xf32>
    %595 = vector.broadcast %594 : vector<16x1xf32> to vector<16x32xf32>
    %596 = arith.mulf %591, %595 : vector<16x32xf32>
    %597 = vector.broadcast %576 : vector<1x32xf32> to vector<16x32xf32>
    %598 = arith.mulf %596, %597 : vector<16x32xf32>
    %599 = vector.broadcast %578 : vector<1x32xf32> to vector<16x32xf32>
    %600 = arith.addf %598, %599 : vector<16x32xf32>
    %c1_259 = arith.constant 1 : index
    %c0_260 = arith.constant 0 : index
    %c0_261 = arith.constant 0 : index
    %601 = vector.load %arg10[%c1_259, %c0_260, %c0_261] : memref<2x32x64xf32, #tpu.memory_space<vmem>>, vector<1x32x64xf32>
    %602 = vector.shape_cast %601 : vector<1x32x64xf32> to vector<32x64xf32>
    %cst_262 = arith.constant dense<0.000000e+00> : vector<16x64xf32>
    %603 = tpu.matmul %600, %602, %cst_262 {dimension_numbers = #tpu.dot_dimension_numbers<[1], [0], [0], [1], [0, 0, 1, 1], [], []>} : vector<16x32xf32>, vector<32x64xf32>, vector<16x64xf32> -> vector<16x64xf32>
    %c1_263 = arith.constant 1 : index
    %c0_264 = arith.constant 0 : index
    %c0_265 = arith.constant 0 : index
    %604 = vector.load %arg11[%c1_263, %c0_264, %c0_265] : memref<2x1x64xf32, #tpu.memory_space<vmem>>, vector<1x1x64xf32>
    %605 = vector.shape_cast %604 : vector<1x1x64xf32> to vector<1x64xf32>
    %606 = vector.broadcast %605 : vector<1x64xf32> to vector<16x64xf32>
    %607 = arith.addf %603, %606 : vector<16x64xf32>
    %cst_266 = arith.constant 0.000000e+00 : f32
    %608 = vector.broadcast %cst_266 : f32 to vector<16x64xf32>
    %609 = arith.maximumf %607, %608 : vector<16x64xf32>
    %c1_267 = arith.constant 1 : index
    %c0_268 = arith.constant 0 : index
    %c0_269 = arith.constant 0 : index
    %610 = vector.load %arg12[%c1_267, %c0_268, %c0_269] : memref<2x64x32xf32, #tpu.memory_space<vmem>>, vector<1x64x32xf32>
    %611 = vector.shape_cast %610 : vector<1x64x32xf32> to vector<64x32xf32>
    %cst_270 = arith.constant dense<0.000000e+00> : vector<16x32xf32>
    %612 = tpu.matmul %609, %611, %cst_270 {dimension_numbers = #tpu.dot_dimension_numbers<[1], [0], [0], [1], [0, 0, 1, 1], [], []>} : vector<16x64xf32>, vector<64x32xf32>, vector<16x32xf32> -> vector<16x32xf32>
    %c1_271 = arith.constant 1 : index
    %c0_272 = arith.constant 0 : index
    %c0_273 = arith.constant 0 : index
    %613 = vector.load %arg13[%c1_271, %c0_272, %c0_273] : memref<2x1x32xf32, #tpu.memory_space<vmem>>, vector<1x1x32xf32>
    %614 = vector.shape_cast %613 : vector<1x1x32xf32> to vector<1x32xf32>
    %615 = vector.broadcast %614 : vector<1x32xf32> to vector<16x32xf32>
    %616 = arith.addf %612, %615 : vector<16x32xf32>
    %617 = arith.addf %616, %600 : vector<16x32xf32>
    %c1_274 = arith.constant 1 : index
    %c0_275 = arith.constant 0 : index
    %c0_276 = arith.constant 0 : index
    %618 = vector.load %arg14[%c1_274, %c0_275, %c0_276] : memref<2x1x32xf32, #tpu.memory_space<vmem>>, vector<1x1x32xf32>
    %619 = vector.shape_cast %618 : vector<1x1x32xf32> to vector<1x32xf32>
    %c1_277 = arith.constant 1 : index
    %c0_278 = arith.constant 0 : index
    %c0_279 = arith.constant 0 : index
    %620 = vector.load %arg15[%c1_277, %c0_278, %c0_279] : memref<2x1x32xf32, #tpu.memory_space<vmem>>, vector<1x1x32xf32>
    %621 = vector.shape_cast %620 : vector<1x1x32xf32> to vector<1x32xf32>
    %cst_280 = arith.constant dense<0.000000e+00> : vector<16xf32>
    %622 = vector.multi_reduction <add>, %617, %cst_280 [1] : vector<16x32xf32> to vector<16xf32>
    %623 = vector.shape_cast %622 : vector<16xf32> to vector<16x1xf32>
    %cst_281 = arith.constant 3.200000e+01 : f32
    %624 = vector.broadcast %cst_281 : f32 to vector<16x1xf32>
    %625 = arith.divf %623, %624 : vector<16x1xf32>
    %626 = vector.broadcast %625 : vector<16x1xf32> to vector<16x32xf32>
    %627 = arith.subf %617, %626 : vector<16x32xf32>
    %628 = arith.mulf %627, %627 : vector<16x32xf32>
    %cst_282 = arith.constant dense<0.000000e+00> : vector<16xf32>
    %629 = vector.multi_reduction <add>, %628, %cst_282 [1] : vector<16x32xf32> to vector<16xf32>
    %630 = vector.shape_cast %629 : vector<16xf32> to vector<16x1xf32>
    %cst_283 = arith.constant 3.200000e+01 : f32
    %631 = vector.broadcast %cst_283 : f32 to vector<16x1xf32>
    %632 = arith.divf %630, %631 : vector<16x1xf32>
    %633 = vector.broadcast %625 : vector<16x1xf32> to vector<16x32xf32>
    %634 = arith.subf %617, %633 : vector<16x32xf32>
    %cst_284 = arith.constant 9.99999997E-7 : f32
    %635 = vector.broadcast %cst_284 : f32 to vector<16x1xf32>
    %636 = arith.addf %632, %635 : vector<16x1xf32>
    %637 = math.rsqrt %636 : vector<16x1xf32>
    %638 = vector.broadcast %637 : vector<16x1xf32> to vector<16x32xf32>
    %639 = arith.mulf %634, %638 : vector<16x32xf32>
    %640 = vector.broadcast %619 : vector<1x32xf32> to vector<16x32xf32>
    %641 = arith.mulf %639, %640 : vector<16x32xf32>
    %642 = vector.broadcast %621 : vector<1x32xf32> to vector<16x32xf32>
    %643 = arith.addf %641, %642 : vector<16x32xf32>
    %c0_285 = arith.constant 0 : index
    %c0_286 = arith.constant 0 : index
    %644 = vector.load %arg16[%c0_285, %c0_286] : memref<1x32xf32, #tpu.memory_space<vmem>>, vector<1x32xf32>
    %c0_287 = arith.constant 0 : index
    %c0_288 = arith.constant 0 : index
    %645 = vector.load %arg17[%c0_287, %c0_288] : memref<1x32xf32, #tpu.memory_space<vmem>>, vector<1x32xf32>
    %cst_289 = arith.constant dense<0.000000e+00> : vector<16xf32>
    %646 = vector.multi_reduction <add>, %643, %cst_289 [1] : vector<16x32xf32> to vector<16xf32>
    %647 = vector.shape_cast %646 : vector<16xf32> to vector<16x1xf32>
    %cst_290 = arith.constant 3.200000e+01 : f32
    %648 = vector.broadcast %cst_290 : f32 to vector<16x1xf32>
    %649 = arith.divf %647, %648 : vector<16x1xf32>
    %650 = vector.broadcast %649 : vector<16x1xf32> to vector<16x32xf32>
    %651 = arith.subf %643, %650 : vector<16x32xf32>
    %652 = arith.mulf %651, %651 : vector<16x32xf32>
    %cst_291 = arith.constant dense<0.000000e+00> : vector<16xf32>
    %653 = vector.multi_reduction <add>, %652, %cst_291 [1] : vector<16x32xf32> to vector<16xf32>
    %654 = vector.shape_cast %653 : vector<16xf32> to vector<16x1xf32>
    %cst_292 = arith.constant 3.200000e+01 : f32
    %655 = vector.broadcast %cst_292 : f32 to vector<16x1xf32>
    %656 = arith.divf %654, %655 : vector<16x1xf32>
    %657 = vector.broadcast %649 : vector<16x1xf32> to vector<16x32xf32>
    %658 = arith.subf %643, %657 : vector<16x32xf32>
    %cst_293 = arith.constant 9.99999997E-7 : f32
    %659 = vector.broadcast %cst_293 : f32 to vector<16x1xf32>
    %660 = arith.addf %656, %659 : vector<16x1xf32>
    %661 = math.rsqrt %660 : vector<16x1xf32>
    %662 = vector.broadcast %661 : vector<16x1xf32> to vector<16x32xf32>
    %663 = arith.mulf %658, %662 : vector<16x32xf32>
    %664 = vector.broadcast %644 : vector<1x32xf32> to vector<16x32xf32>
    %665 = arith.mulf %663, %664 : vector<16x32xf32>
    %666 = vector.broadcast %645 : vector<1x32xf32> to vector<16x32xf32>
    %667 = arith.addf %665, %666 : vector<16x32xf32>
    %c0_294 = arith.constant 0 : index
    %c0_295 = arith.constant 0 : index
    %668 = vector.load %arg18[%c0_294, %c0_295] : memref<32x128xf32, #tpu.memory_space<vmem>>, vector<32x128xf32>
    %cst_296 = arith.constant dense<0.000000e+00> : vector<16x128xf32>
    %669 = tpu.matmul %667, %668, %cst_296 {dimension_numbers = #tpu.dot_dimension_numbers<[1], [0], [0], [1], [0, 0, 1, 1], [], []>} : vector<16x32xf32>, vector<32x128xf32>, vector<16x128xf32> -> vector<16x128xf32>
    %c0_297 = arith.constant 0 : index
    %c0_298 = arith.constant 0 : index
    %670 = vector.load %arg19[%c0_297, %c0_298] : memref<1x128xf32, #tpu.memory_space<vmem>>, vector<1x128xf32>
    %671 = vector.broadcast %670 : vector<1x128xf32> to vector<16x128xf32>
    %672 = arith.addf %669, %671 : vector<16x128xf32>
    %c0_299 = arith.constant 0 : index
    %c0_300 = arith.constant 0 : index
    %673 = vector.load %arg20[%c0_299, %c0_300] : memref<16x128xf32, #tpu.memory_space<vmem>>, vector<16x128xf32>
    tpu.vector_store %arg20[%c0_299, %c0_300], %672 {strides = array<i32>} : memref<16x128xf32, #tpu.memory_space<vmem>>, vector<16x128xf32>,
    return
  }
}

</mosaic_0001>

<bundles_post_ra>
// kernel: music_transformer_forward.1
= control target key start
LH: loop header
LB: loop body
LE: loop exit
PB: predicated region body
PF: predicated region fallthrough
CT: control target
= control target key end

     0   :  { %vm85_vm0 = vcmask 261120   ;;  %v8381_v12 = vmov 0.0   ;;  %vm8382_vm1 = vmmov 0   ;;  %s10383_s27 = smov 120   ;;  %vm187_vm2 = vcmask 64512   ;;  %s10391_s22 = smov 112   ;;  %s10353_s3 = inlined_call_operand.vmem [shape: f32[2,32,96], index: 3, kind: input, shape index: {}]   ;;  %s10354_s0 = inlined_call_operand.vmem [shape: f32[16,32], index: 0, kind: input, shape index: {}]   ;;  %s10355_s1 = inlined_call_operand.vmem [shape: f32[16,32], index: 1, kind: input, shape index: {}]   ;;  %s10356_s4 = inlined_call_operand.vmem [shape: f32[2,1,96], index: 4, kind: input, shape index: {}]   ;;  %s10357_s7 = inlined_call_operand.vmem [shape: f32[8,8,8,8], index: 7, kind: input, shape index: {}]   ;;  %s10358_s2 = inlined_call_operand.vmem [shape: f32[8,8], index: 2, kind: input, shape index: {}]   ;;  %s10359_s5 = inlined_call_operand.vmem [shape: f32[2,32,32], index: 5, kind: input, shape index: {}]   ;;  %s10360_s6 = inlined_call_operand.vmem [shape: f32[2,1,32], index: 6, kind: input, shape index: {}]   ;;  %s10361_s8 = inlined_call_operand.vmem [shape: f32[2,1,32], index: 8, kind: input, shape index: {}]   ;;  %s10362_s9 = inlined_call_operand.vmem [shape: f32[2,1,32], index: 9, kind: input, shape index: {}]   ;;  %s10363_s10 = inlined_call_operand.vmem [shape: f32[2,32,64], index: 10, kind: input, shape index: {}]   ;;  %s10364_s12 = inlined_call_operand.vmem [shape: f32[2,64,32], index: 12, kind: input, shape index: {}]   ;;  %s10365_s11 = inlined_call_operand.vmem [shape: f32[2,1,64], index: 11, kind: input, shape index: {}]   ;;  %s10366_s13 = inlined_call_operand.vmem [shape: f32[2,1,32], index: 13, kind: input, shape index: {}]   ;;  %s10367_s14 = inlined_call_operand.vmem [shape: f32[2,1,32], index: 14, kind: input, shape index: {}]   ;;  %s10368_s15 = inlined_call_operand.vmem [shape: f32[2,1,32], index: 15, kind: input, shape index: {}]   ;;  %s10369_s18 = inlined_call_operand.vmem [shape: f32[32,128], index: 18, kind: input, shape index: {}]   ;;  %s10370_s16 = inlined_call_operand.vmem [shape: f32[1,32], index: 16, kind: input, shape index: {}]   ;;  %s10371_s17 = inlined_call_operand.vmem [shape: f32[1,32], index: 17, kind: input, shape index: {}]   ;;  %s10372_s19 = inlined_call_operand.vmem [shape: f32[1,128], index: 19, kind: input, shape index: {}]   ;;  %s10373_s20 = inlined_call_operand.vmem [shape: f32[16,128], index: 20, kind: output, shape index: {}]  }
   0x1   :  { %10409 = sst [smem:[#allocation3_spill]] %s10353_s3  ;;  %7956 = vmatprep.subr.mxu1 %v8381_v12  ;;  %7958 = vmatprep.mubr.msk.f32.mxu1 %vm8382_vm1, %v8381_v12  ;;  %s10395_s3 = smov 8   ;;  %vm254_vm3 = vcmask 1041409   ;;  %vm256_vm4 = vcmask 1042434   ;;  %vm258_vm5 = vcmask 1043459   ;;  %vm260_vm6 = vcmask 1044484  }
   0x2   :  { %10410 = sst [smem:[#allocation4_spill]] %s10354_s0  ;;  %vm262_vm7 = vcmask 1045509   ;;  %vm264_vm8 = vcmask 1046534   ;;  %vm266_vm9 = vcmask 1047559   ;;  %s10379_s0 = smov 64   ;;  %vm3619_vm10 = vcmask 523264  }
   0x3   :  { %10411 = sst [smem:[#allocation5_spill]] %s10355_s1  ;;  %s10389_s25 = smov 16  }
   0x4   :  { %10412 = sst [smem:[#allocation6_spill]] %s10356_s4  ;;  %s10393_s4 = smov 80  }
   0x5   :  { %10413 = sst [smem:[#allocation7_spill]] %s10357_s7  ;;  %s10385_s24 = smov 72  }
   0x6   :  { %10414 = sst [smem:[#allocation8_spill]] %s10369_s18  ;;  %s10403_s1 = smov 104  }
   0x7   :  { %10415 = sst [smem:[#allocation9_spill]] %s10370_s16  ;;  %s10427_s7 = smov 16  }
   0x8   :  { %10416 = sst [smem:[#allocation10_spill]] %s10371_s17  ;;  %s10428_s29 = smov 56  }
   0x9   :  { %10417 = sst [smem:[#allocation11_spill]] %s10372_s19  ;;  %s10434_s19 = smov 80  }
   0xa   :  { %10418 = sst [smem:[#allocation12_spill]] %s10373_s20  ;;  %s10435_s20 = smov 24  }
   0xb   :  { %s10419_s23 = sld [smem:[#allocation3_spill]]  ;;  %s10437_s17 = smov 40  }
   0xc   :  { %s10420_s28 = sld [smem:[#allocation4_spill]] }
   0xd   :  { %s10421_s21 = sld [smem:[#allocation5_spill]] }
   0xe   :  { %s10422_s26 = sld [smem:[#allocation6_spill]] }
   0xf   :  { %s10423_s30 = sld [smem:[#allocation7_spill]] }
  0x11   :  { %v77_v0 = vld [vmem:[%s10419_s23 + $0x18] sm:$0xff]  ;;  %v76_v1 = vld [vmem:[%s10419_s23 + $0x10] sm:$0xff]  ;;  %v75_v2 = vld [vmem:[%s10419_s23 + $0x8] sm:$0xff] }
  0x12   :  { %7945 = vmatprep.subr.mxu0 %v77_v0  ;;  %v65_v3 = vld [vmem:[%s10420_s28] sm:$0xff]  ;;  %v66_v4 = vld [vmem:[%s10420_s28 + $0x8] sm:$0xff]  ;;  %s10397_s28 = smov 96  }
  0x13   :  { %7946 = vmatpush3.msra.mxu0 %v77_v0  ;;  %v67_v5 = vmul.f32 5.656854, %v65_v3  ;;  %v68_v6 = vmul.f32 5.656854, %v66_v4  ;;  %v69_v7 = vld [vmem:[%s10421_s21] sm:$0xff]  ;;  %v70_v8 = vld [vmem:[%s10421_s21 + $0x8] sm:$0xff] }
  0x14   :  { %7947 = vmatprep.subr.mxu0 %v76_v1  ;;  %v74_v9 = vld [vmem:[%s10419_s23] sm:$0xff]  ;;  %s10399_s21 = smov 88  }
  0x15   :  { %7948 = vmatpush3.msra.mxu0 %v76_v1  ;;  %v8526_v10 = vadd.f32 %v69_v7, %v67_v5  ;;  %v8528_v11 = vadd.f32 %v70_v8, %v68_v6  ;;  %v7562_v13 = vld [vmem:[%s10422_s26] ss:$0 sm:$0xff]  ;;  %v8563_v19 = vld [vmem:[%s10423_s30 + $0x50] sm:$0xff]  ;;  %v8568_v20 = vld [vmem:[%s10423_s30 + $0x48] sm:$0xff] }
  0x16   :  { %7949 = vmatprep.subr.mxu0 %v75_v2  ;;  %v8554_v18 = vld [vmem:[%s10423_s30 + $0x40] sm:$0xff]  ;;  %v8582_v22 = vld [vmem:[%s10423_s30 + $0x58] sm:$0xff]  ;;  %v8591_v23 = vld [vmem:[%s10423_s30 + $0x70] sm:$0xff] }
  0x17   :  { %7950 = vmatpush3.msra.mxu0 %v75_v2  ;;  %7953 = vmatprep.mubr.msk.f32.mxu0 %vm85_vm0, %v8526_v10  ;;  %v8577_v21 = vld [vmem:[%s10423_s30 + $0x60] sm:$0xff]  ;;  %v8596_v24 = vld [vmem:[%s10423_s30 + $0x68] sm:$0xff]  ;;  %v8605_v25 = vld [vmem:[%s10423_s30 + $0x78] sm:$0xff] }
  0x18   :  { %7951 = vmatprep.subr.mxu0 %v74_v9  ;;  %v8639_v45 = vld [vmem:[%s10423_s30 + $0x8] sm:$0xff]  ;;  %v8646_v47 = vld [vmem:[%s10423_s30] sm:$0xff]  ;;  %v8653_v49 = vld [vmem:[%s10423_s30 + $0x10] sm:$0xff] }
  0x19   :  { %7952 = vmatpush3.msra.mxu0 %v74_v9  ;;  %v8661_v52 = vld [vmem:[%s10423_s30 + $0x18] sm:$0xff]  ;;  %v8669_v55 = vld [vmem:[%s10423_s30 + $0x20] sm:$0xff]  ;;  %v8677_v58 = vld [vmem:[%s10423_s30 + $0x28] sm:$0xff] }
  0x1a   :  { %7954 = vmatmul.mubr.msk.f32.vlgmr.msra.gmra.mxu0 %vm85_vm0, %v8528_v11  ;;  %7966 = vmatprep.subr.mxu0 %v8381_v12  ;;  %v8685_v61 = vld [vmem:[%s10423_s30 + $0x30] sm:$0xff]  ;;  %v8694_v1 = vld [vmem:[%s10423_s30 + $0x38] sm:$0xff] }
  0x1b   :  { %7968 = vmatprep.mubr.msk.f32.mxu0 %vm8382_vm1, %v8381_v12 }
  0xda   :  { %v7955_v14 = vpop.f32.mrf.mxu0 }
  0xdb   :  { %v8543_v15 = vadd.f32 %v7955_v14, %v7562_v13 }
  0xdc   :  { %v158_v16 = vpop.f32.mrf.mxu0 }
  0xdd   :  { %v8545_v17 = vadd.f32 %v7562_v13, %v158_v16 }
  0xdf   :  { %652 = vrot.lane.b32.xlu1 %v8545_v17, %s10383_s27  ;;  %302 = vrot.lane.b32.xlu0 %v8545_v17, %s10397_s28  ;;  %v180_v46 = vmul.f32 %v8639_v45, %v8545_v17  ;;  %v179_v48 = vmul.f32 %v8646_v47, %v8545_v17  ;;  %v181_v51 = vmul.f32 %v8653_v49, %v8545_v17 }
  0xe0   :  { %v182_v54 = vmul.f32 %v8661_v52, %v8545_v17  ;;  %v183_v57 = vmul.f32 %v8669_v55, %v8545_v17  ;;  %v184_v60 = vmul.f32 %v8677_v58, %v8545_v17  ;;  %v185_v63 = vmul.f32 %v8685_v61, %v8545_v17 }
  0xe1   :  { %v191_v50 = vsel %vm187_vm2, %v180_v46, 0.0  ;;  %v188_v53 = vsel %vm187_vm2, %v179_v48, 0.0  ;;  %v194_v56 = vsel %vm187_vm2, %v181_v51, 0.0  ;;  %v186_v3 = vmul.f32 %v8694_v1, %v8545_v17 }
  0xe2   :  { %v197_v59 = vsel %vm187_vm2, %v182_v54, 0.0  ;;  %v200_v62 = vsel %vm187_vm2, %v183_v57, 0.0  ;;  %v203_v0 = vsel %vm187_vm2, %v184_v60, 0.0  ;;  %v206_v2 = vsel %vm187_vm2, %v185_v63, 0.0 }
  0xe3   :  { %484 = vrot.lane.b32.xlu1 %v8554_v18, %s10395_s3  ;;  %654 = vrot.lane.b32.xlu0 %v8545_v17, %s10399_s21  ;;  %v209_v4 = vsel %vm187_vm2, %v186_v3, 0.0 }
  0xe7   :  { %488 = vrot.lane.b32.xlu1 %v8563_v19, %s10395_s3  ;;  %486 = vrot.lane.b32.xlu0 %v8568_v20, %s10395_s3 }
  0xeb   :  { %492 = vrot.lane.b32.xlu1 %v8577_v21, %s10395_s3  ;;  %490 = vrot.lane.b32.xlu0 %v8582_v22, %s10395_s3 }
  0xef   :  { %496 = vrot.lane.b32.xlu1 %v8591_v23, %s10395_s3  ;;  %494 = vrot.lane.b32.xlu0 %v8596_v24, %s10395_s3 }
  0xf3   :  { %498 = vrot.lane.b32.xlu0 %v8605_v25, %s10395_s3 }
 0x151   :  { %v653_v26 = vpop.permute.xlu1 %652  ;;  %v303_v27 = vpop.permute.xlu0 %302 }
 0x152   :  { %7957 = vmatpush3.xpose.msk.msra.mxu1 %vm187_vm2, %v303_v27 }
 0x153   :  { %7961 = vmatprep.subr.mxu1 %v8381_v12 }
 0x155   :  { %v485_v28 = vpop.permute.xlu1 %484  ;;  %7959 = vmatmul.mubr.msk.f32.vlgmr.msra.gmra.mxu1 %vm187_vm2, %v8545_v17  ;;  %v655_v29 = vpop.permute.xlu0 %654 }
 0x156   :  { %v508_v30 = vmul.f32 %v485_v28, %v8545_v17  ;;  %7967 = vmatpush3.xpose.msk.msra.mxu0 %vm187_vm2, %v655_v29  ;;  %7963 = vmatprep.mubr.msk.f32.mxu1 %vm8382_vm1, %v8381_v12 }
 0x157   :  { %7976 = vmatprep.subr.mxu0 %v8381_v12 }
 0x158   :  { %524 = vrot.lane.b32.xlu1 %v508_v30, %s10383_s27 }
 0x159   :  { %v489_v31 = vpop.permute.xlu1 %488  ;;  %7969 = vmatmul.mubr.msk.f32.vlgmr.msra.gmra.mxu0 %vm187_vm2, %v653_v26  ;;  %v487_v32 = vpop.permute.xlu0 %486 }
 0x15a   :  { %v510_v33 = vmul.f32 %v489_v31, %v8545_v17  ;;  %v509_v34 = vmul.f32 %v487_v32, %v8545_v17  ;;  %7978 = vmatprep.mubr.msk.f32.mxu0 %vm8382_vm1, %v8381_v12 }
 0x15c   :  { %528 = vrot.lane.b32.xlu1 %v510_v33, %s10383_s27  ;;  %526 = vrot.lane.b32.xlu0 %v509_v34, %s10383_s27  ;;  %v220_v34 = vlaneseq }
 0x15d   :  { %v493_v35 = vpop.permute.xlu1 %492  ;;  %v491_v36 = vpop.permute.xlu0 %490 }
 0x15e   :  { %v512_v37 = vmul.f32 %v493_v35, %v8545_v17  ;;  %v511_v38 = vmul.f32 %v491_v36, %v8545_v17  ;;  %v221_v35 = vand.u32 127, %v220_v34  ;;  %v223_v36 = vshrl.u32 %v220_v34, 7 }
 0x160   :  { %532 = vrot.lane.b32.xlu1 %v512_v37, %s10383_s27  ;;  %530 = vrot.lane.b32.xlu0 %v511_v38, %s10383_s27  ;;  %v8708_v38 = vsub.s32 %v221_v35, %v223_v36 }
 0x161   :  { %v497_v39 = vpop.permute.xlu1 %496  ;;  %v495_v40 = vpop.permute.xlu0 %494 }
 0x162   :  { %v514_v41 = vmul.f32 %v497_v39, %v8545_v17  ;;  %v513_v42 = vmul.f32 %v495_v40, %v8545_v17 }
 0x164   :  { %536 = vrot.lane.b32.xlu1 %v514_v41, %s10383_s27  ;;  %534 = vrot.lane.b32.xlu0 %v513_v42, %s10383_s27 }
 0x165   :  { %v499_v43 = vpop.permute.xlu0 %498 }
 0x166   :  { %v515_v44 = vmul.f32 %v499_v43, %v8545_v17 }
 0x168   :  { %538 = vrot.lane.b32.xlu0 %v515_v44, %s10383_s27  ;;  %s10405_s27 = smov 24  }
 0x187   :  { %192 = vadd.xlane.f32.xlu0 %v191_v50 }
 0x188   :  { %189 = vadd.xlane.f32.xlu1 %v188_v53 }
 0x18b   :  { %195 = vadd.xlane.f32.xlu0 %v194_v56 }
 0x18c   :  { %198 = vadd.xlane.f32.xlu1 %v197_v59 }
 0x18f   :  { %201 = vadd.xlane.f32.xlu0 %v200_v62 }
 0x190   :  { %204 = vadd.xlane.f32.xlu1 %v203_v0 }
 0x193   :  { %207 = vadd.xlane.f32.xlu0 %v206_v2 }
 0x197   :  { %210 = vadd.xlane.f32.xlu0 %v209_v4 }
 0x1ca   :  { %v525_v5 = vpop.permute.xlu1 %524 }
 0x1cb   :  { %v548_v6 = vsel %vm187_vm2, %v525_v5, 0.0 }
 0x1cc   :  { %549 = vadd.xlane.f32.xlu0 %v548_v6 }
 0x1ce   :  { %v529_v7 = vpop.permute.xlu1 %528  ;;  %v527_v8 = vpop.permute.xlu0 %526 }
 0x1cf   :  { %v551_v9 = vsel %vm187_vm2, %v527_v8, 0.0  ;;  %v554_v26 = vsel %vm187_vm2, %v529_v7, 0.0 }
 0x1d0   :  { %552 = vadd.xlane.f32.xlu1 %v551_v9 }
 0x1d2   :  { %v533_v13 = vpop.permute.xlu1 %532  ;;  %v531_v14 = vpop.permute.xlu0 %530 }
 0x1d3   :  { %v560_v16 = vsel %vm187_vm2, %v533_v13, 0.0  ;;  %v557_v30 = vsel %vm187_vm2, %v531_v14, 0.0 }
 0x1d4   :  { %561 = vadd.xlane.f32.xlu0 %v560_v16  ;;  %555 = vadd.xlane.f32.xlu1 %v554_v26 }
 0x1d6   :  { %v537_v27 = vpop.permute.xlu1 %536  ;;  %v535_v28 = vpop.permute.xlu0 %534 }
 0x1d7   :  { %v566_v29 = vsel %vm187_vm2, %v537_v27, 0.0  ;;  %v563_v31 = vsel %vm187_vm2, %v535_v28, 0.0 }
 0x1d8   :  { %567 = vadd.xlane.f32.xlu0 %v566_v29  ;;  %558 = vadd.xlane.f32.xlu1 %v557_v30 }
 0x1da   :  { %v539_v32 = vpop.permute.xlu0 %538 }
 0x1db   :  { %v569_v33 = vsel %vm187_vm2, %v539_v32, 0.0 }
 0x1dc   :  { %564 = vadd.xlane.f32.xlu1 %v563_v31 }
 0x1e0   :  { %570 = vadd.xlane.f32.xlu1 %v569_v33 }
 0x210   :  { %v193_v37 = vpop.xlane.xlu0 %192 }
 0x211   :  { %v190_v39 = vpop.xlane.xlu1 %189  ;;  %v229_v41 = vrot.slane %v193_v37, %v8708_v38 }
 0x212   :  { %v225_v42 = vrot.slane %v190_v39, %v8708_v38 }
 0x214   :  { %v196_v40 = vpop.xlane.xlu0 %195  ;;  %v255_v51 = vsel %vm254_vm3, %v229_v41, %v225_v42 }
 0x215   :  { %v374_v43 = vpop.f32.mrf.mxu1  ;;  %v199_v44 = vpop.xlane.xlu1 %198  ;;  %v233_v46 = vrot.slane %v196_v40, %v8708_v38 }
 0x216   :  { %v237_v53 = vrot.slane %v199_v44, %v8708_v38 }
 0x217   :  { %v7960_v48 = vpop.f32.mrf.mxu1  ;;  %v257_v56 = vsel %vm256_vm4, %v233_v46, %v255_v51 }
 0x218   :  { %v202_v50 = vpop.xlane.xlu0 %201  ;;  %v259_v63 = vsel %vm258_vm5, %v237_v53, %v257_v56  ;;  %v8743_v53 = vld [vmem:[%s10358_s2] sm:$0xff] }
 0x219   :  { %v726_v54 = vpop.f32.mrf.mxu0  ;;  %v241_v57 = vrot.slane %v202_v50, %v8708_v38  ;;  %v205_v59 = vpop.xlane.xlu1 %204 }
 0x21a   :  { %v245_v0 = vrot.slane %v205_v59, %v8708_v38 }
 0x21b   :  { %v7970_v60 = vpop.f32.mrf.mxu0  ;;  %v261_v2 = vsel %vm260_vm6, %v241_v57, %v259_v63 }
 0x21c   :  { %v208_v62 = vpop.xlane.xlu0 %207  ;;  %v263_v6 = vsel %vm262_vm7, %v245_v0, %v261_v2 }
 0x21d   :  { %v249_v3 = vrot.slane %v208_v62, %v8708_v38 }
 0x21f   :  { %v265_v7 = vsel %vm264_vm8, %v249_v3, %v263_v6 }
 0x220   :  { %v211_v4 = vpop.xlane.xlu0 %210 }
 0x221   :  { %v253_v5 = vrot.slane %v211_v4, %v8708_v38 }
 0x223   :  { %v267_v8 = vsel %vm266_vm9, %v253_v5, %v265_v7  ;;  %v8764_v7 = vld [vmem:[%s10423_s30 + $0x98] sm:$0xff] }
 0x224   :  { %269 = vxpose.xlu0.b32.start.end [1/1] (short) (narrow) %v267_v8, 8  ;;  %v8771_v8 = vld [vmem:[%s10423_s30 + $0xa8] sm:$0xff] }
 0x255   :  { %v550_v13 = vpop.xlane.xlu0 %549 }
 0x256   :  { %v583_v27 = vrot.slane %v550_v13, %v8708_v38 }
 0x259   :  { %v553_v9 = vpop.xlane.xlu1 %552 }
 0x25a   :  { %v587_v16 = vrot.slane %v553_v9, %v8708_v38  ;;  %v8778_v9 = vld [vmem:[%s10423_s30 + $0xb8] sm:$0xff] }
 0x25c   :  { %v612_v30 = vsel %vm254_vm3, %v587_v16, %v583_v27 }
 0x25d   :  { %v556_v14 = vpop.xlane.xlu1 %555  ;;  %v562_v28 = vpop.xlane.xlu0 %561 }
 0x25e   :  { %v591_v26 = vrot.slane %v556_v14, %v8708_v38  ;;  %v599_v34 = vrot.slane %v562_v28, %v8708_v38  ;;  %v8790_v28 = vld [vmem:[%s10423_s30 + $0x80] sm:$0xff] }
 0x260   :  { %v613_v32 = vsel %vm256_vm4, %v591_v26, %v612_v30  ;;  %v8804_v30 = vld [vmem:[%s10423_s30 + $0xa0] sm:$0xff] }
 0x261   :  { %v559_v29 = vpop.xlane.xlu1 %558  ;;  %v568_v36 = vpop.xlane.xlu0 %567 }
 0x262   :  { %v595_v31 = vrot.slane %v559_v29, %v8708_v38  ;;  %v607_v41 = vrot.slane %v568_v36, %v8708_v38  ;;  %v8797_v29 = vld [vmem:[%s10423_s30 + $0x90] sm:$0xff] }
 0x264   :  { %v614_v33 = vsel %vm258_vm5, %v595_v31, %v613_v32  ;;  %v8811_v31 = vld [vmem:[%s10423_s30 + $0xb0] sm:$0xff] }
 0x265   :  { %v565_v35 = vpop.xlane.xlu1 %564  ;;  %v615_v39 = vsel %vm260_vm6, %v599_v34, %v614_v33 }
 0x266   :  { %v603_v37 = vrot.slane %v565_v35, %v8708_v38 }
 0x268   :  { %v616_v40 = vsel %vm262_vm7, %v603_v37, %v615_v39 }
 0x269   :  { %v571_v42 = vpop.xlane.xlu1 %570  ;;  %v617_v46 = vsel %vm264_vm8, %v607_v41, %v616_v40 }
 0x26a   :  { %v611_v44 = vrot.slane %v571_v42, %v8708_v38 }
 0x26c   :  { %v618_v48 = vsel %vm266_vm9, %v611_v44, %v617_v46 }
 0x26d   :  { %620 = vxpose.xlu1.b32.start.end [1/1] (short) (narrow) %v618_v48, 8 }
 0x2a0   :  { %v285_v50 = vpop.trf.xlu0 }
 0x2a1   :  { %v375_v51 = vadd.f32 %v374_v43, %v285_v50 }
 0x2a3   :  { %v378_v56 = vmul.f32 0.35355338, %v375_v51 }
 0x2a5   :  { %v379_v57 = vadd.f32 %v378_v56, %v8743_v53 }
 0x2a7   :  { %v380_v59 = vsel %vm187_vm2, %v379_v57, -inf }
 0x2a8   :  { %381 = vmax.xlane.f32.xlu0 %v380_v59 }
 0x2e9   :  { %v636_v60 = vpop.trf.xlu1 }
 0x2ea   :  { %v727_v62 = vadd.f32 %v726_v54, %v636_v60  ;;  %v8757_v54 = vld [vmem:[%s10423_s30 + $0x88] sm:$0xff] }
 0x2ec   :  { %v730_v63 = vmul.f32 0.35355338, %v727_v62 }
 0x2ee   :  { %v731_v0 = vadd.f32 %v730_v63, %v8743_v53  ;;  %v8835_v63 = vld [vmem:[%s10359_s5] sm:$0xff] }
 0x2f0   :  { %v732_v2 = vsel %vm187_vm2, %v731_v0, -inf }
 0x2f1   :  { %733 = vmax.xlane.f32.xlu1 %v732_v2 }
 0x331   :  { %v382_v43 = vpop.xlane.xlu0 %381 }
 0x332   :  { %v383_v3 = vsub.f32 %v379_v57, %v382_v43 }
 0x334   :  { %v384_v4 = vmul.f32 1.442695, %v383_v3 }
 0x336   :  { %8294 = vpow2.f32 %v384_v4 }
 0x343   :  { %v8295_v5 = vpop.eup %8294 }
 0x344   :  { %v386_v6 = vsel %vm187_vm2, %v8295_v5, 0.0 }
 0x345   :  { %387 = vadd.xlane.f32.xlu0 %v386_v6 }
 0x35b   :  { %391 = vrot.lane.b32.xlu0 %v8545_v17, %s10379_s0  ;;  %s10381_s0 = smov 56  }
 0x35f   :  { %1150 = vrot.lane.b32.xlu0 %v8545_v17, %s10391_s22 }
 0x363   :  { %984 = vrot.lane.b32.xlu0 %v8757_v54, %s10389_s25 }
 0x367   :  { %988 = vrot.lane.b32.xlu0 %v8764_v7, %s10389_s25 }
 0x36b   :  { %992 = vrot.lane.b32.xlu0 %v8771_v8, %s10389_s25 }
 0x36f   :  { %996 = vrot.lane.b32.xlu0 %v8778_v9, %s10389_s25 }
 0x37a   :  { %v734_v13 = vpop.xlane.xlu1 %733 }
 0x37b   :  { %v735_v14 = vsub.f32 %v731_v0, %v734_v13 }
 0x37d   :  { %v736_v16 = vmul.f32 1.442695, %v735_v14  ;;  %v8852_v14 = vld [vmem:[%s10359_s5 + $0x8] sm:$0xff] }
 0x37e   :  { %7977 = vmatpush3.msra.mxu0 %v8852_v14 }
 0x37f   :  { %8296 = vpow2.f32 %v736_v16  ;;  %7986 = vmatprep.subr.mxu0 %v8381_v12 }
 0x38c   :  { %v8297_v26 = vpop.eup %8296 }
 0x38d   :  { %v738_v27 = vsel %vm187_vm2, %v8297_v26, 0.0 }
 0x38e   :  { %739 = vadd.xlane.f32.xlu1 %v738_v27 }
 0x39f   :  { %743 = vrot.lane.b32.xlu1 %v8545_v17, %s10381_s0  ;;  %s10387_s0 = smov 48  }
 0x3a3   :  { %1152 = vrot.lane.b32.xlu1 %v8545_v17, %s10393_s4 }
 0x3a7   :  { %982 = vrot.lane.b32.xlu1 %v8790_v28, %s10389_s25 }
 0x3ab   :  { %986 = vrot.lane.b32.xlu1 %v8797_v29, %s10389_s25 }
 0x3af   :  { %990 = vrot.lane.b32.xlu1 %v8804_v30, %s10389_s25 }
 0x3b3   :  { %994 = vrot.lane.b32.xlu1 %v8811_v31, %s10389_s25  ;;  %s10424_s25 = smov 120  }
 0x3ce   :  { %v388_v32 = vpop.xlane.xlu0 %387 }
 0x3cf   :  { %8298 = vrcp.f32 %v388_v32 }
 0x3d2   :  { %v392_v33 = vpop.permute.xlu0 %391 }
 0x3d3   :  { %7962 = vmatpush3.msra.mxu1 %v392_v33 }
 0x3d4   :  { %7971 = vmatprep.subr.mxu1 %v8381_v12 }
 0x3d6   :  { %v8816_v34 = vpop.permute.xlu0 %1150 }
 0x3da   :  { %v985_v35 = vpop.permute.xlu0 %984 }
 0x3db   :  { %v1007_v36 = vmul.f32 %v985_v35, %v8545_v17 }
 0x3dc   :  { %v8299_v37 = vpop.eup %8298 }
 0x3dd   :  { %1024 = vrot.lane.b32.xlu0 %v1007_v36, %s10391_s22  ;;  %v390_v39 = vmul.f32 %v8299_v37, %v8295_v5 }
 0x3de   :  { %v989_v40 = vpop.permute.xlu0 %988 }
 0x3df   :  { %v1009_v41 = vmul.f32 %v989_v40, %v8545_v17  ;;  %7964 = vmatmul.mubr.msk.f32.vlgmr.msra.gmra.mxu1 %vm187_vm2, %v390_v39 }
 0x3e0   :  { %7973 = vmatprep.mubr.msk.f32.mxu1 %vm8382_vm1, %v8381_v12 }
 0x3e1   :  { %1028 = vrot.lane.b32.xlu0 %v1009_v41, %s10391_s22 }
 0x3e2   :  { %v993_v42 = vpop.permute.xlu0 %992 }
 0x3e3   :  { %v1011_v44 = vmul.f32 %v993_v42, %v8545_v17 }
 0x3e5   :  { %1032 = vrot.lane.b32.xlu0 %v1011_v44, %s10391_s22 }
 0x3e6   :  { %v997_v46 = vpop.permute.xlu0 %996 }
 0x3e7   :  { %v1013_v48 = vmul.f32 %v997_v46, %v8545_v17 }
 0x3e9   :  { %1036 = vrot.lane.b32.xlu0 %v1013_v48, %s10391_s22 }
 0x417   :  { %v740_v50 = vpop.xlane.xlu1 %739 }
 0x418   :  { %8300 = vrcp.f32 %v740_v50 }
 0x41b   :  { %v744_v51 = vpop.permute.xlu1 %743 }
 0x41c   :  { %7972 = vmatpush3.msra.mxu1 %v744_v51 }
 0x41d   :  { %7981 = vmatprep.subr.mxu1 %v8381_v12 }
 0x41f   :  { %v1153_v56 = vpop.permute.xlu1 %1152 }
 0x423   :  { %v983_v57 = vpop.permute.xlu1 %982 }
 0x424   :  { %v1006_v59 = vmul.f32 %v983_v57, %v8545_v17 }
 0x425   :  { %v8301_v60 = vpop.eup %8300 }
 0x426   :  { %1022 = vrot.lane.b32.xlu1 %v1006_v59, %s10391_s22  ;;  %v742_v62 = vmul.f32 %v8301_v60, %v8297_v26 }
 0x427   :  { %v987_v0 = vpop.permute.xlu1 %986 }
 0x428   :  { %v1008_v2 = vmul.f32 %v987_v0, %v8545_v17  ;;  %7974 = vmatmul.mubr.msk.f32.vlgmr.msra.gmra.mxu1 %vm187_vm2, %v742_v62 }
 0x429   :  { %7982 = vmatpush3.msra.mxu1 %v8835_v63  ;;  %7983 = vmatprep.mubr.msk.f32.mxu1 %vm8382_vm1, %v8381_v12 }
 0x42a   :  { %1026 = vrot.lane.b32.xlu1 %v1008_v2, %s10391_s22  ;;  %7991 = vmatprep.subr.mxu1 %v8381_v12 }
 0x42b   :  { %v991_v43 = vpop.permute.xlu1 %990 }
 0x42c   :  { %v1010_v3 = vmul.f32 %v991_v43, %v8545_v17 }
 0x42e   :  { %1030 = vrot.lane.b32.xlu1 %v1010_v3, %s10391_s22 }
 0x42f   :  { %v995_v4 = vpop.permute.xlu1 %994 }
 0x430   :  { %v1012_v5 = vmul.f32 %v995_v4, %v8545_v17 }
 0x432   :  { %1034 = vrot.lane.b32.xlu1 %v1012_v5, %s10391_s22  ;;  %s10401_s22 = smov 40  }
 0x44f   :  { %v1025_v6 = vpop.permute.xlu0 %1024 }
 0x450   :  { %v1049_v13 = vsel %vm187_vm2, %v1025_v6, 0.0 }
 0x451   :  { %1050 = vadd.xlane.f32.xlu0 %v1049_v13 }
 0x453   :  { %v1029_v16 = vpop.permute.xlu0 %1028 }
 0x454   :  { %v1055_v35 = vsel %vm187_vm2, %v1029_v16, 0.0 }
 0x457   :  { %v1033_v32 = vpop.permute.xlu0 %1032 }
 0x458   :  { %v1061_v41 = vsel %vm187_vm2, %v1033_v32, 0.0 }
 0x45b   :  { %v1037_v44 = vpop.permute.xlu0 %1036 }
 0x45c   :  { %v1067_v48 = vsel %vm187_vm2, %v1037_v44, 0.0 }
 0x498   :  { %v1023_v26 = vpop.permute.xlu1 %1022 }
 0x499   :  { %v1046_v27 = vsel %vm187_vm2, %v1023_v26, 0.0 }
 0x49a   :  { %1047 = vadd.xlane.f32.xlu1 %v1046_v27 }
 0x49c   :  { %v1027_v33 = vpop.permute.xlu1 %1026 }
 0x49d   :  { %v1052_v36 = vsel %vm187_vm2, %v1027_v33, 0.0 }
 0x49e   :  { %1056 = vadd.xlane.f32.xlu1 %v1055_v35  ;;  %1053 = vadd.xlane.f32.xlu0 %v1052_v36 }
 0x49f   :  { %v463_v37 = vpop.f32.mrf.mxu1 }
 0x4a0   :  { %7984 = vmatmul.mubr.msk.f32.vlgmr.msra.gmra.mxu1 %vm187_vm2, %v463_v37  ;;  %v1031_v39 = vpop.permute.xlu1 %1030 }
 0x4a1   :  { %v7965_v40 = vpop.f32.mrf.mxu1  ;;  %v1058_v42 = vsel %vm187_vm2, %v1031_v39, 0.0  ;;  %7993 = vmatprep.mubr.msk.f32.mxu1 %vm8382_vm1, %v8381_v12 }
 0x4a2   :  { %1062 = vadd.xlane.f32.xlu1 %v1061_v41  ;;  %1059 = vadd.xlane.f32.xlu0 %v1058_v42  ;;  %v8893_v41 = vld [vmem:[%s10423_s30 + $0xd8] sm:$0xff] }
 0x4a4   :  { %v1035_v46 = vpop.permute.xlu1 %1034 }
 0x4a5   :  { %v1064_v50 = vsel %vm187_vm2, %v1035_v46, 0.0 }
 0x4a6   :  { %1068 = vadd.xlane.f32.xlu1 %v1067_v48  ;;  %1065 = vadd.xlane.f32.xlu0 %v1064_v50 }
 0x4da   :  { %v1051_v59 = vpop.xlane.xlu0 %1050 }
 0x4db   :  { %v1085_v0 = vrot.slane %v1051_v59, %v8708_v38 }
 0x4e8   :  { %v815_v51 = vpop.f32.mrf.mxu1 }
 0x4e9   :  { %7979 = vmatmul.mubr.msk.f32.vlgmr.msra.gmra.mxu0 %vm187_vm2, %v815_v51 }
 0x4ea   :  { %7987 = vmatpush3.xpose.msk.msra.mxu0 %vm187_vm2, %v1153_v56  ;;  %v7975_v57 = vpop.f32.mrf.mxu1  ;;  %7988 = vmatprep.mubr.msk.f32.mxu0 %vm8382_vm1, %v8381_v12 }
 0x4eb   :  { %7996 = vmatprep.subr.mxu0 %v8381_v12 }
 0x4ed   :  { %7989 = vmatmul.mubr.msk.f32.vlgmr.msra.gmra.mxu0 %vm187_vm2, %v8816_v34 }
 0x4ee   :  { %7998 = vmatprep.mubr.msk.f32.mxu0 %vm8382_vm1, %v8381_v12 }
 0x523   :  { %v1048_v60 = vpop.xlane.xlu1 %1047 }
 0x524   :  { %v1081_v62 = vrot.slane %v1048_v60, %v8708_v38 }
 0x526   :  { %v1110_v3 = vsel %vm254_vm3, %v1085_v0, %v1081_v62 }
 0x527   :  { %v1054_v2 = vpop.xlane.xlu0 %1053  ;;  %v1057_v56 = vpop.xlane.xlu1 %1056 }
 0x528   :  { %v1089_v43 = vrot.slane %v1054_v2, %v8708_v38  ;;  %v1093_v4 = vrot.slane %v1057_v56, %v8708_v38 }
 0x52a   :  { %v1111_v5 = vsel %vm256_vm4, %v1089_v43, %v1110_v3 }
 0x52b   :  { %v1060_v34 = vpop.xlane.xlu0 %1059  ;;  %v1063_v6 = vpop.xlane.xlu1 %1062  ;;  %v1112_v16 = vsel %vm258_vm5, %v1093_v4, %v1111_v5 }
 0x52c   :  { %v1097_v13 = vrot.slane %v1060_v34, %v8708_v38  ;;  %v1101_v26 = vrot.slane %v1063_v6, %v8708_v38  ;;  %v8914_v34 = vld [vmem:[%s10423_s30 + $0xc0] sm:$0xff]  ;;  %v8921_v6 = vld [vmem:[%s10423_s30 + $0xc8] sm:$0xff] }
 0x52e   :  { %v1113_v27 = vsel %vm260_vm6, %v1097_v13, %v1112_v16  ;;  %v8928_v13 = vld [vmem:[%s10423_s30 + $0xd0] sm:$0xff]  ;;  %v8935_v16 = vld [vmem:[%s10423_s30 + $0xe0] sm:$0xff] }
 0x52f   :  { %v1066_v32 = vpop.xlane.xlu0 %1065  ;;  %v1069_v33 = vpop.xlane.xlu1 %1068  ;;  %v1114_v37 = vsel %vm262_vm7, %v1101_v26, %v1113_v27  ;;  %v8942_v26 = vld [vmem:[%s10423_s30 + $0xe8] sm:$0xff]  ;;  %v8949_v27 = vld [vmem:[%s10423_s30 + $0xf0] sm:$0xff] }
 0x530   :  { %v1105_v35 = vrot.slane %v1066_v32, %v8708_v38  ;;  %v1109_v36 = vrot.slane %v1069_v33, %v8708_v38  ;;  %v8956_v32 = vld [vmem:[%s10423_s30 + $0xf8] sm:$0xff] }
 0x532   :  { %v1115_v39 = vsel %vm264_vm8, %v1105_v35, %v1114_v37 }
 0x533   :  { %v1116_v40 = vsel %vm266_vm9, %v1109_v36, %v1115_v39 }
 0x534   :  { %1118 = vxpose.xlu0.b32.start.end [1/1] (short) (narrow) %v1116_v40, 8 }
 0x55d   :  { %1414 = vrot.lane.b32.xlu0 %v8893_v41, %s10405_s27 }
 0x560   :  { %v8897_v42 = vpop.f32.mrf.mxu1 }
 0x562   :  { %v7985_v44 = vpop.f32.mrf.mxu1 }
 0x5a9   :  { %v8899_v46 = vpop.f32.mrf.mxu0 }
 0x5ab   :  { %v7980_v48 = vpop.f32.mrf.mxu0 }
 0x5ad   :  { %v1224_v50 = vpop.f32.mrf.mxu0 }
 0x5af   :  { %v7990_v51 = vpop.f32.mrf.mxu0 }
 0x5b0   :  { %v1134_v57 = vpop.trf.xlu0 }
 0x5b1   :  { %v1225_v59 = vadd.f32 %v1224_v50, %v1134_v57 }
 0x5b3   :  { %v1228_v60 = vmul.f32 0.35355338, %v1225_v59 }
 0x5b5   :  { %v1229_v62 = vadd.f32 %v1228_v60, %v8743_v53 }
 0x5b7   :  { %v1230_v0 = vsel %vm187_vm2, %v1229_v62, -inf }
 0x5b8   :  { %1231 = vmax.xlane.f32.xlu1 %v1230_v0 }
 0x5c9   :  { %1241 = vrot.lane.b32.xlu1 %v8545_v17, %s10387_s0  ;;  %s10425_s0 = smov 64  }
 0x5cd   :  { %1578 = vrot.lane.b32.xlu1 %v8545_v17, %s10385_s24  ;;  %s10426_s24 = smov 112  }
 0x5cf   :  { %v1415_v57 = vpop.permute.xlu0 %1414 }
 0x5d1   :  { %1576 = vrot.lane.b32.xlu1 %v8545_v17, %s10403_s1 }
 0x641   :  { %v1232_v2 = vpop.xlane.xlu1 %1231 }
 0x642   :  { %v1233_v56 = vsub.f32 %v1229_v62, %v1232_v2  ;;  %v1435_v62 = vmul.f32 %v1415_v57, %v8545_v17 }
 0x644   :  { %v1234_v43 = vmul.f32 1.442695, %v1233_v56 }
 0x645   :  { %v1242_v3 = vpop.permute.xlu1 %1241 }
 0x646   :  { %8302 = vpow2.f32 %v1234_v43  ;;  %7992 = vmatpush3.msra.mxu1 %v1242_v3 }
 0x647   :  { %8001 = vmatprep.subr.mxu1 %v8381_v12 }
 0x649   :  { %v1579_v33 = vpop.permute.xlu1 %1578 }
 0x64d   :  { %v1577_v35 = vpop.permute.xlu1 %1576 }
 0x653   :  { %v8303_v4 = vpop.eup %8302 }
 0x654   :  { %v1236_v5 = vsel %vm187_vm2, %v8303_v4, 0.0 }
 0x655   :  { %1237 = vadd.xlane.f32.xlu1 %v1236_v5 }
 0x666   :  { %1408 = vrot.lane.b32.xlu1 %v8914_v34, %s10405_s27 }
 0x66a   :  { %1410 = vrot.lane.b32.xlu1 %v8921_v6, %s10405_s27 }
 0x66e   :  { %1412 = vrot.lane.b32.xlu1 %v8928_v13, %s10405_s27 }
 0x672   :  { %1416 = vrot.lane.b32.xlu1 %v8935_v16, %s10405_s27 }
 0x676   :  { %1418 = vrot.lane.b32.xlu1 %v8942_v26, %s10405_s27 }
 0x67a   :  { %1420 = vrot.lane.b32.xlu1 %v8949_v27, %s10405_s27 }
 0x67e   :  { %1422 = vrot.lane.b32.xlu1 %v8956_v32, %s10405_s27 }
 0x6de   :  { %v1238_v36 = vpop.xlane.xlu1 %1237 }
 0x6df   :  { %8304 = vrcp.f32 %v1238_v36 }
 0x6e2   :  { %v1409_v37 = vpop.permute.xlu1 %1408 }
 0x6e3   :  { %v1432_v39 = vmul.f32 %v1409_v37, %v8545_v17 }
 0x6e5   :  { %1448 = vrot.lane.b32.xlu1 %v1432_v39, %s10403_s1 }
 0x6e6   :  { %v1411_v40 = vpop.permute.xlu1 %1410 }
 0x6e7   :  { %v1433_v44 = vmul.f32 %v1411_v40, %v8545_v17 }
 0x6e9   :  { %1450 = vrot.lane.b32.xlu1 %v1433_v44, %s10403_s1 }
 0x6ea   :  { %v1413_v48 = vpop.permute.xlu1 %1412 }
 0x6eb   :  { %v1434_v50 = vmul.f32 %v1413_v48, %v8545_v17 }
 0x6ec   :  { %v8305_v51 = vpop.eup %8304 }
 0x6ed   :  { %1452 = vrot.lane.b32.xlu1 %v1434_v50, %s10403_s1  ;;  %v1240_v59 = vmul.f32 %v8305_v51, %v8303_v4 }
 0x6ee   :  { %v1417_v60 = vpop.permute.xlu1 %1416 }
 0x6ef   :  { %7994 = vmatmul.mubr.msk.f32.vlgmr.msra.gmra.mxu1 %vm187_vm2, %v1240_v59  ;;  %v1436_v2 = vmul.f32 %v1417_v60, %v8545_v17 }
 0x6f0   :  { %8002 = vmatpush3.xpose.msk.msra.mxu1 %vm187_vm2, %v1579_v33  ;;  %8003 = vmatprep.mubr.msk.f32.mxu1 %vm8382_vm1, %v8381_v12  ;;  %v8987_v33 = vld [vmem:[%s10359_s5 + $0x10] sm:$0xff] }
 0x6f1   :  { %1454 = vrot.lane.b32.xlu1 %v1435_v62, %s10403_s1  ;;  %8011 = vmatprep.subr.mxu1 %v8381_v12 }
 0x6f2   :  { %v1419_v0 = vpop.permute.xlu1 %1418  ;;  %7997 = vmatpush3.msra.mxu0 %v8987_v33 }
 0x6f3   :  { %8004 = vmatmul.mubr.msk.f32.vlgmr.msra.gmra.mxu1 %vm187_vm2, %v1577_v35  ;;  %v1437_v43 = vmul.f32 %v1419_v0, %v8545_v17  ;;  %8006 = vmatprep.subr.mxu0 %v8381_v12 }
 0x6f4   :  { %8013 = vmatprep.mubr.msk.f32.mxu1 %vm8382_vm1, %v8381_v12 }
 0x6f5   :  { %1456 = vrot.lane.b32.xlu1 %v1436_v2, %s10403_s1 }
 0x6f6   :  { %v1421_v56 = vpop.permute.xlu1 %1420 }
 0x6f7   :  { %v1438_v3 = vmul.f32 %v1421_v56, %v8545_v17 }
 0x6f9   :  { %1460 = vrot.lane.b32.xlu0 %v1438_v3, %s10403_s1  ;;  %1458 = vrot.lane.b32.xlu1 %v1437_v43, %s10403_s1 }
 0x6fa   :  { %v1423_v4 = vpop.permute.xlu1 %1422 }
 0x6fb   :  { %v1439_v5 = vmul.f32 %v1423_v4, %v8545_v17 }
 0x6fd   :  { %1462 = vrot.lane.b32.xlu1 %v1439_v5, %s10403_s1 }
 0x757   :  { %v1449_v35 = vpop.permute.xlu1 %1448 }
 0x758   :  { %v1472_v36 = vsel %vm187_vm2, %v1449_v35, 0.0 }
 0x759   :  { %1473 = vadd.xlane.f32.xlu0 %v1472_v36 }
 0x75b   :  { %v1451_v37 = vpop.permute.xlu1 %1450 }
 0x75c   :  { %v1475_v39 = vsel %vm187_vm2, %v1451_v37, 0.0 }
 0x75d   :  { %1476 = vadd.xlane.f32.xlu1 %v1475_v39 }
 0x75f   :  { %v1453_v40 = vpop.permute.xlu1 %1452 }
 0x760   :  { %v1478_v44 = vsel %vm187_vm2, %v1453_v40, 0.0 }
 0x761   :  { %1479 = vadd.xlane.f32.xlu0 %v1478_v44 }
 0x763   :  { %v1455_v48 = vpop.permute.xlu1 %1454 }
 0x764   :  { %v1481_v50 = vsel %vm187_vm2, %v1455_v48, 0.0 }
 0x765   :  { %1482 = vadd.xlane.f32.xlu0 %v1481_v50 }
 0x767   :  { %v1457_v51 = vpop.permute.xlu1 %1456 }
 0x768   :  { %v1484_v57 = vsel %vm187_vm2, %v1457_v51, 0.0 }
 0x769   :  { %1485 = vadd.xlane.f32.xlu1 %v1484_v57 }
 0x76b   :  { %v1459_v59 = vpop.permute.xlu1 %1458  ;;  %v1461_v60 = vpop.permute.xlu0 %1460 }
 0x76c   :  { %v1487_v62 = vsel %vm187_vm2, %v1459_v59, 0.0  ;;  %v1490_v0 = vsel %vm187_vm2, %v1461_v60, 0.0 }
 0x76d   :  { %1488 = vadd.xlane.f32.xlu0 %v1487_v62  ;;  %1491 = vadd.xlane.f32.xlu1 %v1490_v0 }
 0x76f   :  { %v1463_v2 = vpop.permute.xlu1 %1462 }
 0x770   :  { %v1493_v56 = vsel %vm187_vm2, %v1463_v2, 0.0 }
 0x771   :  { %1494 = vadd.xlane.f32.xlu0 %v1493_v56 }
 0x7af   :  { %v1313_v43 = vpop.f32.mrf.mxu1 }
 0x7b0   :  { %7999 = vmatmul.mubr.msk.f32.vlgmr.msra.gmra.mxu0 %vm187_vm2, %v1313_v43 }
 0x7b1   :  { %v7995_v3 = vpop.f32.mrf.mxu1  ;;  %8008 = vmatprep.mubr.msk.f32.mxu0 %vm8382_vm1, %v8381_v12 }
 0x7b3   :  { %v1650_v4 = vpop.f32.mrf.mxu1 }
 0x7b5   :  { %v8005_v5 = vpop.f32.mrf.mxu1 }
 0x7e2   :  { %v1474_v35 = vpop.xlane.xlu0 %1473 }
 0x7e3   :  { %v1507_v50 = vrot.slane %v1474_v35, %v8708_v38 }
 0x7e6   :  { %v1477_v37 = vpop.xlane.xlu1 %1476 }
 0x7e7   :  { %v1511_v40 = vrot.slane %v1477_v37, %v8708_v38 }
 0x7e9   :  { %v1536_v59 = vsel %vm254_vm3, %v1511_v40, %v1507_v50  ;;  %v962_v40 = vadd.f32 %v8897_v42, %v8899_v46 }
 0x7ea   :  { %v1480_v36 = vpop.xlane.xlu0 %1479 }
 0x7eb   :  { %v1515_v44 = vrot.slane %v1480_v36, %v8708_v38 }
 0x7ed   :  { %v1537_v60 = vsel %vm256_vm4, %v1515_v44, %v1536_v59 }
 0x7ee   :  { %v1483_v39 = vpop.xlane.xlu0 %1482 }
 0x7ef   :  { %v1519_v51 = vrot.slane %v1483_v39, %v8708_v38 }
 0x7f1   :  { %v1538_v2 = vsel %vm258_vm5, %v1519_v51, %v1537_v60 }
 0x7f2   :  { %v1486_v48 = vpop.xlane.xlu1 %1485 }
 0x7f3   :  { %v1523_v57 = vrot.slane %v1486_v48, %v8708_v38 }
 0x7f5   :  { %v1539_v43 = vsel %vm260_vm6, %v1523_v57, %v1538_v2 }
 0x7f6   :  { %v1492_v62 = vpop.xlane.xlu1 %1491  ;;  %v1489_v0 = vpop.xlane.xlu0 %1488 }
 0x7f7   :  { %v1527_v56 = vrot.slane %v1489_v0, %v8708_v38  ;;  %v1531_v3 = vrot.slane %v1492_v62, %v8708_v38 }
 0x7f9   :  { %v1540_v5 = vsel %vm262_vm7, %v1527_v56, %v1539_v43 }
 0x7fa   :  { %v1495_v35 = vpop.xlane.xlu0 %1494  ;;  %v1541_v37 = vsel %vm264_vm8, %v1531_v3, %v1540_v5 }
 0x7fb   :  { %v1535_v36 = vrot.slane %v1495_v35, %v8708_v38 }
 0x7fd   :  { %v1542_v39 = vsel %vm266_vm9, %v1535_v36, %v1541_v37 }
 0x7fe   :  { %1544 = vxpose.xlu1.b32.start.end [1/1] (short) (narrow) %v1542_v39, 8 }
 0x81c   :  { %2124 = vrot.lane.b32.xlu1 %v8563_v19, %s10395_s3 }
 0x870   :  { %v1386_v44 = vpop.f32.mrf.mxu0 }
 0x871   :  { %v9021_v48 = vadd.f32 %v1386_v44, %v962_v40 }
 0x872   :  { %v8000_v50 = vpop.f32.mrf.mxu0 }
 0x87a   :  { %v1560_v51 = vpop.trf.xlu1 }
 0x87b   :  { %v1651_v57 = vadd.f32 %v1650_v4, %v1560_v51 }
 0x87d   :  { %v1654_v59 = vmul.f32 0.35355338, %v1651_v57 }
 0x87f   :  { %v1655_v60 = vadd.f32 %v1654_v59, %v8743_v53  ;;  %v1826_v59 = vmul.f32 %v8646_v47, %v8543_v15  ;;  %v1831_v47 = vmul.f32 %v8677_v58, %v8543_v15 }
 0x881   :  { %v1656_v62 = vsel %vm187_vm2, %v1655_v60, -inf }
 0x882   :  { %1657 = vmax.xlane.f32.xlu0 %v1656_v62  ;;  %v1828_v62 = vmul.f32 %v8653_v49, %v8543_v15  ;;  %v1830_v49 = vmul.f32 %v8669_v55, %v8543_v15  ;;  %v1832_v55 = vmul.f32 %v8685_v61, %v8543_v15 }
 0x898   :  { %1667 = vrot.lane.b32.xlu0 %v8545_v17, %s10401_s22 }
 0x89c   :  { %1939 = vrot.lane.b32.xlu0 %v8543_v15, %s10397_s28  ;;  %s10429_s28 = smov 48  }
 0x90b   :  { %v1658_v19 = vpop.xlane.xlu0 %1657 }
 0x90c   :  { %v1659_v42 = vsub.f32 %v1655_v60, %v1658_v19  ;;  %v1834_v60 = vsel %vm187_vm2, %v1826_v59, 0.0  ;;  %v1840_v19 = vsel %vm187_vm2, %v1828_v62, 0.0 }
 0x90e   :  { %v1660_v46 = vmul.f32 1.442695, %v1659_v42  ;;  %v1829_v42 = vmul.f32 %v8661_v52, %v8543_v15  ;;  %v1846_v52 = vsel %vm187_vm2, %v1830_v49, 0.0 }
 0x90f   :  { %v1668_v0 = vpop.permute.xlu0 %1667 }
 0x910   :  { %8306 = vpow2.f32 %v1660_v46  ;;  %8007 = vmatpush3.msra.mxu0 %v1668_v0  ;;  %v1827_v46 = vmul.f32 %v8639_v45, %v8543_v15  ;;  %v1843_v0 = vsel %vm187_vm2, %v1829_v42, 0.0  ;;  %v9102_v45 = vld [vmem:[%s10359_s5 + $0x18] sm:$0xff] }
 0x911   :  { %8016 = vmatprep.subr.mxu0 %v8381_v12  ;;  %8012 = vmatpush3.msra.mxu1 %v9102_v45 }
 0x912   :  { %8021 = vmatprep.subr.mxu1 %v8381_v12 }
 0x913   :  { %v1940_v17 = vpop.permute.xlu0 %1939 }
 0x91d   :  { %v8307_v4 = vpop.eup %8306 }
 0x91e   :  { %v1662_v2 = vsel %vm187_vm2, %v8307_v4, 0.0 }
 0x91f   :  { %1663 = vadd.xlane.f32.xlu0 %v1662_v2  ;;  %v1849_v2 = vsel %vm187_vm2, %v1831_v47, 0.0 }
 0x935   :  { %2290 = vrot.lane.b32.xlu0 %v8543_v15, %s10399_s21  ;;  %s10430_s21 = smov 72  }
 0x939   :  { %2288 = vrot.lane.b32.xlu0 %v8543_v15, %s10424_s25 }
 0x93d   :  { %2120 = vrot.lane.b32.xlu0 %v8554_v18, %s10395_s3 }
 0x941   :  { %2122 = vrot.lane.b32.xlu0 %v8568_v20, %s10395_s3 }
 0x945   :  { %2126 = vrot.lane.b32.xlu0 %v8582_v22, %s10395_s3 }
 0x949   :  { %2128 = vrot.lane.b32.xlu0 %v8577_v21, %s10395_s3 }
 0x94d   :  { %2130 = vrot.lane.b32.xlu0 %v8596_v24, %s10395_s3 }
 0x951   :  { %2132 = vrot.lane.b32.xlu0 %v8591_v23, %s10395_s3  ;;  %v2125_v23 = vpop.permute.xlu1 %2124 }
 0x952   :  { %v2146_v35 = vmul.f32 %v2125_v23, %v8543_v15 }
 0x955   :  { %2134 = vrot.lane.b32.xlu0 %v8605_v25, %s10395_s3  ;;  %s10432_s3 = smov 96  }
 0x9a8   :  { %v1664_v18 = vpop.xlane.xlu0 %1663 }
 0x9a9   :  { %8308 = vrcp.f32 %v1664_v18 }
 0x9ac   :  { %v2291_v56 = vpop.permute.xlu0 %2290 }
 0x9b0   :  { %v2289_v20 = vpop.permute.xlu0 %2288 }
 0x9b4   :  { %v2121_v43 = vpop.permute.xlu0 %2120 }
 0x9b5   :  { %v2144_v22 = vmul.f32 %v2121_v43, %v8543_v15  ;;  %v1833_v43 = vmul.f32 %v8694_v1, %v8543_v15 }
 0x9b6   :  { %v8309_v3 = vpop.eup %8308 }
 0x9b7   :  { %2160 = vrot.lane.b32.xlu0 %v2144_v22, %s10424_s25  ;;  %v1666_v21 = vmul.f32 %v8309_v3, %v8307_v4  ;;  %v1837_v4 = vsel %vm187_vm2, %v1827_v46, 0.0  ;;  %v1855_v3 = vsel %vm187_vm2, %v1833_v43, 0.0 }
 0x9b8   :  { %v2123_v5 = vpop.permute.xlu0 %2122 }
 0x9b9   :  { %v2145_v24 = vmul.f32 %v2123_v5, %v8543_v15  ;;  %8009 = vmatmul.mubr.msk.f32.vlgmr.msra.gmra.mxu0 %vm187_vm2, %v1666_v21 }
 0x9ba   :  { %8017 = vmatpush3.xpose.msk.msra.mxu0 %vm187_vm2, %v1940_v17  ;;  %8018 = vmatprep.mubr.msk.f32.mxu0 %vm8382_vm1, %v8381_v12 }
 0x9bb   :  { %2162 = vrot.lane.b32.xlu0 %v2145_v24, %s10424_s25  ;;  %8026 = vmatprep.subr.mxu0 %v8381_v12 }
 0x9bc   :  { %v2127_v25 = vpop.permute.xlu0 %2126 }
 0x9bd   :  { %v2147_v36 = vmul.f32 %v2127_v25, %v8543_v15  ;;  %8019 = vmatmul.mubr.msk.f32.vlgmr.msra.gmra.mxu0 %vm187_vm2, %v8543_v15 }
 0x9be   :  { %8027 = vmatpush3.xpose.msk.msra.mxu0 %vm187_vm2, %v2291_v56  ;;  %8028 = vmatprep.mubr.msk.f32.mxu0 %vm8382_vm1, %v8381_v12  ;;  %v1852_v56 = vsel %vm187_vm2, %v1832_v55, 0.0 }
 0x9bf   :  { %2166 = vrot.lane.b32.xlu1 %v2147_v36, %s10424_s25  ;;  %2164 = vrot.lane.b32.xlu0 %v2146_v35, %s10424_s25 }
 0x9c0   :  { %v2129_v37 = vpop.permute.xlu0 %2128  ;;  %8036 = vmatprep.subr.mxu0 %v8381_v12 }
 0x9c1   :  { %v2148_v39 = vmul.f32 %v2129_v37, %v8543_v15  ;;  %8029 = vmatmul.mubr.msk.f32.vlgmr.msra.gmra.mxu0 %vm187_vm2, %v2289_v20 }
 0x9c2   :  { %8037 = vmatpush3.msra.mxu0 %v8852_v14  ;;  %8038 = vmatprep.mubr.msk.f32.mxu0 %vm8382_vm1, %v8381_v12 }
 0x9c3   :  { %2168 = vrot.lane.b32.xlu0 %v2148_v39, %s10424_s25  ;;  %8046 = vmatprep.subr.mxu0 %v8381_v12 }
 0x9c4   :  { %v2131_v40 = vpop.permute.xlu0 %2130 }
 0x9c5   :  { %v2149_v44 = vmul.f32 %v2131_v40, %v8543_v15 }
 0x9c7   :  { %2170 = vrot.lane.b32.xlu1 %v2149_v44, %s10424_s25 }
 0x9c8   :  { %v2133_v50 = vpop.permute.xlu0 %2132 }
 0x9c9   :  { %v2150_v51 = vmul.f32 %v2133_v50, %v8543_v15 }
 0x9cb   :  { %2172 = vrot.lane.b32.xlu0 %v2150_v51, %s10424_s25 }
 0x9cc   :  { %v2135_v57 = vpop.permute.xlu0 %2134 }
 0x9cd   :  { %v2151_v14 = vmul.f32 %v2135_v57, %v8543_v15 }
 0x9cf   :  { %2174 = vrot.lane.b32.xlu1 %v2151_v14, %s10424_s25 }
 0x9ea   :  { %1835 = vadd.xlane.f32.xlu0 %v1834_v60 }
 0x9ee   :  { %1841 = vadd.xlane.f32.xlu0 %v1840_v19 }
 0x9f2   :  { %1844 = vadd.xlane.f32.xlu0 %v1843_v0 }
 0x9f3   :  { %1838 = vadd.xlane.f32.xlu1 %v1837_v4 }
 0x9f6   :  { %1850 = vadd.xlane.f32.xlu0 %v1849_v2 }
 0x9f7   :  { %1847 = vadd.xlane.f32.xlu1 %v1846_v52 }
 0xa29   :  { %v2161_v58 = vpop.permute.xlu0 %2160 }
 0xa2a   :  { %v2184_v17 = vsel %vm187_vm2, %v2161_v58, 0.0 }
 0xa2b   :  { %2185 = vadd.xlane.f32.xlu1 %v2184_v17 }
 0xa2d   :  { %v2163_v18 = vpop.permute.xlu0 %2162 }
 0xa2e   :  { %v2187_v20 = vsel %vm187_vm2, %v2163_v18, 0.0 }
 0xa2f   :  { %1853 = vadd.xlane.f32.xlu1 %v1852_v56  ;;  %2188 = vadd.xlane.f32.xlu0 %v2187_v20 }
 0xa31   :  { %v2165_v22 = vpop.permute.xlu0 %2164  ;;  %v2167_v5 = vpop.permute.xlu1 %2166 }
 0xa32   :  { %v2190_v21 = vsel %vm187_vm2, %v2165_v22, 0.0  ;;  %v2193_v23 = vsel %vm187_vm2, %v2167_v5, 0.0 }
 0xa33   :  { %1856 = vadd.xlane.f32.xlu1 %v1855_v3  ;;  %2191 = vadd.xlane.f32.xlu0 %v2190_v21 }
 0xa35   :  { %v2169_v61 = vpop.permute.xlu0 %2168 }
 0xa36   :  { %v2196_v24 = vsel %vm187_vm2, %v2169_v61, 0.0 }
 0xa37   :  { %2197 = vadd.xlane.f32.xlu1 %v2196_v24  ;;  %2194 = vadd.xlane.f32.xlu0 %v2193_v23 }
 0xa39   :  { %v2171_v25 = vpop.permute.xlu1 %2170 }
 0xa3a   :  { %v2199_v1 = vsel %vm187_vm2, %v2171_v25, 0.0 }
 0xa3b   :  { %2200 = vadd.xlane.f32.xlu0 %v2199_v1 }
 0xa3d   :  { %v2173_v35 = vpop.permute.xlu0 %2172 }
 0xa3e   :  { %v2202_v36 = vsel %vm187_vm2, %v2173_v35, 0.0 }
 0xa3f   :  { %2203 = vadd.xlane.f32.xlu1 %v2202_v36 }
 0xa41   :  { %v2175_v37 = vpop.permute.xlu1 %2174 }
 0xa42   :  { %v2205_v39 = vsel %vm187_vm2, %v2175_v37, 0.0 }
 0xa43   :  { %2206 = vadd.xlane.f32.xlu0 %v2205_v39 }
 0xa73   :  { %v1836_v59 = vpop.xlane.xlu0 %1835 }
 0xa74   :  { %v1869_v46 = vrot.slane %v1836_v59, %v8708_v38 }
 0xa77   :  { %v1842_v60 = vpop.xlane.xlu0 %1841 }
 0xa78   :  { %v1877_v4 = vrot.slane %v1842_v60, %v8708_v38 }
 0xa79   :  { %v1739_v40 = vpop.f32.mrf.mxu0 }
 0xa7a   :  { %8014 = vmatmul.mubr.msk.f32.vlgmr.msra.gmra.mxu1 %vm187_vm2, %v1739_v40 }
 0xa7b   :  { %v8010_v44 = vpop.f32.mrf.mxu0  ;;  %8023 = vmatprep.mubr.msk.f32.mxu1 %vm8382_vm1, %v8381_v12  ;;  %v1845_v42 = vpop.xlane.xlu0 %1844 }
 0xa7c   :  { %v1839_v62 = vpop.xlane.xlu1 %1838  ;;  %v1881_v58 = vrot.slane %v1845_v42, %v8708_v38 }
 0xa7d   :  { %v2011_v50 = vpop.f32.mrf.mxu0  ;;  %v1873_v19 = vrot.slane %v1839_v62, %v8708_v38 }
 0xa7f   :  { %v8020_v51 = vpop.f32.mrf.mxu0  ;;  %v1898_v47 = vsel %vm254_vm3, %v1873_v19, %v1869_v46  ;;  %v1851_v2 = vpop.xlane.xlu0 %1850 }
 0xa80   :  { %v1848_v0 = vpop.xlane.xlu1 %1847  ;;  %v1899_v49 = vsel %vm256_vm4, %v1877_v4, %v1898_v47  ;;  %v1889_v22 = vrot.slane %v1851_v2, %v8708_v38 }
 0xa81   :  { %v2362_v57 = vpop.f32.mrf.mxu0  ;;  %v1885_v17 = vrot.slane %v1848_v0, %v8708_v38  ;;  %v1900_v55 = vsel %vm258_vm5, %v1881_v58, %v1899_v49 }
 0xa83   :  { %v8030_v14 = vpop.f32.mrf.mxu0  ;;  %v1901_v20 = vsel %vm260_vm6, %v1885_v17, %v1900_v55 }
 0xa84   :  { %v1902_v61 = vsel %vm262_vm7, %v1889_v22, %v1901_v20 }
 0xab4   :  { %v2186_v52 = vpop.xlane.xlu1 %2185 }
 0xab5   :  { %v2219_v37 = vrot.slane %v2186_v52, %v8708_v38 }
 0xab8   :  { %v2189_v18 = vpop.xlane.xlu0 %2188  ;;  %v1854_v56 = vpop.xlane.xlu1 %1853 }
 0xab9   :  { %v1893_v43 = vrot.slane %v1854_v56, %v8708_v38  ;;  %v2223_v1 = vrot.slane %v2189_v18, %v8708_v38 }
 0xabb   :  { %v1903_v24 = vsel %vm264_vm8, %v1893_v43, %v1902_v61  ;;  %v2248_v44 = vsel %vm254_vm3, %v2223_v1, %v2219_v37 }
 0xabc   :  { %v2192_v3 = vpop.xlane.xlu0 %2191  ;;  %v1857_v21 = vpop.xlane.xlu1 %1856 }
 0xabd   :  { %v1897_v5 = vrot.slane %v1857_v21, %v8708_v38  ;;  %v2227_v35 = vrot.slane %v2192_v3, %v8708_v38 }
 0xabf   :  { %v1904_v23 = vsel %vm266_vm9, %v1897_v5, %v1903_v24  ;;  %v2249_v51 = vsel %vm256_vm4, %v2227_v35, %v2248_v44 }
 0xac0   :  { %v2195_v25 = vpop.xlane.xlu0 %2194  ;;  %1906 = vxpose.xlu1.b32.start.end [1/1] (short) (narrow) %v1904_v23, 8  ;;  %v2198_v36 = vpop.xlane.xlu1 %2197 }
 0xac1   :  { %v2231_v39 = vrot.slane %v2195_v25, %v8708_v38  ;;  %v2235_v14 = vrot.slane %v2198_v36, %v8708_v38 }
 0xac3   :  { %v2250_v60 = vsel %vm258_vm5, %v2231_v39, %v2249_v51 }
 0xac4   :  { %v2201_v40 = vpop.xlane.xlu0 %2200  ;;  %v2251_v42 = vsel %vm260_vm6, %v2235_v14, %v2250_v60 }
 0xac5   :  { %v2239_v62 = vrot.slane %v2201_v40, %v8708_v38 }
 0xac7   :  { %v2252_v0 = vsel %vm262_vm7, %v2239_v62, %v2251_v42 }
 0xac8   :  { %v2204_v59 = vpop.xlane.xlu1 %2203 }
 0xac9   :  { %v2243_v19 = vrot.slane %v2204_v59, %v8708_v38 }
 0xacb   :  { %v2253_v4 = vsel %vm264_vm8, %v2243_v19, %v2252_v0 }
 0xacc   :  { %v2207_v46 = vpop.xlane.xlu0 %2206 }
 0xacd   :  { %v2247_v47 = vrot.slane %v2207_v46, %v8708_v38 }
 0xacf   :  { %v2254_v49 = vsel %vm266_vm9, %v2247_v47, %v2253_v4 }
 0xad0   :  { %2256 = vxpose.xlu0.b32.start.end [1/1] (short) (narrow) %v2254_v49, 8 }
 0xb3a   :  { %v1812_v2 = vpop.f32.mrf.mxu1 }
 0xb3b   :  { %v1816_v52 = vadd.f32 %v1812_v2, %v9021_v48 }
 0xb3c   :  { %v8015_v58 = vpop.f32.mrf.mxu1  ;;  %v1922_v17 = vpop.trf.xlu1 }
 0xb3d   :  { %1817 = vst.msk [vmem:[#allocation2] sm:$0xff] %vm85_vm0, %v1816_v52  ;;  %v2012_v55 = vadd.f32 %v2011_v50, %v1922_v17 }
 0xb3f   :  { %v2015_v18 = vmul.f32 0.35355338, %v2012_v55 }
 0xb41   :  { %v2016_v56 = vadd.f32 %v2015_v18, %v8743_v53 }
 0xb43   :  { %v2017_v20 = vsel %vm187_vm2, %v2016_v56, -inf }
 0xb44   :  { %2018 = vmax.xlane.f32.xlu0 %v2017_v20 }
 0xb4c   :  { %v2272_v43 = vpop.trf.xlu0 }
 0xb4d   :  { %v2363_v22 = vadd.f32 %v2362_v57, %v2272_v43 }
 0xb4f   :  { %v2366_v3 = vmul.f32 0.35355338, %v2363_v22 }
 0xb51   :  { %v2367_v21 = vadd.f32 %v2366_v3, %v8743_v53 }
 0xb53   :  { %v2368_v5 = vsel %vm187_vm2, %v2367_v21, -inf }
 0xb54   :  { %2369 = vmax.xlane.f32.xlu1 %v2368_v5 }
 0xbcd   :  { %v2019_v48 = vpop.xlane.xlu0 %2018 }
 0xbce   :  { %v2020_v61 = vsub.f32 %v2016_v56, %v2019_v48 }
 0xbd0   :  { %v2021_v24 = vmul.f32 1.442695, %v2020_v61 }
 0xbd2   :  { %8310 = vpow2.f32 %v2021_v24 }
 0xbdd   :  { %v2370_v23 = vpop.xlane.xlu1 %2369 }
 0xbde   :  { %v2371_v50 = vsub.f32 %v2367_v21, %v2370_v23 }
 0xbdf   :  { %v8311_v25 = vpop.eup %8310 }
 0xbe0   :  { %v2372_v1 = vmul.f32 1.442695, %v2371_v50  ;;  %v2023_v35 = vsel %vm187_vm2, %v8311_v25, 0.0 }
 0xbe1   :  { %2024 = vadd.xlane.f32.xlu1 %v2023_v35 }
 0xbe2   :  { %8312 = vpow2.f32 %v2372_v1 }
 0xbef   :  { %v8313_v36 = vpop.eup %8312 }
 0xbf0   :  { %v2374_v57 = vsel %vm187_vm2, %v8313_v36, 0.0 }
 0xbf1   :  { %2375 = vadd.xlane.f32.xlu0 %v2374_v57 }
 0xbf2   :  { %2028 = vrot.lane.b32.xlu1 %v8543_v15, %s10425_s0 }
 0xbf6   :  { %2787 = vrot.lane.b32.xlu1 %v8543_v15, %s10393_s4 }
 0xbfa   :  { %2785 = vrot.lane.b32.xlu1 %v8543_v15, %s10426_s24 }
 0xbfe   :  { %2619 = vrot.lane.b32.xlu1 %v8757_v54, %s10427_s7 }
 0xc02   :  { %2623 = vrot.lane.b32.xlu1 %v8764_v7, %s10427_s7 }
 0xc06   :  { %2627 = vrot.lane.b32.xlu1 %v8771_v8, %s10427_s7 }
 0xc07   :  { %2379 = vrot.lane.b32.xlu0 %v8543_v15, %s10428_s29 }
 0xc0a   :  { %2631 = vrot.lane.b32.xlu1 %v8778_v9, %s10427_s7 }
 0xc0b   :  { %2617 = vrot.lane.b32.xlu0 %v8790_v28, %s10427_s7 }
 0xc0f   :  { %2621 = vrot.lane.b32.xlu0 %v8797_v29, %s10427_s7 }
 0xc13   :  { %2625 = vrot.lane.b32.xlu0 %v8804_v30, %s10427_s7 }
 0xc17   :  { %2629 = vrot.lane.b32.xlu0 %v8811_v31, %s10427_s7 }
 0xc6a   :  { %v2025_v53 = vpop.xlane.xlu1 %2024 }
 0xc6b   :  { %8314 = vrcp.f32 %v2025_v53 }
 0xc6e   :  { %v2029_v54 = vpop.permute.xlu1 %2028 }
 0xc6f   :  { %8022 = vmatpush3.msra.mxu1 %v2029_v54 }
 0xc70   :  { %8031 = vmatprep.subr.mxu1 %v8381_v12 }
 0xc72   :  { %v9186_v7 = vpop.permute.xlu1 %2787 }
 0xc76   :  { %v9188_v8 = vpop.permute.xlu1 %2785 }
 0xc78   :  { %v8315_v9 = vpop.eup %8314 }
 0xc79   :  { %v2027_v28 = vmul.f32 %v8315_v9, %v8311_v25 }
 0xc7a   :  { %v2376_v37 = vpop.xlane.xlu0 %2375  ;;  %v2620_v29 = vpop.permute.xlu1 %2619 }
 0xc7b   :  { %8316 = vrcp.f32 %v2376_v37  ;;  %v2642_v30 = vmul.f32 %v2620_v29, %v8543_v15  ;;  %8024 = vmatmul.mubr.msk.f32.vlgmr.msra.gmra.mxu1 %vm187_vm2, %v2027_v28 }
 0xc7c   :  { %8033 = vmatprep.mubr.msk.f32.mxu1 %vm8382_vm1, %v8381_v12 }
 0xc7d   :  { %2659 = vrot.lane.b32.xlu1 %v2642_v30, %s10426_s24 }
 0xc7e   :  { %v2380_v31 = vpop.permute.xlu0 %2379  ;;  %v2624_v39 = vpop.permute.xlu1 %2623 }
 0xc7f   :  { %v2644_v40 = vmul.f32 %v2624_v39, %v8543_v15  ;;  %8032 = vmatpush3.msra.mxu1 %v2380_v31 }
 0xc80   :  { %8041 = vmatprep.subr.mxu1 %v8381_v12 }
 0xc81   :  { %2663 = vrot.lane.b32.xlu1 %v2644_v40, %s10426_s24 }
 0xc82   :  { %v2618_v44 = vpop.permute.xlu0 %2617  ;;  %v2628_v51 = vpop.permute.xlu1 %2627 }
 0xc83   :  { %v2641_v14 = vmul.f32 %v2618_v44, %v8543_v15  ;;  %v2646_v59 = vmul.f32 %v2628_v51, %v8543_v15 }
 0xc85   :  { %2657 = vrot.lane.b32.xlu0 %v2641_v14, %s10426_s24  ;;  %2667 = vrot.lane.b32.xlu1 %v2646_v59, %s10426_s24 }
 0xc86   :  { %v2622_v60 = vpop.permute.xlu0 %2621  ;;  %v2632_v62 = vpop.permute.xlu1 %2631 }
 0xc87   :  { %v2643_v19 = vmul.f32 %v2622_v60, %v8543_v15  ;;  %v2648_v42 = vmul.f32 %v2632_v62, %v8543_v15 }
 0xc88   :  { %v8317_v46 = vpop.eup %8316 }
 0xc89   :  { %2661 = vrot.lane.b32.xlu0 %v2643_v19, %s10426_s24  ;;  %2671 = vrot.lane.b32.xlu1 %v2648_v42, %s10426_s24  ;;  %v2378_v0 = vmul.f32 %v8317_v46, %v8313_v36 }
 0xc8a   :  { %v2626_v47 = vpop.permute.xlu0 %2625 }
 0xc8b   :  { %v2645_v4 = vmul.f32 %v2626_v47, %v8543_v15  ;;  %8034 = vmatmul.mubr.msk.f32.vlgmr.msra.gmra.mxu1 %vm187_vm2, %v2378_v0 }
 0xc8c   :  { %8042 = vmatpush3.msra.mxu1 %v8835_v63  ;;  %8043 = vmatprep.mubr.msk.f32.mxu1 %vm8382_vm1, %v8381_v12 }
 0xc8d   :  { %2665 = vrot.lane.b32.xlu0 %v2645_v4, %s10426_s24  ;;  %8051 = vmatprep.subr.mxu1 %v8381_v12 }
 0xc8e   :  { %v2630_v49 = vpop.permute.xlu0 %2629 }
 0xc8f   :  { %v2647_v2 = vmul.f32 %v2630_v49, %v8543_v15 }
 0xc91   :  { %2669 = vrot.lane.b32.xlu0 %v2647_v2, %s10426_s24 }
 0xcef   :  { %v2660_v52 = vpop.permute.xlu1 %2659 }
 0xcf0   :  { %v2684_v58 = vsel %vm187_vm2, %v2660_v52, 0.0 }
 0xcf1   :  { %2685 = vadd.xlane.f32.xlu1 %v2684_v58 }
 0xcf3   :  { %v2664_v63 = vpop.permute.xlu1 %2663 }
 0xcf4   :  { %v2690_v3 = vsel %vm187_vm2, %v2664_v63, 0.0 }
 0xcf7   :  { %v2658_v17 = vpop.permute.xlu0 %2657  ;;  %v2668_v20 = vpop.permute.xlu1 %2667 }
 0xcf8   :  { %v2681_v55 = vsel %vm187_vm2, %v2658_v17, 0.0  ;;  %v2696_v48 = vsel %vm187_vm2, %v2668_v20, 0.0 }
 0xcf9   :  { %2682 = vadd.xlane.f32.xlu0 %v2681_v55  ;;  %v9260_v55 = vld [vmem:[%s10358_s2] sm:$0xff] }
 0xcfb   :  { %v2662_v18 = vpop.permute.xlu0 %2661  ;;  %v2672_v61 = vpop.permute.xlu1 %2671 }
 0xcfc   :  { %v2687_v56 = vsel %vm187_vm2, %v2662_v18, 0.0  ;;  %v2702_v24 = vsel %vm187_vm2, %v2672_v61, 0.0 }
 0xcfd   :  { %2688 = vadd.xlane.f32.xlu0 %v2687_v56 }
 0xcff   :  { %v2666_v43 = vpop.permute.xlu0 %2665 }
 0xd00   :  { %v2693_v22 = vsel %vm187_vm2, %v2666_v43, 0.0 }
 0xd01   :  { %2694 = vadd.xlane.f32.xlu1 %v2693_v22  ;;  %2691 = vadd.xlane.f32.xlu0 %v2690_v3 }
 0xd03   :  { %v2670_v21 = vpop.permute.xlu0 %2669 }
 0xd04   :  { %v2699_v5 = vsel %vm187_vm2, %v2670_v21, 0.0 }
 0xd05   :  { %2700 = vadd.xlane.f32.xlu1 %v2699_v5  ;;  %2697 = vadd.xlane.f32.xlu0 %v2696_v48 }
 0xd09   :  { %2703 = vadd.xlane.f32.xlu0 %v2702_v24 }
 0xd3b   :  { %v2100_v23 = vpop.f32.mrf.mxu1 }
 0xd3c   :  { %8044 = vmatmul.mubr.msk.f32.vlgmr.msra.gmra.mxu1 %vm187_vm2, %v2100_v23 }
 0xd3d   :  { %v8025_v50 = vpop.f32.mrf.mxu1  ;;  %8053 = vmatprep.mubr.msk.f32.mxu1 %vm8382_vm1, %v8381_v12 }
 0xd4b   :  { %v2451_v25 = vpop.f32.mrf.mxu1 }
 0xd4c   :  { %8039 = vmatmul.mubr.msk.f32.vlgmr.msra.gmra.mxu0 %vm187_vm2, %v2451_v25 }
 0xd4d   :  { %8047 = vmatpush3.xpose.msk.msra.mxu0 %vm187_vm2, %v9186_v7  ;;  %v8035_v1 = vpop.f32.mrf.mxu1  ;;  %8048 = vmatprep.mubr.msk.f32.mxu0 %vm8382_vm1, %v8381_v12 }
 0xd4e   :  { %8056 = vmatprep.subr.mxu0 %v8381_v12 }
 0xd50   :  { %8049 = vmatmul.mubr.msk.f32.vlgmr.msra.gmra.mxu0 %vm187_vm2, %v9188_v8 }
 0xd51   :  { %8057 = vmatpush3.msra.mxu0 %v8987_v33  ;;  %8058 = vmatprep.mubr.msk.f32.mxu0 %vm8382_vm1, %v8381_v12 }
 0xd52   :  { %8066 = vmatprep.subr.mxu0 %v8381_v12 }
 0xd7a   :  { %v2686_v36 = vpop.xlane.xlu1 %2685 }
 0xd7b   :  { %v2720_v7 = vrot.slane %v2686_v36, %v8708_v38 }
 0xd82   :  { %v2683_v35 = vpop.xlane.xlu0 %2682 }
 0xd83   :  { %v2716_v53 = vrot.slane %v2683_v35, %v8708_v38 }
 0xd85   :  { %v2745_v8 = vsel %vm254_vm3, %v2720_v7, %v2716_v53 }
 0xd86   :  { %v2689_v57 = vpop.xlane.xlu0 %2688 }
 0xd87   :  { %v2724_v54 = vrot.slane %v2689_v57, %v8708_v38 }
 0xd89   :  { %v2746_v37 = vsel %vm256_vm4, %v2724_v54, %v2745_v8 }
 0xd8a   :  { %v2692_v9 = vpop.xlane.xlu0 %2691  ;;  %v2695_v28 = vpop.xlane.xlu1 %2694 }
 0xd8b   :  { %v2728_v33 = vrot.slane %v2692_v9, %v8708_v38  ;;  %v2732_v29 = vrot.slane %v2695_v28, %v8708_v38 }
 0xd8d   :  { %v2747_v30 = vsel %vm258_vm5, %v2728_v33, %v2746_v37 }
 0xd8e   :  { %v2698_v31 = vpop.xlane.xlu0 %2697  ;;  %v2701_v39 = vpop.xlane.xlu1 %2700  ;;  %v2748_v44 = vsel %vm260_vm6, %v2732_v29, %v2747_v30 }
 0xd8f   :  { %v2736_v40 = vrot.slane %v2698_v31, %v8708_v38  ;;  %v2740_v51 = vrot.slane %v2701_v39, %v8708_v38 }
 0xd91   :  { %v2749_v14 = vsel %vm262_vm7, %v2736_v40, %v2748_v44 }
 0xd92   :  { %v2704_v59 = vpop.xlane.xlu0 %2703  ;;  %v2750_v62 = vsel %vm264_vm8, %v2740_v51, %v2749_v14 }
 0xd93   :  { %v2744_v60 = vrot.slane %v2704_v59, %v8708_v38 }
 0xd95   :  { %v2751_v19 = vsel %vm266_vm9, %v2744_v60, %v2750_v62 }
 0xd96   :  { %2753 = vxpose.xlu1.b32.start.end [1/1] (short) (narrow) %v2751_v19, 8 }
 0xdb4   :  { %3048 = vrot.lane.b32.xlu1 %v8893_v41, %s10405_s27 }
 0xdfc   :  { %v2597_v42 = vpop.f32.mrf.mxu1 }
 0xdfe   :  { %v8045_v46 = vpop.f32.mrf.mxu1 }
 0xe0c   :  { %v2524_v0 = vpop.f32.mrf.mxu0 }
 0xe0d   :  { %v9255_v47 = vadd.f32 %v2597_v42, %v2524_v0 }
 0xe0e   :  { %v8040_v4 = vpop.f32.mrf.mxu0 }
 0xe10   :  { %v2859_v49 = vpop.f32.mrf.mxu0 }
 0xe12   :  { %v8050_v2 = vpop.f32.mrf.mxu0  ;;  %v2769_v52 = vpop.trf.xlu1 }
 0xe13   :  { %v2860_v58 = vadd.f32 %v2859_v49, %v2769_v52 }
 0xe15   :  { %v2863_v17 = vmul.f32 0.35355338, %v2860_v58 }
 0xe17   :  { %v2864_v63 = vadd.f32 %v9260_v55, %v2863_v17 }
 0xe19   :  { %v2865_v41 = vsel %vm187_vm2, %v2864_v63, -inf }
 0xe1a   :  { %2866 = vmax.xlane.f32.xlu0 %v2865_v41 }
 0xe30   :  { %2876 = vrot.lane.b32.xlu0 %v8543_v15, %s10429_s28 }
 0xe34   :  { %3212 = vrot.lane.b32.xlu0 %v8543_v15, %s10430_s21 }
 0xea3   :  { %v2867_v18 = vpop.xlane.xlu0 %2866 }
 0xea4   :  { %v2868_v56 = vsub.f32 %v2864_v63, %v2867_v18 }
 0xea6   :  { %v2869_v20 = vmul.f32 1.442695, %v2868_v56 }
 0xea7   :  { %v2877_v43 = vpop.permute.xlu0 %2876 }
 0xea8   :  { %8318 = vpow2.f32 %v2869_v20  ;;  %8052 = vmatpush3.msra.mxu1 %v2877_v43 }
 0xea9   :  { %8061 = vmatprep.subr.mxu1 %v8381_v12 }
 0xeab   :  { %v3213_v21 = vpop.permute.xlu0 %3212 }
 0xeb5   :  { %v8319_v22 = vpop.eup %8318 }
 0xeb6   :  { %v2871_v3 = vsel %vm187_vm2, %v8319_v22, 0.0 }
 0xeb7   :  { %2872 = vadd.xlane.f32.xlu0 %v2871_v3 }
 0xecd   :  { %3210 = vrot.lane.b32.xlu0 %v8543_v15, %s10403_s1 }
 0xed1   :  { %3042 = vrot.lane.b32.xlu0 %v8914_v34, %s10405_s27 }
 0xed5   :  { %3044 = vrot.lane.b32.xlu0 %v8921_v6, %s10405_s27 }
 0xed9   :  { %3046 = vrot.lane.b32.xlu0 %v8928_v13, %s10405_s27 }
 0xedd   :  { %3050 = vrot.lane.b32.xlu0 %v8935_v16, %s10405_s27 }
 0xee1   :  { %3052 = vrot.lane.b32.xlu0 %v8942_v26, %s10405_s27 }
 0xee5   :  { %3054 = vrot.lane.b32.xlu0 %v8949_v27, %s10405_s27 }
 0xee9   :  { %3056 = vrot.lane.b32.xlu0 %v8956_v32, %s10405_s27  ;;  %v3049_v32 = vpop.permute.xlu1 %3048  ;;  %s10433_s27 = smov 8  }
 0xeea   :  { %v3069_v50 = vmul.f32 %v3049_v32, %v8543_v15 }
 0xf40   :  { %v2873_v34 = vpop.xlane.xlu0 %2872 }
 0xf41   :  { %8320 = vrcp.f32 %v2873_v34 }
 0xf44   :  { %v3211_v5 = vpop.permute.xlu0 %3210 }
 0xf48   :  { %v3043_v6 = vpop.permute.xlu0 %3042 }
 0xf49   :  { %v3066_v48 = vmul.f32 %v3043_v6, %v8543_v15 }
 0xf4b   :  { %3082 = vrot.lane.b32.xlu0 %v3066_v48, %s10403_s1 }
 0xf4c   :  { %v3045_v13 = vpop.permute.xlu0 %3044 }
 0xf4d   :  { %v3067_v16 = vmul.f32 %v3045_v13, %v8543_v15 }
 0xf4e   :  { %v8321_v61 = vpop.eup %8320 }
 0xf4f   :  { %3084 = vrot.lane.b32.xlu0 %v3067_v16, %s10403_s1  ;;  %v2875_v26 = vmul.f32 %v8321_v61, %v8319_v22 }
 0xf50   :  { %v3047_v27 = vpop.permute.xlu0 %3046 }
 0xf51   :  { %v3068_v24 = vmul.f32 %v3047_v27, %v8543_v15  ;;  %8054 = vmatmul.mubr.msk.f32.vlgmr.msra.gmra.mxu1 %vm187_vm2, %v2875_v26 }
 0xf52   :  { %8062 = vmatpush3.xpose.msk.msra.mxu1 %vm187_vm2, %v3213_v21  ;;  %8063 = vmatprep.mubr.msk.f32.mxu1 %vm8382_vm1, %v8381_v12 }
 0xf53   :  { %3086 = vrot.lane.b32.xlu0 %v3068_v24, %s10403_s1  ;;  %8071 = vmatprep.subr.mxu1 %v8381_v12 }
 0xf54   :  { %v3051_v23 = vpop.permute.xlu0 %3050 }
 0xf55   :  { %v3070_v25 = vmul.f32 %v3051_v23, %v8543_v15  ;;  %8064 = vmatmul.mubr.msk.f32.vlgmr.msra.gmra.mxu1 %vm187_vm2, %v3211_v5 }
 0xf56   :  { %8072 = vmatpush3.msra.mxu1 %v9102_v45  ;;  %8073 = vmatprep.mubr.msk.f32.mxu1 %vm8382_vm1, %v8381_v12 }
 0xf57   :  { %3090 = vrot.lane.b32.xlu1 %v3070_v25, %s10403_s1  ;;  %3088 = vrot.lane.b32.xlu0 %v3069_v50, %s10403_s1 }
 0xf58   :  { %v3053_v1 = vpop.permute.xlu0 %3052 }
 0xf59   :  { %v3071_v35 = vmul.f32 %v3053_v1, %v8543_v15 }
 0xf5b   :  { %3092 = vrot.lane.b32.xlu0 %v3071_v35, %s10403_s1 }
 0xf5c   :  { %v3055_v36 = vpop.permute.xlu0 %3054 }
 0xf5d   :  { %v3072_v57 = vmul.f32 %v3055_v36, %v8543_v15 }
 0xf5f   :  { %3094 = vrot.lane.b32.xlu1 %v3072_v57, %s10403_s1 }
 0xf60   :  { %v3057_v53 = vpop.permute.xlu0 %3056 }
 0xf61   :  { %v3073_v45 = vmul.f32 %v3057_v53, %v8543_v15 }
 0xf63   :  { %3096 = vrot.lane.b32.xlu0 %v3073_v45, %s10403_s1  ;;  %v7645_v45 = vld [vmem:[%s10360_s6] ss:$0 sm:$0xff] }
 0xfbd   :  { %v3083_v54 = vpop.permute.xlu0 %3082 }
 0xfbe   :  { %v3106_v7 = vsel %vm187_vm2, %v3083_v54, 0.0 }
 0xfbf   :  { %3107 = vadd.xlane.f32.xlu1 %v3106_v7 }
 0xfc1   :  { %v3085_v9 = vpop.permute.xlu0 %3084 }
 0xfc2   :  { %v3109_v28 = vsel %vm187_vm2, %v3085_v9, 0.0 }
 0xfc3   :  { %3110 = vadd.xlane.f32.xlu0 %v3109_v28 }
 0xfc5   :  { %v3087_v8 = vpop.permute.xlu0 %3086 }
 0xfc6   :  { %v3112_v33 = vsel %vm187_vm2, %v3087_v8, 0.0 }
 0xfc7   :  { %3113 = vadd.xlane.f32.xlu0 %v3112_v33 }
 0xfc9   :  { %v3089_v37 = vpop.permute.xlu0 %3088  ;;  %v3091_v29 = vpop.permute.xlu1 %3090 }
 0xfca   :  { %v3115_v30 = vsel %vm187_vm2, %v3089_v37, 0.0  ;;  %v3118_v31 = vsel %vm187_vm2, %v3091_v29, 0.0 }
 0xfcb   :  { %3116 = vadd.xlane.f32.xlu1 %v3115_v30  ;;  %3119 = vadd.xlane.f32.xlu0 %v3118_v31 }
 0xfcd   :  { %v3093_v39 = vpop.permute.xlu0 %3092 }
 0xfce   :  { %v3121_v40 = vsel %vm187_vm2, %v3093_v39, 0.0 }
 0xfcf   :  { %3122 = vadd.xlane.f32.xlu1 %v3121_v40 }
 0xfd1   :  { %v3095_v44 = vpop.permute.xlu1 %3094 }
 0xfd2   :  { %v3124_v51 = vsel %vm187_vm2, %v3095_v44, 0.0 }
 0xfd3   :  { %3125 = vadd.xlane.f32.xlu0 %v3124_v51 }
 0xfd5   :  { %v3097_v14 = vpop.permute.xlu0 %3096 }
 0xfd6   :  { %v3127_v59 = vsel %vm187_vm2, %v3097_v14, 0.0 }
 0xfd7   :  { %3128 = vadd.xlane.f32.xlu1 %v3127_v59 }
0x1011   :  { %v2948_v60 = vpop.f32.mrf.mxu1 }
0x1012   :  { %8059 = vmatmul.mubr.msk.f32.vlgmr.msra.gmra.mxu0 %vm187_vm2, %v2948_v60  ;;  %v7646_v60 = vld [vmem:[%s10361_s8] ss:$0 sm:$0xff] }
0x1013   :  { %v8055_v62 = vpop.f32.mrf.mxu1  ;;  %8068 = vmatprep.mubr.msk.f32.mxu0 %vm8382_vm1, %v8381_v12 }
0x1015   :  { %v3284_v19 = vpop.f32.mrf.mxu1 }
0x1017   :  { %v8065_v42 = vpop.f32.mrf.mxu1 }
0x1048   :  { %v3108_v0 = vpop.xlane.xlu1 %3107 }
0x1049   :  { %v3141_v17 = vrot.slane %v3108_v0, %v8708_v38 }
0x104c   :  { %v3111_v46 = vpop.xlane.xlu0 %3110 }
0x104d   :  { %v3145_v2 = vrot.slane %v3111_v46, %v8708_v38 }
0x104f   :  { %v3170_v18 = vsel %vm254_vm3, %v3145_v2, %v3141_v17 }
0x1050   :  { %v3114_v4 = vpop.xlane.xlu0 %3113 }
0x1051   :  { %v3149_v52 = vrot.slane %v3114_v4, %v8708_v38 }
0x1053   :  { %v3171_v56 = vsel %vm256_vm4, %v3149_v52, %v3170_v18 }
0x1054   :  { %v3117_v49 = vpop.xlane.xlu1 %3116  ;;  %v3120_v58 = vpop.xlane.xlu0 %3119 }
0x1055   :  { %v3153_v63 = vrot.slane %v3117_v49, %v8708_v38  ;;  %v3157_v20 = vrot.slane %v3120_v58, %v8708_v38 }
0x1057   :  { %v3172_v22 = vsel %vm258_vm5, %v3153_v63, %v3171_v56 }
0x1058   :  { %v3123_v41 = vpop.xlane.xlu1 %3122  ;;  %v3173_v34 = vsel %vm260_vm6, %v3157_v20, %v3172_v22  ;;  %v3512_v22 = vld [vmem:[%s10363_s10 + $0x10] sm:$0xff] }
0x1059   :  { %v3161_v3 = vrot.slane %v3123_v41, %v8708_v38 }
0x105b   :  { %v3174_v6 = vsel %vm262_vm7, %v3161_v3, %v3173_v34  ;;  %v3510_v3 = vld [vmem:[%s10363_s10] sm:$0xff]  ;;  %v3610_v34 = vld [vmem:[%s10364_s12 + $0x30] sm:$0xff] }
0x105c   :  { %v3126_v43 = vpop.xlane.xlu0 %3125 }
0x105d   :  { %v3165_v21 = vrot.slane %v3126_v43, %v8708_v38  ;;  %v3513_v43 = vld [vmem:[%s10363_s10 + $0x18] sm:$0xff] }
0x105f   :  { %v3175_v13 = vsel %vm264_vm8, %v3165_v21, %v3174_v6  ;;  %v3611_v21 = vld [vmem:[%s10364_s12 + $0x38] sm:$0xff]  ;;  %v3608_v6 = vld [vmem:[%s10364_s12 + $0x20] sm:$0xff] }
0x1060   :  { %v3129_v5 = vpop.xlane.xlu1 %3128  ;;  %8087 = vmatprep.subr.mxu1 %v3611_v21 }
0x1061   :  { %v3169_v48 = vrot.slane %v3129_v5, %v8708_v38  ;;  %v3609_v5 = vld [vmem:[%s10364_s12 + $0x28] sm:$0xff] }
0x1063   :  { %v3176_v16 = vsel %vm266_vm9, %v3169_v48, %v3175_v13 }
0x1064   :  { %3178 = vxpose.xlu0.b32.start.end [1/1] (short) (narrow) %v3176_v16, 8 }
0x10d2   :  { %v3021_v61 = vpop.f32.mrf.mxu0 }
0x10d3   :  { %v3025_v26 = vadd.f32 %v3021_v61, %v9255_v47  ;;  %v3452_v47 = vld [vmem:[#allocation2] sm:$0xff] }
0x10d4   :  { %v8060_v27 = vpop.f32.mrf.mxu0  ;;  %v3461_v54 = vadd.f32 %v7645_v45, %v3452_v47 }
0x10d6   :  { %v3463_v7 = vadd.f32 %v3461_v54, %v8526_v10 }
0x10d8   :  { %v3467_v9 = vsel %vm85_vm0, %v3463_v7, 0.0 }
0x10e0   :  { %v3194_v24 = vpop.trf.xlu0 }
0x10e1   :  { %v3285_v32 = vadd.f32 %v3284_v19, %v3194_v24  ;;  %v7647_v19 = vld [vmem:[%s10362_s9] ss:$0 sm:$0xff] }
0x10e3   :  { %v3288_v23 = vmul.f32 0.35355338, %v3285_v32  ;;  %v3607_v32 = vld [vmem:[%s10364_s12 + $0x18] sm:$0xff] }
0x10e5   :  { %v3289_v50 = vadd.f32 %v9260_v55, %v3288_v23  ;;  %v3606_v23 = vld [vmem:[%s10364_s12 + $0x10] sm:$0xff] }
0x10e7   :  { %v3290_v25 = vsel %vm187_vm2, %v3289_v50, -inf }
0x10e8   :  { %3291 = vmax.xlane.f32.xlu1 %v3290_v25  ;;  %v3604_v25 = vld [vmem:[%s10364_s12] sm:$0xff] }
0x1171   :  { %v3292_v1 = vpop.xlane.xlu1 %3291 }
0x1172   :  { %v3293_v35 = vsub.f32 %v3289_v50, %v3292_v1  ;;  %v3605_v50 = vld [vmem:[%s10364_s12 + $0x8] sm:$0xff]  ;;  %v7648_v1 = vld [vmem:[%s10365_s11] ss:$0 sm:$0xff] }
0x1174   :  { %v3294_v36 = vmul.f32 1.442695, %v3293_v35 }
0x1176   :  { %8322 = vpow2.f32 %v3294_v36 }
0x1183   :  { %v8323_v57 = vpop.eup %8322 }
0x1184   :  { %v3296_v53 = vsel %vm187_vm2, %v8323_v57, 0.0 }
0x1185   :  { %3297 = vadd.xlane.f32.xlu1 %v3296_v53 }
0x1196   :  { %3301 = vrot.lane.b32.xlu1 %v8543_v15, %s10401_s22  ;;  %s10431_s22 = smov 88  }
0x11ba   :  { %3468 = vadd.xlane.f32.xlu1 %v3467_v9 }
0x120e   :  { %v3298_v28 = vpop.xlane.xlu1 %3297 }
0x120f   :  { %8324 = vrcp.f32 %v3298_v28 }
0x1212   :  { %v3302_v8 = vpop.permute.xlu1 %3301 }
0x1213   :  { %8067 = vmatpush3.msra.mxu0 %v3302_v8 }
0x1214   :  { %8076 = vmatprep.subr.mxu0 %v3513_v43 }
0x121c   :  { %v8325_v33 = vpop.eup %8324 }
0x121d   :  { %v3300_v37 = vmul.f32 %v8325_v33, %v8323_v57 }
0x121f   :  { %8069 = vmatmul.mubr.msk.f32.vlgmr.msra.gmra.mxu0 %vm187_vm2, %v3300_v37 }
0x1220   :  { %8077 = vmatpush3.msra.mxu0 %v3513_v43 }
0x1221   :  { %8078 = vmatprep.subr.mxu0 %v3512_v22 }
0x1222   :  { %8079 = vmatpush3.msra.mxu0 %v3512_v22 }
0x1243   :  { %v3469_v15 = vpop.xlane.xlu1 %3468 }
0x1244   :  { %v3474_v29 = vmul.f32 0.03125, %v3469_v15 }
0x1246   :  { %v3476_v30 = vsub.f32 %v3463_v7, %v3474_v29  ;;  %v7651_v7 = vld [vmem:[%s10366_s13] ss:$0 sm:$0xff] }
0x1248   :  { %v3478_v31 = vmul.f32 %v3476_v30, %v3476_v30 }
0x124a   :  { %v3480_v39 = vsel %vm85_vm0, %v3478_v31, 0.0 }
0x124b   :  { %3481 = vadd.xlane.f32.xlu1 %v3480_v39 }
0x12d4   :  { %v3482_v40 = vpop.xlane.xlu1 %3481 }
0x12d5   :  { %v3486_v10 = vmul.f32 0.03125, %v3482_v40 }
0x12d7   :  { %v3488_v44 = vadd.f32 1e-06, %v3486_v10 }
0x12d9   :  { %8326 = vrsqrt.f32 %v3488_v44 }
0x12df   :  { %v3373_v51 = vpop.f32.mrf.mxu0 }
0x12e0   :  { %8074 = vmatmul.mubr.msk.f32.vlgmr.msra.gmra.mxu1 %vm187_vm2, %v3373_v51 }
0x12e1   :  { %v8070_v14 = vpop.f32.mrf.mxu0  ;;  %8088 = vmatpush3.msra.mxu1 %v3611_v21  ;;  %v7661_v21 = vld [vmem:[%s10422_s26 + $0x1] ss:$0 sm:$0xff] }
0x12e2   :  { %8089 = vmatprep.subr.mxu1 %v3610_v34 }
0x12e3   :  { %8090 = vmatpush3.msra.mxu1 %v3610_v34 }
0x12e4   :  { %8091 = vmatprep.subr.mxu1 %v3609_v5 }
0x12e5   :  { %8092 = vmatpush3.msra.mxu1 %v3609_v5 }
0x12e6   :  { %v8327_v59 = vpop.eup %8326  ;;  %8093 = vmatprep.subr.mxu1 %v3608_v6 }
0x12e7   :  { %v3492_v62 = vmul.f32 %v8327_v59, %v3476_v30  ;;  %8094 = vmatpush3.msra.mxu1 %v3608_v6 }
0x12e8   :  { %8095 = vmatprep.subr.mxu1 %v3607_v32 }
0x12e9   :  { %v3500_v42 = vmul.f32 %v7646_v60, %v3492_v62  ;;  %8096 = vmatpush3.msra.mxu1 %v3607_v32  ;;  %v7659_v62 = vld [vmem:[%s10419_s23 + $0x38] sm:$0xff]  ;;  %v9505_v32 = vld [vmem:[%s10423_s30 + $0x168] sm:$0xff] }
0x12ea   :  { %8097 = vmatprep.subr.mxu1 %v3606_v23 }
0x12eb   :  { %v9357_v46 = vadd.f32 %v7647_v19, %v3500_v42  ;;  %8098 = vmatpush3.msra.mxu1 %v3606_v23  ;;  %v7657_v42 = vld [vmem:[%s10419_s23 + $0x28] sm:$0xff]  ;;  %v9512_v23 = vld [vmem:[%s10423_s30 + $0x178] sm:$0xff] }
0x12ec   :  { %8099 = vmatprep.subr.mxu1 %v3605_v50 }
0x12ed   :  { %8084 = vmatprep.mubr.msk.f32.mxu0 %vm85_vm0, %v9357_v46  ;;  %8100 = vmatpush3.msra.mxu1 %v3605_v50 }
0x12ee   :  { %8101 = vmatprep.subr.mxu1 %v3604_v25 }
0x12ef   :  { %8102 = vmatpush3.msra.mxu1 %v3604_v25 }
0x12f0   :  { %8122 = vmatprep.subr.mxu1 %v8381_v12 }
0x13a0   :  { %v3446_v0 = vpop.f32.mrf.mxu1 }
0x13a1   :  { %v3450_v4 = vadd.f32 %v3446_v0, %v3025_v26 }
0x13a2   :  { %v8075_v49 = vpop.f32.mrf.mxu1 }
0x13a3   :  { %3451 = vst.msk [vmem:[#allocation2 + $0x8] sm:$0xff] %vm85_vm0, %v3450_v4 }
0x13aa   :  { %v3453_v2 = vld [vmem:[#allocation2 + $0x8] sm:$0xff] }
0x13ab   :  { %v3462_v52 = vadd.f32 %v7645_v45, %v3453_v2 }
0x13ad   :  { %v3464_v58 = vadd.f32 %v3462_v52, %v8528_v11  ;;  %v3511_v11 = vld [vmem:[%s10363_s10 + $0x8] sm:$0xff] }
0x13ae   :  { %8080 = vmatprep.subr.mxu0 %v3511_v11 }
0x13af   :  { %v3470_v17 = vsel %vm85_vm0, %v3464_v58, 0.0  ;;  %8081 = vmatpush3.msra.mxu0 %v3511_v11 }
0x13b0   :  { %3471 = vadd.xlane.f32.xlu0 %v3470_v17  ;;  %8082 = vmatprep.subr.mxu0 %v3510_v3 }
0x13b1   :  { %8083 = vmatpush3.msra.mxu0 %v3510_v3 }
0x13b2   :  { %8106 = vmatprep.subr.mxu0 %v7659_v62 }
0x1439   :  { %v3472_v63 = vpop.xlane.xlu0 %3471 }
0x143a   :  { %v3475_v41 = vmul.f32 0.03125, %v3472_v63  ;;  %v7654_v63 = vld [vmem:[%s10367_s14] ss:$0 sm:$0xff] }
0x143c   :  { %v3477_v18 = vsub.f32 %v3464_v58, %v3475_v41 }
0x143e   :  { %v3479_v56 = vmul.f32 %v3477_v18, %v3477_v18 }
0x1440   :  { %v3483_v20 = vsel %vm85_vm0, %v3479_v56, 0.0 }
0x1441   :  { %3484 = vadd.xlane.f32.xlu1 %v3483_v20 }
0x14ca   :  { %v3485_v48 = vpop.xlane.xlu1 %3484 }
0x14cb   :  { %v3487_v13 = vmul.f32 0.03125, %v3485_v48 }
0x14cd   :  { %v3489_v16 = vadd.f32 1e-06, %v3487_v13  ;;  %v9461_v13 = vld [vmem:[%s10423_s30 + $0x150] sm:$0xff] }
0x14cf   :  { %8328 = vrsqrt.f32 %v3489_v16  ;;  %v9470_v16 = vld [vmem:[%s10423_s30 + $0x160] sm:$0xff] }
0x14dc   :  { %v8329_v61 = vpop.eup %8328 }
0x14dd   :  { %v3493_v26 = vmul.f32 %v8329_v61, %v3477_v18  ;;  %v7655_v18 = vld [vmem:[%s10368_s15] ss:$0 sm:$0xff] }
0x14de   :  { %v9475_v61 = vld [vmem:[%s10423_s30 + $0x140] sm:$0xff] }
0x14df   :  { %v3501_v27 = vmul.f32 %v7646_v60, %v3493_v26  ;;  %v9484_v26 = vld [vmem:[%s10423_s30 + $0x170] sm:$0xff] }
0x14e1   :  { %v3509_v24 = vadd.f32 %v7647_v19, %v3501_v27  ;;  %v7658_v19 = vld [vmem:[%s10419_s23 + $0x30] sm:$0xff]  ;;  %v9489_v27 = vld [vmem:[%s10423_s30 + $0x148] sm:$0xff] }
0x14e3   :  { %8085 = vmatmul.mubr.msk.f32.vlgmr.msra.gmra.mxu0 %vm85_vm0, %v3509_v24 }
0x14e4   :  { %8107 = vmatpush3.msra.mxu0 %v7659_v62 }
0x14e5   :  { %8108 = vmatprep.subr.mxu0 %v7658_v19 }
0x14e6   :  { %8109 = vmatpush3.msra.mxu0 %v7658_v19  ;;  %v9576_v19 = vld [vmem:[%s10423_s30 + $0x120] sm:$0xff] }
0x14e7   :  { %8110 = vmatprep.subr.mxu0 %v7657_v42 }
0x14e8   :  { %8111 = vmatpush3.msra.mxu0 %v7657_v42 }
0x15a3   :  { %v8086_v35 = vpop.f32.mrf.mxu0 }
0x15a4   :  { %v3599_v36 = vadd.f32 %v8086_v35, %v7648_v1 }
0x15a5   :  { %v3593_v57 = vpop.f32.mrf.mxu0 }
0x15a6   :  { %v3594_v53 = vadd.f32 %v7648_v1, %v3593_v57  ;;  %v3603_v45 = vmax.f32 %v3599_v36, 0.0 }
0x15a8   :  { %v3602_v47 = vmax.f32 %v3594_v53, 0.0 }
0x15aa   :  { %8103 = vmatprep.mubr.msk.f32.mxu1 %vm3619_vm10, %v3602_v47 }
0x15ab   :  { %8104 = vmatmul.mubr.msk.f32.vlgmr.msra.gmra.mxu1 %vm3619_vm10, %v3603_v45 }
0x15ac   :  { %8124 = vmatprep.mubr.msk.f32.mxu1 %vm8382_vm1, %v8381_v12 }
0x166b   :  { %v8105_v54 = vpop.f32.mrf.mxu1 }
0x166c   :  { %v3698_v28 = vadd.f32 %v8105_v54, %v7651_v7 }
0x166d   :  { %v3692_v9 = vpop.f32.mrf.mxu1 }
0x166e   :  { %v3693_v8 = vadd.f32 %v7651_v7, %v3692_v9  ;;  %v3702_v37 = vadd.f32 %v3698_v28, %v3509_v24  ;;  %v9498_v24 = vld [vmem:[%s10423_s30 + $0x158] sm:$0xff] }
0x1670   :  { %v3701_v33 = vadd.f32 %v3693_v8, %v9357_v46  ;;  %v3708_v29 = vsel %vm85_vm0, %v3702_v37, 0.0  ;;  %v7656_v46 = vld [vmem:[%s10419_s23 + $0x20] sm:$0xff]  ;;  %s10436_s23 = smov 104  }
0x1671   :  { %8112 = vmatprep.subr.mxu0 %v7656_v46 }
0x1672   :  { %v3705_v15 = vsel %vm85_vm0, %v3701_v33, 0.0  ;;  %8113 = vmatpush3.msra.mxu0 %v7656_v46 }
0x1673   :  { %3706 = vadd.xlane.f32.xlu1 %v3705_v15  ;;  %8117 = vmatprep.subr.mxu0 %v8381_v12 }
0x1677   :  { %3709 = vadd.xlane.f32.xlu1 %v3708_v29 }
0x16fc   :  { %v3707_v30 = vpop.xlane.xlu1 %3706 }
0x16fd   :  { %v3711_v31 = vmul.f32 0.03125, %v3707_v30 }
0x16ff   :  { %v3713_v39 = vsub.f32 %v3701_v33, %v3711_v31  ;;  %v9546_v31 = vld [vmem:[%s10423_s30 + $0x100] sm:$0xff] }
0x1700   :  { %v3710_v40 = vpop.xlane.xlu1 %3709 }
0x1701   :  { %v3712_v10 = vmul.f32 0.03125, %v3710_v40  ;;  %v3715_v44 = vmul.f32 %v3713_v39, %v3713_v39  ;;  %v9553_v40 = vld [vmem:[%s10423_s30 + $0x110] sm:$0xff] }
0x1703   :  { %v3714_v51 = vsub.f32 %v3702_v37, %v3712_v10  ;;  %v3717_v14 = vsel %vm85_vm0, %v3715_v44, 0.0 }
0x1704   :  { %3718 = vadd.xlane.f32.xlu1 %v3717_v14 }
0x1705   :  { %v3716_v59 = vmul.f32 %v3714_v51, %v3714_v51 }
0x1707   :  { %v3720_v60 = vsel %vm85_vm0, %v3716_v59, 0.0 }
0x1708   :  { %3721 = vadd.xlane.f32.xlu1 %v3720_v60  ;;  %v9569_v60 = vld [vmem:[%s10423_s30 + $0x108] sm:$0xff] }
0x178d   :  { %v3719_v0 = vpop.xlane.xlu1 %3718 }
0x178e   :  { %v3723_v4 = vmul.f32 0.03125, %v3719_v0  ;;  %v9584_v0 = vld [vmem:[%s10423_s30 + $0x128] sm:$0xff] }
0x1790   :  { %v3725_v49 = vadd.f32 1e-06, %v3723_v4 }
0x1791   :  { %v3722_v2 = vpop.xlane.xlu1 %3721 }
0x1792   :  { %8330 = vrsqrt.f32 %v3725_v49  ;;  %v3724_v52 = vmul.f32 0.03125, %v3722_v2  ;;  %v9592_v2 = vld [vmem:[%s10423_s30 + $0x130] sm:$0xff] }
0x1794   :  { %v3726_v58 = vadd.f32 1e-06, %v3724_v52 }
0x1796   :  { %8332 = vrsqrt.f32 %v3726_v58 }
0x179f   :  { %v8331_v17 = vpop.eup %8330 }
0x17a0   :  { %v3729_v41 = vmul.f32 %v8331_v17, %v3713_v39 }
0x17a2   :  { %v3737_v56 = vmul.f32 %v7654_v63, %v3729_v41 }
0x17a3   :  { %v8333_v20 = vpop.eup %8332 }
0x17a4   :  { %v3730_v43 = vmul.f32 %v8333_v20, %v3714_v51  ;;  %v9437_v22 = vadd.f32 %v7655_v18, %v3737_v56  ;;  %v9561_v51 = vld [vmem:[%s10423_s30 + $0x118] sm:$0xff] }
0x17a6   :  { %v3738_v11 = vmul.f32 %v7654_v63, %v3730_v43  ;;  %8114 = vmatprep.mubr.msk.f32.mxu0 %vm85_vm0, %v9437_v22  ;;  %v9601_v63 = vld [vmem:[%s10423_s30 + $0x138] sm:$0xff] }
0x17a8   :  { %v9441_v3 = vadd.f32 %v7655_v18, %v3738_v11 }
0x17aa   :  { %8115 = vmatmul.mubr.msk.f32.vlgmr.msra.gmra.mxu0 %vm85_vm0, %v9441_v3 }
0x17ab   :  { %8119 = vmatprep.mubr.msk.f32.mxu0 %vm8382_vm1, %v8381_v12 }
0x186a   :  { %v8116_v34 = vpop.f32.mrf.mxu0 }
0x186b   :  { %v9450_v5 = vadd.f32 %v8116_v34, %v7661_v21 }
0x186c   :  { %v3832_v6 = vpop.f32.mrf.mxu0 }
0x186d   :  { %v9452_v48 = vadd.f32 %v7661_v21, %v3832_v6 }
0x186f   :  { %4320 = vrot.lane.b32.xlu0 %v9452_v48, %s10431_s22  ;;  %3968 = vrot.lane.b32.xlu1 %v9452_v48, %s10432_s3  ;;  %v3855_v39 = vmul.f32 %v9546_v31, %v9452_v48  ;;  %v3857_v44 = vmul.f32 %v9553_v40, %v9452_v48  ;;  %v3858_v59 = vmul.f32 %v9561_v51, %v9452_v48 }
0x1870   :  { %v3856_v62 = vmul.f32 %v9569_v60, %v9452_v48  ;;  %v3859_v46 = vmul.f32 %v9576_v19, %v9452_v48  ;;  %v3860_v49 = vmul.f32 %v9584_v0, %v9452_v48  ;;  %v3861_v58 = vmul.f32 %v9592_v2, %v9452_v48 }
0x1871   :  { %v3863_v10 = vsel %vm187_vm2, %v3855_v39, 0.0  ;;  %v3869_v14 = vsel %vm187_vm2, %v3857_v44, 0.0  ;;  %v3872_v42 = vsel %vm187_vm2, %v3858_v59, 0.0  ;;  %v3862_v18 = vmul.f32 %v9601_v63, %v9452_v48 }
0x1872   :  { %v3866_v4 = vsel %vm187_vm2, %v3856_v62, 0.0  ;;  %v3875_v52 = vsel %vm187_vm2, %v3859_v46, 0.0  ;;  %v3878_v17 = vsel %vm187_vm2, %v3860_v49, 0.0  ;;  %v3881_v41 = vsel %vm187_vm2, %v3861_v58, 0.0 }
0x1873   :  { %4154 = vrot.lane.b32.xlu0 %v9461_v13, %s10433_s27  ;;  %4318 = vrot.lane.b32.xlu1 %v9452_v48, %s10424_s25  ;;  %v3884_v56 = vsel %vm187_vm2, %v3862_v18, 0.0 }
0x1877   :  { %4158 = vrot.lane.b32.xlu0 %v9470_v16, %s10433_s27  ;;  %4150 = vrot.lane.b32.xlu1 %v9475_v61, %s10433_s27 }
0x187b   :  { %4162 = vrot.lane.b32.xlu0 %v9484_v26, %s10433_s27  ;;  %4152 = vrot.lane.b32.xlu1 %v9489_v27, %s10433_s27 }
0x187f   :  { %4156 = vrot.lane.b32.xlu1 %v9498_v24, %s10433_s27 }
0x1883   :  { %4160 = vrot.lane.b32.xlu1 %v9505_v32, %s10433_s27 }
0x1887   :  { %4164 = vrot.lane.b32.xlu1 %v9512_v23, %s10433_s27 }
0x18e1   :  { %v4321_v50 = vpop.permute.xlu0 %4320  ;;  %v3969_v25 = vpop.permute.xlu1 %3968 }
0x18e2   :  { %8118 = vmatpush3.xpose.msk.msra.mxu0 %vm187_vm2, %v3969_v25 }
0x18e3   :  { %8127 = vmatprep.subr.mxu0 %v8381_v12 }
0x18e5   :  { %8120 = vmatmul.mubr.msk.f32.vlgmr.msra.gmra.mxu0 %vm187_vm2, %v9452_v48  ;;  %v4319_v1 = vpop.permute.xlu1 %4318  ;;  %v4155_v35 = vpop.permute.xlu0 %4154 }
0x18e6   :  { %8128 = vmatpush3.xpose.msk.msra.mxu0 %vm187_vm2, %v4321_v50  ;;  %8129 = vmatprep.mubr.msk.f32.mxu0 %vm8382_vm1, %v8381_v12  ;;  %v4176_v45 = vmul.f32 %v4155_v35, %v9452_v48 }
0x18e7   :  { %8137 = vmatprep.subr.mxu0 %v8381_v12 }
0x18e9   :  { %8130 = vmatmul.mubr.msk.f32.vlgmr.msra.gmra.mxu0 %vm187_vm2, %v4319_v1  ;;  %v4151_v36 = vpop.permute.xlu1 %4150  ;;  %v4159_v53 = vpop.permute.xlu0 %4158 }
0x18ea   :  { %v4174_v57 = vmul.f32 %v4151_v36, %v9452_v48  ;;  %8139 = vmatprep.mubr.msk.f32.mxu0 %vm8382_vm1, %v8381_v12  ;;  %v4178_v9 = vmul.f32 %v4159_v53, %v9452_v48 }
0x18ec   :  { %4190 = vrot.lane.b32.xlu0 %v4174_v57, %s10424_s25 }
0x18ed   :  { %v4153_v47 = vpop.permute.xlu1 %4152  ;;  %v4163_v8 = vpop.permute.xlu0 %4162 }
0x18ee   :  { %v4175_v54 = vmul.f32 %v4153_v47, %v9452_v48  ;;  %v4180_v37 = vmul.f32 %v4163_v8, %v9452_v48 }
0x18f0   :  { %4194 = vrot.lane.b32.xlu0 %v4176_v45, %s10424_s25  ;;  %4192 = vrot.lane.b32.xlu1 %v4175_v54, %s10424_s25 }
0x18f1   :  { %v4157_v7 = vpop.permute.xlu1 %4156 }
0x18f2   :  { %v4177_v28 = vmul.f32 %v4157_v7, %v9452_v48 }
0x18f4   :  { %4198 = vrot.lane.b32.xlu0 %v4178_v9, %s10424_s25  ;;  %4196 = vrot.lane.b32.xlu1 %v4177_v28, %s10424_s25 }
0x18f5   :  { %v4161_v33 = vpop.permute.xlu1 %4160 }
0x18f6   :  { %v4179_v15 = vmul.f32 %v4161_v33, %v9452_v48 }
0x18f8   :  { %4202 = vrot.lane.b32.xlu0 %v4180_v37, %s10424_s25  ;;  %4200 = vrot.lane.b32.xlu1 %v4179_v15, %s10424_s25 }
0x18f9   :  { %v4165_v29 = vpop.permute.xlu1 %4164 }
0x18fa   :  { %v4181_v30 = vmul.f32 %v4165_v29, %v9452_v48 }
0x18fc   :  { %4204 = vrot.lane.b32.xlu1 %v4181_v30, %s10424_s25 }
0x1917   :  { %3864 = vadd.xlane.f32.xlu0 %v3863_v10 }
0x191b   :  { %3870 = vadd.xlane.f32.xlu0 %v3869_v14 }
0x191f   :  { %3873 = vadd.xlane.f32.xlu0 %v3872_v42 }
0x1920   :  { %3867 = vadd.xlane.f32.xlu1 %v3866_v4 }
0x1923   :  { %3876 = vadd.xlane.f32.xlu0 %v3875_v52 }
0x1924   :  { %3879 = vadd.xlane.f32.xlu1 %v3878_v17 }
0x1927   :  { %3882 = vadd.xlane.f32.xlu0 %v3881_v41 }
0x192b   :  { %3885 = vadd.xlane.f32.xlu0 %v3884_v56 }
0x195e   :  { %v4191_v20 = vpop.permute.xlu0 %4190 }
0x195f   :  { %v4214_v43 = vsel %vm187_vm2, %v4191_v20, 0.0 }
0x1960   :  { %4215 = vadd.xlane.f32.xlu0 %v4214_v43 }
0x1962   :  { %v4195_v11 = vpop.permute.xlu0 %4194  ;;  %v4193_v21 = vpop.permute.xlu1 %4192 }
0x1963   :  { %v4217_v34 = vsel %vm187_vm2, %v4193_v21, 0.0  ;;  %v4220_v25 = vsel %vm187_vm2, %v4195_v11, 0.0 }
0x1964   :  { %4218 = vadd.xlane.f32.xlu1 %v4217_v34 }
0x1966   :  { %v4199_v6 = vpop.permute.xlu0 %4198  ;;  %v4197_v50 = vpop.permute.xlu1 %4196 }
0x1967   :  { %v4226_v1 = vsel %vm187_vm2, %v4199_v6, 0.0  ;;  %v4223_v57 = vsel %vm187_vm2, %v4197_v50, 0.0 }
0x1968   :  { %4221 = vadd.xlane.f32.xlu1 %v4220_v25  ;;  %4227 = vadd.xlane.f32.xlu0 %v4226_v1 }
0x196a   :  { %v4203_v35 = vpop.permute.xlu0 %4202  ;;  %v4201_v36 = vpop.permute.xlu1 %4200 }
0x196b   :  { %v4232_v53 = vsel %vm187_vm2, %v4203_v35, 0.0  ;;  %v4229_v47 = vsel %vm187_vm2, %v4201_v36, 0.0 }
0x196c   :  { %4224 = vadd.xlane.f32.xlu1 %v4223_v57  ;;  %4233 = vadd.xlane.f32.xlu0 %v4232_v53 }
0x196e   :  { %v4205_v45 = vpop.permute.xlu1 %4204 }
0x196f   :  { %v4235_v54 = vsel %vm187_vm2, %v4205_v45, 0.0 }
0x1970   :  { %4230 = vadd.xlane.f32.xlu1 %v4229_v47 }
0x1974   :  { %4236 = vadd.xlane.f32.xlu1 %v4235_v54 }
0x19a0   :  { %v3865_v7 = vpop.xlane.xlu0 %3864 }
0x19a1   :  { %v3898_v29 = vrot.slane %v3865_v7, %v8708_v38 }
0x19a4   :  { %v3871_v9 = vpop.xlane.xlu0 %3870 }
0x19a5   :  { %v4040_v28 = vpop.f32.mrf.mxu0  ;;  %v3906_v39 = vrot.slane %v3871_v9, %v8708_v38 }
0x19a7   :  { %v8121_v8 = vpop.f32.mrf.mxu0 }
0x19a8   :  { %v3874_v33 = vpop.xlane.xlu0 %3873 }
0x19a9   :  { %v4392_v37 = vpop.f32.mrf.mxu0  ;;  %v3868_v15 = vpop.xlane.xlu1 %3867  ;;  %v3910_v59 = vrot.slane %v3874_v33, %v8708_v38 }
0x19aa   :  { %v3902_v30 = vrot.slane %v3868_v15, %v8708_v38 }
0x19ab   :  { %v8131_v10 = vpop.f32.mrf.mxu0 }
0x19ac   :  { %v3927_v44 = vsel %vm254_vm3, %v3902_v30, %v3898_v29  ;;  %v3877_v14 = vpop.xlane.xlu0 %3876 }
0x19ad   :  { %v3928_v62 = vsel %vm256_vm4, %v3906_v39, %v3927_v44  ;;  %v3914_v42 = vrot.slane %v3877_v14, %v8708_v38  ;;  %v3880_v46 = vpop.xlane.xlu1 %3879 }
0x19ae   :  { %v3929_v4 = vsel %vm258_vm5, %v3910_v59, %v3928_v62  ;;  %v3918_v52 = vrot.slane %v3880_v46, %v8708_v38 }
0x19af   :  { %v3930_v58 = vsel %vm260_vm6, %v3914_v42, %v3929_v4 }
0x19b0   :  { %v3883_v49 = vpop.xlane.xlu0 %3882  ;;  %v3931_v18 = vsel %vm262_vm7, %v3918_v52, %v3930_v58 }
0x19b1   :  { %v3922_v17 = vrot.slane %v3883_v49, %v8708_v38 }
0x19b3   :  { %v3932_v20 = vsel %vm264_vm8, %v3922_v17, %v3931_v18 }
0x19b4   :  { %v3886_v41 = vpop.xlane.xlu0 %3885 }
0x19b5   :  { %v3926_v56 = vrot.slane %v3886_v41, %v8708_v38 }
0x19b7   :  { %v3933_v43 = vsel %vm266_vm9, %v3926_v56, %v3932_v20  ;;  %v9669_v20 = vld [vmem:[%s10423_s30 + $0x1a0] sm:$0xff] }
0x19b8   :  { %3935 = vxpose.xlu0.b32.start.end [1/1] (short) (narrow) %v3933_v43, 8  ;;  %v9676_v43 = vld [vmem:[%s10423_s30 + $0x1b0] sm:$0xff] }
0x19e9   :  { %v4216_v21 = vpop.xlane.xlu0 %4215 }
0x19ea   :  { %v4249_v25 = vrot.slane %v4216_v21, %v8708_v38 }
0x19ed   :  { %v4219_v11 = vpop.xlane.xlu1 %4218 }
0x19ee   :  { %v4253_v6 = vrot.slane %v4219_v11, %v8708_v38 }
0x19f0   :  { %v4278_v36 = vsel %vm254_vm3, %v4253_v6, %v4249_v25  ;;  %v9690_v25 = vld [vmem:[%s10423_s30 + $0x188] sm:$0xff] }
0x19f1   :  { %v4222_v34 = vpop.xlane.xlu1 %4221  ;;  %v4228_v1 = vpop.xlane.xlu0 %4227 }
0x19f2   :  { %v4257_v50 = vrot.slane %v4222_v34, %v8708_v38  ;;  %v4265_v45 = vrot.slane %v4228_v1, %v8708_v38  ;;  %v9697_v1 = vld [vmem:[%s10423_s30 + $0x198] sm:$0xff] }
0x19f4   :  { %v4279_v53 = vsel %vm256_vm4, %v4257_v50, %v4278_v36  ;;  %v9711_v36 = vld [vmem:[%s10423_s30 + $0x1b8] sm:$0xff] }
0x19f5   :  { %v4225_v35 = vpop.xlane.xlu1 %4224  ;;  %v4234_v7 = vpop.xlane.xlu0 %4233 }
0x19f6   :  { %v4261_v57 = vrot.slane %v4225_v35, %v8708_v38  ;;  %v4273_v15 = vrot.slane %v4234_v7, %v8708_v38  ;;  %v9704_v35 = vld [vmem:[%s10423_s30 + $0x1a8] sm:$0xff] }
0x19f8   :  { %v4280_v47 = vsel %vm258_vm5, %v4261_v57, %v4279_v53 }
0x19f9   :  { %v4231_v54 = vpop.xlane.xlu1 %4230  ;;  %v4281_v8 = vsel %vm260_vm6, %v4265_v45, %v4280_v47 }
0x19fa   :  { %v4269_v9 = vrot.slane %v4231_v54, %v8708_v38 }
0x19fc   :  { %v4282_v33 = vsel %vm262_vm7, %v4269_v9, %v4281_v8 }
0x19fd   :  { %v4237_v29 = vpop.xlane.xlu1 %4236  ;;  %v4283_v39 = vsel %vm264_vm8, %v4273_v15, %v4282_v33 }
0x19fe   :  { %v4277_v30 = vrot.slane %v4237_v29, %v8708_v38 }
0x1a00   :  { %v4284_v10 = vsel %vm266_vm9, %v4277_v30, %v4283_v39 }
0x1a01   :  { %4286 = vxpose.xlu1.b32.start.end [1/1] (short) (narrow) %v4284_v10, 8 }
0x1a34   :  { %v3951_v44 = vpop.trf.xlu0 }
0x1a35   :  { %v4041_v14 = vadd.f32 %v4040_v28, %v3951_v44 }
0x1a37   :  { %v4044_v59 = vmul.f32 0.35355338, %v4041_v14 }
0x1a39   :  { %v4045_v62 = vadd.f32 %v9260_v55, %v4044_v59 }
0x1a3b   :  { %v4046_v42 = vsel %vm187_vm2, %v4045_v62, -inf }
0x1a3c   :  { %4047 = vmax.xlane.f32.xlu0 %v4046_v42  ;;  %v9731_v42 = vld [vmem:[%s10359_s5 + $0x20] sm:$0xff] }
0x1a7d   :  { %v4302_v46 = vpop.trf.xlu1 }
0x1a7e   :  { %v4393_v4 = vadd.f32 %v4392_v37, %v4302_v46  ;;  %v9655_v37 = vld [vmem:[%s10423_s30 + $0x180] sm:$0xff] }
0x1a80   :  { %v4396_v49 = vmul.f32 0.35355338, %v4393_v4 }
0x1a82   :  { %v4397_v52 = vadd.f32 %v9260_v55, %v4396_v49  ;;  %v9662_v55 = vld [vmem:[%s10423_s30 + $0x190] sm:$0xff] }
0x1a84   :  { %v4398_v58 = vsel %vm187_vm2, %v4397_v52, -inf }
0x1a85   :  { %4399 = vmax.xlane.f32.xlu1 %v4398_v58 }
0x1ac5   :  { %v4048_v17 = vpop.xlane.xlu0 %4047 }
0x1ac6   :  { %v4049_v41 = vsub.f32 %v4045_v62, %v4048_v17 }
0x1ac8   :  { %v4050_v18 = vmul.f32 1.442695, %v4049_v41 }
0x1aca   :  { %8334 = vpow2.f32 %v4050_v18 }
0x1ad7   :  { %v8335_v56 = vpop.eup %8334 }
0x1ad8   :  { %v4052_v28 = vsel %vm187_vm2, %v8335_v56, 0.0 }
0x1ad9   :  { %4053 = vadd.xlane.f32.xlu0 %v4052_v28 }
0x1aef   :  { %4057 = vrot.lane.b32.xlu0 %v9452_v48, %s10425_s0 }
0x1af3   :  { %4648 = vrot.lane.b32.xlu0 %v9655_v37, %s10427_s7 }
0x1af7   :  { %4652 = vrot.lane.b32.xlu0 %v9662_v55, %s10427_s7 }
0x1afb   :  { %4656 = vrot.lane.b32.xlu0 %v9669_v20, %s10427_s7 }
0x1aff   :  { %4660 = vrot.lane.b32.xlu0 %v9676_v43, %s10427_s7 }
0x1b0e   :  { %v4400_v11 = vpop.xlane.xlu1 %4399 }
0x1b0f   :  { %v4401_v21 = vsub.f32 %v4397_v52, %v4400_v11 }
0x1b11   :  { %v4402_v34 = vmul.f32 1.442695, %v4401_v21 }
0x1b13   :  { %8336 = vpow2.f32 %v4402_v34  ;;  %v9751_v34 = vld [vmem:[%s10359_s5 + $0x28] sm:$0xff] }
0x1b14   :  { %8138 = vmatpush3.msra.mxu0 %v9751_v34 }
0x1b15   :  { %8147 = vmatprep.subr.mxu0 %v8381_v12 }
0x1b20   :  { %v8337_v6 = vpop.eup %8336 }
0x1b21   :  { %v4404_v50 = vsel %vm187_vm2, %v8337_v6, 0.0 }
0x1b22   :  { %4405 = vadd.xlane.f32.xlu1 %v4404_v50 }
0x1b33   :  { %4409 = vrot.lane.b32.xlu1 %v9452_v48, %s10428_s29 }
0x1b37   :  { %4818 = vrot.lane.b32.xlu1 %v9452_v48, %s10434_s19 }
0x1b3b   :  { %4816 = vrot.lane.b32.xlu1 %v9452_v48, %s10426_s24 }
0x1b3f   :  { %4650 = vrot.lane.b32.xlu1 %v9690_v25, %s10427_s7 }
0x1b43   :  { %4654 = vrot.lane.b32.xlu1 %v9697_v1, %s10427_s7 }
0x1b47   :  { %4658 = vrot.lane.b32.xlu1 %v9704_v35, %s10427_s7 }
0x1b4b   :  { %4662 = vrot.lane.b32.xlu1 %v9711_v36, %s10427_s7 }
0x1b62   :  { %v4054_v57 = vpop.xlane.xlu0 %4053 }
0x1b63   :  { %8338 = vrcp.f32 %v4054_v57 }
0x1b66   :  { %v4058_v53 = vpop.permute.xlu0 %4057 }
0x1b67   :  { %8123 = vmatpush3.msra.mxu1 %v4058_v53 }
0x1b68   :  { %8132 = vmatprep.subr.mxu1 %v8381_v12 }
0x1b6a   :  { %v4649_v47 = vpop.permute.xlu0 %4648 }
0x1b6b   :  { %v4672_v45 = vmul.f32 %v4649_v47, %v9452_v48 }
0x1b6d   :  { %4688 = vrot.lane.b32.xlu0 %v4672_v45, %s10426_s24 }
0x1b6e   :  { %v4653_v54 = vpop.permute.xlu0 %4652 }
0x1b6f   :  { %v4674_v7 = vmul.f32 %v4653_v54, %v9452_v48 }
0x1b70   :  { %v8339_v9 = vpop.eup %8338 }
0x1b71   :  { %4692 = vrot.lane.b32.xlu0 %v4674_v7, %s10426_s24  ;;  %v4056_v8 = vmul.f32 %v8339_v9, %v8335_v56 }
0x1b72   :  { %v4657_v33 = vpop.permute.xlu0 %4656 }
0x1b73   :  { %v4676_v15 = vmul.f32 %v4657_v33, %v9452_v48  ;;  %8125 = vmatmul.mubr.msk.f32.vlgmr.msra.gmra.mxu1 %vm187_vm2, %v4056_v8 }
0x1b74   :  { %8134 = vmatprep.mubr.msk.f32.mxu1 %vm8382_vm1, %v8381_v12 }
0x1b75   :  { %4696 = vrot.lane.b32.xlu0 %v4676_v15, %s10426_s24 }
0x1b76   :  { %v4661_v29 = vpop.permute.xlu0 %4660 }
0x1b77   :  { %v4678_v30 = vmul.f32 %v4661_v29, %v9452_v48 }
0x1b79   :  { %4700 = vrot.lane.b32.xlu0 %v4678_v30, %s10426_s24 }
0x1bab   :  { %v4406_v39 = vpop.xlane.xlu1 %4405 }
0x1bac   :  { %8340 = vrcp.f32 %v4406_v39 }
0x1baf   :  { %v4410_v10 = vpop.permute.xlu1 %4409 }
0x1bb0   :  { %8133 = vmatpush3.msra.mxu1 %v4410_v10 }
0x1bb1   :  { %8142 = vmatprep.subr.mxu1 %v8381_v12 }
0x1bb3   :  { %v4819_v44 = vpop.permute.xlu1 %4818 }
0x1bb7   :  { %v4817_v14 = vpop.permute.xlu1 %4816 }
0x1bb9   :  { %v8341_v59 = vpop.eup %8340 }
0x1bba   :  { %v4408_v62 = vmul.f32 %v8341_v59, %v8337_v6 }
0x1bbb   :  { %v4651_v46 = vpop.permute.xlu1 %4650 }
0x1bbc   :  { %v4673_v4 = vmul.f32 %v4651_v46, %v9452_v48  ;;  %8135 = vmatmul.mubr.msk.f32.vlgmr.msra.gmra.mxu1 %vm187_vm2, %v4408_v62 }
0x1bbd   :  { %8143 = vmatpush3.msra.mxu1 %v9731_v42  ;;  %8144 = vmatprep.mubr.msk.f32.mxu1 %vm8382_vm1, %v8381_v12 }
0x1bbe   :  { %4690 = vrot.lane.b32.xlu1 %v4673_v4, %s10426_s24  ;;  %8152 = vmatprep.subr.mxu1 %v8381_v12 }
0x1bbf   :  { %v4655_v49 = vpop.permute.xlu1 %4654 }
0x1bc0   :  { %v4675_v52 = vmul.f32 %v4655_v49, %v9452_v48 }
0x1bc2   :  { %4694 = vrot.lane.b32.xlu1 %v4675_v52, %s10426_s24 }
0x1bc3   :  { %v4659_v58 = vpop.permute.xlu1 %4658 }
0x1bc4   :  { %v4677_v17 = vmul.f32 %v4659_v58, %v9452_v48 }
0x1bc6   :  { %4698 = vrot.lane.b32.xlu1 %v4677_v17, %s10426_s24 }
0x1bc7   :  { %v4663_v41 = vpop.permute.xlu1 %4662 }
0x1bc8   :  { %v4679_v18 = vmul.f32 %v4663_v41, %v9452_v48 }
0x1bca   :  { %4702 = vrot.lane.b32.xlu1 %v4679_v18, %s10426_s24 }
0x1bdf   :  { %v4689_v56 = vpop.permute.xlu0 %4688 }
0x1be0   :  { %v4712_v28 = vsel %vm187_vm2, %v4689_v56, 0.0 }
0x1be1   :  { %4713 = vadd.xlane.f32.xlu0 %v4712_v28 }
0x1be3   :  { %v4693_v11 = vpop.permute.xlu0 %4692 }
0x1be4   :  { %v4718_v21 = vsel %vm187_vm2, %v4693_v11, 0.0 }
0x1be5   :  { %4719 = vadd.xlane.f32.xlu0 %v4718_v21 }
0x1be7   :  { %v4697_v53 = vpop.permute.xlu0 %4696 }
0x1be8   :  { %v4724_v8 = vsel %vm187_vm2, %v4697_v53, 0.0 }
0x1beb   :  { %v4701_v33 = vpop.permute.xlu0 %4700 }
0x1bec   :  { %v4730_v30 = vsel %vm187_vm2, %v4701_v33, 0.0 }
0x1c30   :  { %v4691_v6 = vpop.permute.xlu1 %4690 }
0x1c31   :  { %v4715_v50 = vsel %vm187_vm2, %v4691_v6, 0.0 }
0x1c32   :  { %4716 = vadd.xlane.f32.xlu1 %v4715_v50 }
0x1c33   :  { %v4129_v57 = vpop.f32.mrf.mxu1 }
0x1c34   :  { %v4695_v47 = vpop.permute.xlu1 %4694  ;;  %8145 = vmatmul.mubr.msk.f32.vlgmr.msra.gmra.mxu1 %vm187_vm2, %v4129_v57 }
0x1c35   :  { %v8126_v45 = vpop.f32.mrf.mxu1  ;;  %v4721_v54 = vsel %vm187_vm2, %v4695_v47, 0.0  ;;  %8154 = vmatprep.mubr.msk.f32.mxu1 %vm8382_vm1, %v8381_v12 }
0x1c36   :  { %4722 = vadd.xlane.f32.xlu0 %v4721_v54 }
0x1c38   :  { %v4699_v7 = vpop.permute.xlu1 %4698 }
0x1c39   :  { %v4727_v9 = vsel %vm187_vm2, %v4699_v7, 0.0  ;;  %v9790_v7 = vld [vmem:[%s10423_s30 + $0x1d8] sm:$0xff] }
0x1c3a   :  { %4728 = vadd.xlane.f32.xlu1 %v4727_v9  ;;  %4725 = vadd.xlane.f32.xlu0 %v4724_v8 }
0x1c3c   :  { %v4703_v15 = vpop.permute.xlu1 %4702 }
0x1c3d   :  { %v4733_v29 = vsel %vm187_vm2, %v4703_v15, 0.0 }
0x1c3e   :  { %4734 = vadd.xlane.f32.xlu1 %v4733_v29  ;;  %4731 = vadd.xlane.f32.xlu0 %v4730_v30 }
0x1c6a   :  { %v4714_v59 = vpop.xlane.xlu0 %4713 }
0x1c6b   :  { %v4747_v49 = vrot.slane %v4714_v59, %v8708_v38 }
0x1c6e   :  { %v4720_v62 = vpop.xlane.xlu0 %4719 }
0x1c6f   :  { %v4755_v17 = vrot.slane %v4720_v62, %v8708_v38  ;;  %v9801_v62 = vld [vmem:[%s10358_s2] sm:$0xff] }
0x1c7c   :  { %v4481_v39 = vpop.f32.mrf.mxu1 }
0x1c7d   :  { %8140 = vmatmul.mubr.msk.f32.vlgmr.msra.gmra.mxu0 %vm187_vm2, %v4481_v39 }
0x1c7e   :  { %8148 = vmatpush3.xpose.msk.msra.mxu0 %vm187_vm2, %v4819_v44  ;;  %v8136_v10 = vpop.f32.mrf.mxu1  ;;  %8149 = vmatprep.mubr.msk.f32.mxu0 %vm8382_vm1, %v8381_v12 }
0x1c7f   :  { %8157 = vmatprep.subr.mxu0 %v8381_v12 }
0x1c81   :  { %8150 = vmatmul.mubr.msk.f32.vlgmr.msra.gmra.mxu0 %vm187_vm2, %v4817_v14 }
0x1c82   :  { %8159 = vmatprep.mubr.msk.f32.mxu0 %vm8382_vm1, %v8381_v12 }
0x1cbb   :  { %v4717_v46 = vpop.xlane.xlu1 %4716 }
0x1cbc   :  { %v4751_v4 = vrot.slane %v4717_v46, %v8708_v38 }
0x1cbe   :  { %v4776_v44 = vsel %vm254_vm3, %v4751_v4, %v4747_v49 }
0x1cbf   :  { %v4723_v52 = vpop.xlane.xlu0 %4722  ;;  %v4777_v14 = vsel %vm256_vm4, %v4755_v17, %v4776_v44 }
0x1cc0   :  { %v4759_v58 = vrot.slane %v4723_v52, %v8708_v38 }
0x1cc2   :  { %v4778_v28 = vsel %vm258_vm5, %v4759_v58, %v4777_v14  ;;  %v9823_v14 = vld [vmem:[%s10423_s30 + $0x1c8] sm:$0xff] }
0x1cc3   :  { %v4729_v41 = vpop.xlane.xlu1 %4728  ;;  %v4726_v18 = vpop.xlane.xlu0 %4725 }
0x1cc4   :  { %v4763_v56 = vrot.slane %v4726_v18, %v8708_v38  ;;  %v4767_v11 = vrot.slane %v4729_v41, %v8708_v38  ;;  %v9816_v18 = vld [vmem:[%s10423_s30 + $0x1c0] sm:$0xff] }
0x1cc6   :  { %v4779_v21 = vsel %vm260_vm6, %v4763_v56, %v4778_v28  ;;  %v9830_v56 = vld [vmem:[%s10423_s30 + $0x1d0] sm:$0xff]  ;;  %v9837_v28 = vld [vmem:[%s10423_s30 + $0x1e0] sm:$0xff] }
0x1cc7   :  { %v4735_v6 = vpop.xlane.xlu1 %4734  ;;  %v4732_v50 = vpop.xlane.xlu0 %4731  ;;  %v4780_v47 = vsel %vm262_vm7, %v4767_v11, %v4779_v21  ;;  %v9844_v11 = vld [vmem:[%s10423_s30 + $0x1e8] sm:$0xff]  ;;  %v9851_v21 = vld [vmem:[%s10423_s30 + $0x1f0] sm:$0xff] }
0x1cc8   :  { %v4775_v57 = vrot.slane %v4735_v6, %v8708_v38  ;;  %v4771_v53 = vrot.slane %v4732_v50, %v8708_v38  ;;  %v9858_v6 = vld [vmem:[%s10423_s30 + $0x1f8] sm:$0xff]  ;;  %s10439_s30 = sld [smem:[#allocation9_spill]] }
0x1cca   :  { %v4781_v45 = vsel %vm264_vm8, %v4771_v53, %v4780_v47 }
0x1ccb   :  { %v4782_v54 = vsel %vm266_vm9, %v4775_v57, %v4781_v45 }
0x1ccc   :  { %4784 = vxpose.xlu0.b32.start.end [1/1] (short) (narrow) %v4782_v54, 8 }
0x1cf4   :  { %v9792_v9 = vpop.f32.mrf.mxu1 }
0x1cf5   :  { %5080 = vrot.lane.b32.xlu0 %v9790_v7, %s10435_s20 }
0x1cf6   :  { %v8146_v8 = vpop.f32.mrf.mxu1 }
0x1d3d   :  { %v9796_v33 = vpop.f32.mrf.mxu0 }
0x1d3f   :  { %v8141_v15 = vpop.f32.mrf.mxu0 }
0x1d41   :  { %v4890_v29 = vpop.f32.mrf.mxu0 }
0x1d43   :  { %v8151_v30 = vpop.f32.mrf.mxu0 }
0x1d48   :  { %v4800_v39 = vpop.trf.xlu0 }
0x1d49   :  { %v4891_v10 = vadd.f32 %v4890_v29, %v4800_v39 }
0x1d4b   :  { %v4894_v59 = vmul.f32 0.35355338, %v4891_v10 }
0x1d4d   :  { %v4895_v46 = vadd.f32 %v9801_v62, %v4894_v59 }
0x1d4f   :  { %v4896_v4 = vsel %vm187_vm2, %v4895_v46, -inf }
0x1d50   :  { %4897 = vmax.xlane.f32.xlu1 %v4896_v4 }
0x1d61   :  { %4907 = vrot.lane.b32.xlu1 %v9452_v48, %s10429_s28 }
0x1d65   :  { %5244 = vrot.lane.b32.xlu1 %v9452_v48, %s10430_s21 }
0x1d67   :  { %v5081_v39 = vpop.permute.xlu0 %5080 }
0x1d69   :  { %5242 = vrot.lane.b32.xlu1 %v9452_v48, %s10436_s23 }
0x1dd9   :  { %v4898_v49 = vpop.xlane.xlu1 %4897 }
0x1dda   :  { %v4899_v52 = vsub.f32 %v4895_v46, %v4898_v49  ;;  %v5101_v46 = vmul.f32 %v5081_v39, %v9452_v48 }
0x1ddc   :  { %v4900_v44 = vmul.f32 1.442695, %v4899_v52 }
0x1ddd   :  { %v4908_v58 = vpop.permute.xlu1 %4907 }
0x1dde   :  { %8342 = vpow2.f32 %v4900_v44  ;;  %8153 = vmatpush3.msra.mxu1 %v4908_v58 }
0x1ddf   :  { %8162 = vmatprep.subr.mxu1 %v8381_v12 }
0x1de1   :  { %v5245_v50 = vpop.permute.xlu1 %5244 }
0x1de5   :  { %v5243_v57 = vpop.permute.xlu1 %5242 }
0x1deb   :  { %v8343_v17 = vpop.eup %8342 }
0x1dec   :  { %v4902_v41 = vsel %vm187_vm2, %v8343_v17, 0.0 }
0x1ded   :  { %4903 = vadd.xlane.f32.xlu1 %v4902_v41 }
0x1dfe   :  { %5074 = vrot.lane.b32.xlu1 %v9816_v18, %s10435_s20 }
0x1e02   :  { %5076 = vrot.lane.b32.xlu1 %v9823_v14, %s10435_s20 }
0x1e06   :  { %5078 = vrot.lane.b32.xlu1 %v9830_v56, %s10435_s20 }
0x1e0a   :  { %5082 = vrot.lane.b32.xlu1 %v9837_v28, %s10435_s20 }
0x1e0e   :  { %5084 = vrot.lane.b32.xlu1 %v9844_v11, %s10435_s20 }
0x1e12   :  { %5086 = vrot.lane.b32.xlu1 %v9851_v21, %s10435_s20 }
0x1e16   :  { %5088 = vrot.lane.b32.xlu1 %v9858_v6, %s10435_s20 }
0x1e76   :  { %v4904_v53 = vpop.xlane.xlu1 %4903 }
0x1e77   :  { %8344 = vrcp.f32 %v4904_v53 }
0x1e7a   :  { %v5075_v47 = vpop.permute.xlu1 %5074 }
0x1e7b   :  { %v5098_v45 = vmul.f32 %v5075_v47, %v9452_v48 }
0x1e7d   :  { %5114 = vrot.lane.b32.xlu1 %v5098_v45, %s10436_s23 }
0x1e7e   :  { %v5077_v54 = vpop.permute.xlu1 %5076 }
0x1e7f   :  { %v5099_v8 = vmul.f32 %v5077_v54, %v9452_v48 }
0x1e81   :  { %5116 = vrot.lane.b32.xlu1 %v5099_v8, %s10436_s23 }
0x1e82   :  { %v5079_v15 = vpop.permute.xlu1 %5078 }
0x1e83   :  { %v5100_v29 = vmul.f32 %v5079_v15, %v9452_v48 }
0x1e84   :  { %v8345_v30 = vpop.eup %8344 }
0x1e85   :  { %5118 = vrot.lane.b32.xlu1 %v5100_v29, %s10436_s23  ;;  %v4906_v10 = vmul.f32 %v8345_v30, %v8343_v17 }
0x1e86   :  { %v5083_v59 = vpop.permute.xlu1 %5082 }
0x1e87   :  { %8155 = vmatmul.mubr.msk.f32.vlgmr.msra.gmra.mxu1 %vm187_vm2, %v4906_v10  ;;  %v5102_v49 = vmul.f32 %v5083_v59, %v9452_v48 }
0x1e88   :  { %8163 = vmatpush3.xpose.msk.msra.mxu1 %vm187_vm2, %v5245_v50  ;;  %8164 = vmatprep.mubr.msk.f32.mxu1 %vm8382_vm1, %v8381_v12  ;;  %v9889_v50 = vld [vmem:[%s10359_s5 + $0x30] sm:$0xff] }
0x1e89   :  { %5120 = vrot.lane.b32.xlu1 %v5101_v46, %s10436_s23  ;;  %8172 = vmatprep.subr.mxu1 %v8381_v12 }
0x1e8a   :  { %v5085_v4 = vpop.permute.xlu1 %5084  ;;  %8158 = vmatpush3.msra.mxu0 %v9889_v50 }
0x1e8b   :  { %8165 = vmatmul.mubr.msk.f32.vlgmr.msra.gmra.mxu1 %vm187_vm2, %v5243_v57  ;;  %v5103_v44 = vmul.f32 %v5085_v4, %v9452_v48  ;;  %8167 = vmatprep.subr.mxu0 %v8381_v12 }
0x1e8c   :  { %8174 = vmatprep.mubr.msk.f32.mxu1 %vm8382_vm1, %v8381_v12 }
0x1e8d   :  { %5122 = vrot.lane.b32.xlu1 %v5102_v49, %s10436_s23 }
0x1e8e   :  { %v5087_v52 = vpop.permute.xlu1 %5086 }
0x1e8f   :  { %v5104_v17 = vmul.f32 %v5087_v52, %v9452_v48 }
0x1e91   :  { %5124 = vrot.lane.b32.xlu1 %v5103_v44, %s10436_s23 }
0x1e92   :  { %v5089_v58 = vpop.permute.xlu1 %5088 }
0x1e93   :  { %v5105_v41 = vmul.f32 %v5089_v58, %v9452_v48 }
0x1e95   :  { %5128 = vrot.lane.b32.xlu0 %v5105_v41, %s10436_s23  ;;  %5126 = vrot.lane.b32.xlu1 %v5104_v17, %s10436_s23 }
0x1eef   :  { %v5115_v57 = vpop.permute.xlu1 %5114 }
0x1ef0   :  { %v5138_v53 = vsel %vm187_vm2, %v5115_v57, 0.0 }
0x1ef1   :  { %5139 = vadd.xlane.f32.xlu1 %v5138_v53 }
0x1ef3   :  { %v5117_v47 = vpop.permute.xlu1 %5116 }
0x1ef4   :  { %v5141_v45 = vsel %vm187_vm2, %v5117_v47, 0.0 }
0x1ef5   :  { %5142 = vadd.xlane.f32.xlu0 %v5141_v45 }
0x1ef7   :  { %v5119_v54 = vpop.permute.xlu1 %5118 }
0x1ef8   :  { %v5144_v8 = vsel %vm187_vm2, %v5119_v54, 0.0 }
0x1ef9   :  { %5145 = vadd.xlane.f32.xlu0 %v5144_v8 }
0x1efb   :  { %v5121_v15 = vpop.permute.xlu1 %5120 }
0x1efc   :  { %v5147_v29 = vsel %vm187_vm2, %v5121_v15, 0.0 }
0x1efd   :  { %5148 = vadd.xlane.f32.xlu0 %v5147_v29 }
0x1eff   :  { %v5123_v30 = vpop.permute.xlu1 %5122 }
0x1f00   :  { %v5150_v39 = vsel %vm187_vm2, %v5123_v30, 0.0 }
0x1f01   :  { %5151 = vadd.xlane.f32.xlu1 %v5150_v39 }
0x1f03   :  { %v5125_v10 = vpop.permute.xlu1 %5124 }
0x1f04   :  { %v5153_v59 = vsel %vm187_vm2, %v5125_v10, 0.0 }
0x1f05   :  { %5154 = vadd.xlane.f32.xlu0 %v5153_v59 }
0x1f07   :  { %v5127_v46 = vpop.permute.xlu1 %5126  ;;  %v5129_v4 = vpop.permute.xlu0 %5128 }
0x1f08   :  { %v5156_v49 = vsel %vm187_vm2, %v5127_v46, 0.0  ;;  %v5159_v52 = vsel %vm187_vm2, %v5129_v4, 0.0 }
0x1f09   :  { %5157 = vadd.xlane.f32.xlu1 %v5156_v49  ;;  %5160 = vadd.xlane.f32.xlu0 %v5159_v52 }
0x1f47   :  { %v4979_v44 = vpop.f32.mrf.mxu1 }
0x1f48   :  { %8160 = vmatmul.mubr.msk.f32.vlgmr.msra.gmra.mxu0 %vm187_vm2, %v4979_v44 }
0x1f49   :  { %v8156_v58 = vpop.f32.mrf.mxu1  ;;  %8169 = vmatprep.mubr.msk.f32.mxu0 %vm8382_vm1, %v8381_v12 }
0x1f4b   :  { %v5316_v17 = vpop.f32.mrf.mxu1 }
0x1f4d   :  { %v8166_v41 = vpop.f32.mrf.mxu1 }
0x1f7a   :  { %v5140_v47 = vpop.xlane.xlu1 %5139 }
0x1f7b   :  { %v5173_v29 = vrot.slane %v5140_v47, %v8708_v38 }
0x1f7e   :  { %v5143_v57 = vpop.xlane.xlu0 %5142 }
0x1f7f   :  { %v5177_v54 = vrot.slane %v5143_v57, %v8708_v38 }
0x1f81   :  { %v5202_v59 = vsel %vm254_vm3, %v5177_v54, %v5173_v29  ;;  %v4628_v54 = vadd.f32 %v9792_v9, %v9796_v33 }
0x1f82   :  { %v5146_v53 = vpop.xlane.xlu0 %5145 }
0x1f83   :  { %v5181_v15 = vrot.slane %v5146_v53, %v8708_v38 }
0x1f85   :  { %v5203_v4 = vsel %vm256_vm4, %v5181_v15, %v5202_v59 }
0x1f86   :  { %v5149_v45 = vpop.xlane.xlu0 %5148 }
0x1f87   :  { %v5185_v30 = vrot.slane %v5149_v45, %v8708_v38 }
0x1f89   :  { %v5204_v49 = vsel %vm258_vm5, %v5185_v30, %v5203_v4 }
0x1f8a   :  { %v5152_v8 = vpop.xlane.xlu1 %5151 }
0x1f8b   :  { %v5189_v10 = vrot.slane %v5152_v8, %v8708_v38 }
0x1f8d   :  { %v5205_v58 = vsel %vm260_vm6, %v5189_v10, %v5204_v49 }
0x1f8e   :  { %v5155_v39 = vpop.xlane.xlu0 %5154 }
0x1f8f   :  { %v5193_v46 = vrot.slane %v5155_v39, %v8708_v38 }
0x1f91   :  { %v5206_v53 = vsel %vm262_vm7, %v5193_v46, %v5205_v58 }
0x1f92   :  { %v5158_v52 = vpop.xlane.xlu1 %5157  ;;  %v5161_v44 = vpop.xlane.xlu0 %5160 }
0x1f93   :  { %v5197_v41 = vrot.slane %v5158_v52, %v8708_v38  ;;  %v5201_v57 = vrot.slane %v5161_v44, %v8708_v38 }
0x1f95   :  { %v5207_v47 = vsel %vm264_vm8, %v5197_v41, %v5206_v53 }
0x1f96   :  { %v5208_v45 = vsel %vm266_vm9, %v5201_v57, %v5207_v47 }
0x1f97   :  { %5210 = vxpose.xlu1.b32.start.end [1/1] (short) (narrow) %v5208_v45, 8 }
0x1fb5   :  { %5790 = vrot.lane.b32.xlu1 %v9461_v13, %s10433_s27 }
0x2008   :  { %v5052_v8 = vpop.f32.mrf.mxu0 }
0x2009   :  { %v9923_v15 = vadd.f32 %v5052_v8, %v4628_v54 }
0x200a   :  { %v8161_v29 = vpop.f32.mrf.mxu0 }
0x2013   :  { %v5226_v30 = vpop.trf.xlu1 }
0x2014   :  { %v5317_v39 = vadd.f32 %v5316_v17, %v5226_v30 }
0x2016   :  { %v5320_v10 = vmul.f32 0.35355338, %v5317_v39 }
0x2018   :  { %v5321_v59 = vadd.f32 %v9801_v62, %v5320_v10  ;;  %v5493_v10 = vmul.f32 %v9569_v60, %v9450_v5  ;;  %v5495_v60 = vmul.f32 %v9561_v51, %v9450_v5 }
0x201a   :  { %v5322_v46 = vsel %vm187_vm2, %v5321_v59, -inf }
0x201b   :  { %5323 = vmax.xlane.f32.xlu0 %v5322_v46  ;;  %v5503_v46 = vsel %vm187_vm2, %v5493_v10, 0.0 }
0x2027   :  { %v5791_v4 = vpop.permute.xlu1 %5790 }
0x2028   :  { %v5812_v49 = vmul.f32 %v5791_v4, %v9450_v5  ;;  %v5494_v4 = vmul.f32 %v9553_v40, %v9450_v5  ;;  %v5497_v40 = vmul.f32 %v9584_v0, %v9450_v5 }
0x202a   :  { %5830 = vrot.lane.b32.xlu1 %v5812_v49, %s10424_s25 }
0x2031   :  { %5333 = vrot.lane.b32.xlu0 %v9452_v48, %s10437_s17 }
0x2035   :  { %5605 = vrot.lane.b32.xlu0 %v9450_v5, %s10432_s3  ;;  %s10438_s3 = sld [smem:[#allocation8_spill]] }
0x20a4   :  { %v5324_v13 = vpop.xlane.xlu0 %5323 }
0x20a5   :  { %v5325_v9 = vsub.f32 %v5321_v59, %v5324_v13  ;;  %v5492_v59 = vmul.f32 %v9546_v31, %v9450_v5  ;;  %v5496_v13 = vmul.f32 %v9576_v19, %v9450_v5  ;;  %v10004_v19 = vld [vmem:[%s10359_s5 + $0x38] sm:$0xff]  ;;  %s10441_s5 = sld [smem:[#allocation11_spill]] }
0x20a6   :  { %8173 = vmatpush3.msra.mxu1 %v10004_v19 }
0x20a7   :  { %v5326_v33 = vmul.f32 1.442695, %v5325_v9  ;;  %v5500_v49 = vsel %vm187_vm2, %v5492_v59, 0.0  ;;  %v5506_v9 = vsel %vm187_vm2, %v5494_v4, 0.0  ;;  %v5512_v31 = vsel %vm187_vm2, %v5496_v13, 0.0  ;;  %8182 = vmatprep.subr.mxu1 %v8381_v12 }
0x20a8   :  { %v5334_v17 = vpop.permute.xlu0 %5333 }
0x20a9   :  { %8346 = vpow2.f32 %v5326_v33  ;;  %8168 = vmatpush3.msra.mxu0 %v5334_v17  ;;  %v5509_v33 = vsel %vm187_vm2, %v5495_v60, 0.0  ;;  %v5515_v17 = vsel %vm187_vm2, %v5497_v40, 0.0 }
0x20aa   :  { %8177 = vmatprep.subr.mxu0 %v8381_v12 }
0x20ac   :  { %v5606_v48 = vpop.permute.xlu0 %5605 }
0x20b6   :  { %v8347_v52 = vpop.eup %8346 }
0x20b7   :  { %v5328_v44 = vsel %vm187_vm2, %v8347_v52, 0.0 }
0x20b8   :  { %5329 = vadd.xlane.f32.xlu0 %v5328_v44  ;;  %v5498_v44 = vmul.f32 %v9592_v2, %v9450_v5 }
0x20ce   :  { %5956 = vrot.lane.b32.xlu0 %v9450_v5, %s10431_s22 }
0x20d2   :  { %5954 = vrot.lane.b32.xlu0 %v9450_v5, %s10424_s25 }
0x20d6   :  { %5786 = vrot.lane.b32.xlu0 %v9475_v61, %s10433_s27 }
0x20da   :  { %5788 = vrot.lane.b32.xlu0 %v9489_v27, %s10433_s27 }
0x20de   :  { %5792 = vrot.lane.b32.xlu0 %v9498_v24, %s10433_s27 }
0x20e2   :  { %5794 = vrot.lane.b32.xlu0 %v9470_v16, %s10433_s27 }
0x20e6   :  { %5796 = vrot.lane.b32.xlu0 %v9505_v32, %s10433_s27 }
0x20ea   :  { %5798 = vrot.lane.b32.xlu0 %v9484_v26, %s10433_s27 }
0x20ee   :  { %5800 = vrot.lane.b32.xlu0 %v9512_v23, %s10433_s27 }
0x2141   :  { %v5330_v61 = vpop.xlane.xlu0 %5329 }
0x2142   :  { %8348 = vrcp.f32 %v5330_v61  ;;  %v5518_v61 = vsel %vm187_vm2, %v5498_v44, 0.0 }
0x2145   :  { %v5957_v58 = vpop.permute.xlu0 %5956 }
0x2149   :  { %v5955_v27 = vpop.permute.xlu0 %5954 }
0x214d   :  { %v5787_v41 = vpop.permute.xlu0 %5786 }
0x214e   :  { %v5810_v24 = vmul.f32 %v5787_v41, %v9450_v5 }
0x214f   :  { %v8349_v57 = vpop.eup %8348 }
0x2150   :  { %5826 = vrot.lane.b32.xlu0 %v5810_v24, %s10424_s25  ;;  %v5332_v16 = vmul.f32 %v8349_v57, %v8347_v52 }
0x2151   :  { %v5789_v53 = vpop.permute.xlu0 %5788 }
0x2152   :  { %v5811_v32 = vmul.f32 %v5789_v53, %v9450_v5  ;;  %8170 = vmatmul.mubr.msk.f32.vlgmr.msra.gmra.mxu0 %vm187_vm2, %v5332_v16 }
0x2153   :  { %8178 = vmatpush3.xpose.msk.msra.mxu0 %vm187_vm2, %v5606_v48  ;;  %8179 = vmatprep.mubr.msk.f32.mxu0 %vm8382_vm1, %v8381_v12 }
0x2154   :  { %5828 = vrot.lane.b32.xlu0 %v5811_v32, %s10424_s25  ;;  %8187 = vmatprep.subr.mxu0 %v8381_v12 }
0x2155   :  { %v5793_v26 = vpop.permute.xlu0 %5792 }
0x2156   :  { %v5813_v23 = vmul.f32 %v5793_v26, %v9450_v5  ;;  %8180 = vmatmul.mubr.msk.f32.vlgmr.msra.gmra.mxu0 %vm187_vm2, %v9450_v5 }
0x2157   :  { %8188 = vmatpush3.xpose.msk.msra.mxu0 %vm187_vm2, %v5957_v58  ;;  %8189 = vmatprep.mubr.msk.f32.mxu0 %vm8382_vm1, %v8381_v12  ;;  %v5499_v58 = vmul.f32 %v9601_v63, %v9450_v5 }
0x2158   :  { %5832 = vrot.lane.b32.xlu0 %v5813_v23, %s10424_s25  ;;  %8197 = vmatprep.subr.mxu0 %v8381_v12 }
0x2159   :  { %v5795_v47 = vpop.permute.xlu0 %5794  ;;  %v5521_v24 = vsel %vm187_vm2, %v5499_v58, 0.0 }
0x215a   :  { %v5814_v45 = vmul.f32 %v5795_v47, %v9450_v5  ;;  %8190 = vmatmul.mubr.msk.f32.vlgmr.msra.gmra.mxu0 %vm187_vm2, %v5955_v27  ;;  %v5831_v27 = vpop.permute.xlu1 %5830 }
0x215b   :  { %8198 = vmatpush3.msra.mxu0 %v9751_v34  ;;  %8199 = vmatprep.mubr.msk.f32.mxu0 %vm8382_vm1, %v8381_v12  ;;  %v5856_v41 = vsel %vm187_vm2, %v5831_v27, 0.0 }
0x215c   :  { %5834 = vrot.lane.b32.xlu1 %v5814_v45, %s10424_s25  ;;  %8207 = vmatprep.subr.mxu0 %v8381_v12 }
0x215d   :  { %v5797_v54 = vpop.permute.xlu0 %5796 }
0x215e   :  { %v5815_v8 = vmul.f32 %v5797_v54, %v9450_v5 }
0x2160   :  { %5836 = vrot.lane.b32.xlu0 %v5815_v8, %s10424_s25 }
0x2161   :  { %v5799_v29 = vpop.permute.xlu0 %5798 }
0x2162   :  { %v5816_v30 = vmul.f32 %v5799_v29, %v9450_v5 }
0x2164   :  { %5838 = vrot.lane.b32.xlu1 %v5816_v30, %s10424_s25 }
0x2165   :  { %v5801_v39 = vpop.permute.xlu0 %5800 }
0x2166   :  { %v5817_v34 = vmul.f32 %v5801_v39, %v9450_v5 }
0x2168   :  { %5840 = vrot.lane.b32.xlu0 %v5817_v34, %s10424_s25 }
0x2187   :  { %5504 = vadd.xlane.f32.xlu0 %v5503_v46 }
0x2188   :  { %5501 = vadd.xlane.f32.xlu1 %v5500_v49 }
0x218b   :  { %5507 = vadd.xlane.f32.xlu0 %v5506_v9 }
0x218c   :  { %5513 = vadd.xlane.f32.xlu1 %v5512_v31 }
0x218f   :  { %5510 = vadd.xlane.f32.xlu0 %v5509_v33 }
0x2193   :  { %5516 = vadd.xlane.f32.xlu0 %v5515_v17 }
0x21c2   :  { %v5827_v51 = vpop.permute.xlu0 %5826 }
0x21c3   :  { %v5850_v52 = vsel %vm187_vm2, %v5827_v51, 0.0 }
0x21c4   :  { %5851 = vadd.xlane.f32.xlu1 %v5850_v52 }
0x21c6   :  { %v5829_v0 = vpop.permute.xlu0 %5828 }
0x21c7   :  { %v5853_v48 = vsel %vm187_vm2, %v5829_v0, 0.0 }
0x21c8   :  { %5854 = vadd.xlane.f32.xlu0 %v5853_v48  ;;  %5519 = vadd.xlane.f32.xlu1 %v5518_v61 }
0x21ca   :  { %v5833_v57 = vpop.permute.xlu0 %5832 }
0x21cb   :  { %v5859_v53 = vsel %vm187_vm2, %v5833_v57, 0.0 }
0x21cc   :  { %5522 = vadd.xlane.f32.xlu1 %v5521_v24  ;;  %5857 = vadd.xlane.f32.xlu0 %v5856_v41 }
0x21ce   :  { %v5835_v2 = vpop.permute.xlu1 %5834 }
0x21cf   :  { %v5862_v16 = vsel %vm187_vm2, %v5835_v2, 0.0 }
0x21d0   :  { %5860 = vadd.xlane.f32.xlu0 %v5859_v53  ;;  %5863 = vadd.xlane.f32.xlu1 %v5862_v16 }
0x21d2   :  { %v5837_v32 = vpop.permute.xlu0 %5836 }
0x21d3   :  { %v5865_v63 = vsel %vm187_vm2, %v5837_v32, 0.0 }
0x21d4   :  { %5866 = vadd.xlane.f32.xlu0 %v5865_v63 }
0x21d6   :  { %v5839_v26 = vpop.permute.xlu1 %5838 }
0x21d7   :  { %v5868_v23 = vsel %vm187_vm2, %v5839_v26, 0.0 }
0x21d8   :  { %5869 = vadd.xlane.f32.xlu1 %v5868_v23 }
0x21da   :  { %v5841_v47 = vpop.permute.xlu0 %5840 }
0x21db   :  { %v5871_v45 = vsel %vm187_vm2, %v5841_v47, 0.0 }
0x21dc   :  { %5872 = vadd.xlane.f32.xlu0 %v5871_v45 }
0x2210   :  { %v5505_v10 = vpop.xlane.xlu0 %5504 }
0x2211   :  { %v5502_v46 = vpop.xlane.xlu1 %5501  ;;  %v5539_v13 = vrot.slane %v5505_v10, %v8708_v38 }
0x2212   :  { %v5405_v54 = vpop.f32.mrf.mxu0  ;;  %v5535_v9 = vrot.slane %v5502_v46, %v8708_v38 }
0x2213   :  { %8175 = vmatmul.mubr.msk.f32.vlgmr.msra.gmra.mxu1 %vm187_vm2, %v5405_v54 }
0x2214   :  { %v8171_v8 = vpop.f32.mrf.mxu0  ;;  %8184 = vmatprep.mubr.msk.f32.mxu1 %vm8382_vm1, %v8381_v12  ;;  %v5508_v59 = vpop.xlane.xlu0 %5507  ;;  %v5564_v17 = vsel %vm254_vm3, %v5539_v13, %v5535_v9 }
0x2215   :  { %v5514_v49 = vpop.xlane.xlu1 %5513  ;;  %v5543_v60 = vrot.slane %v5508_v59, %v8708_v38 }
0x2216   :  { %v5677_v29 = vpop.f32.mrf.mxu0  ;;  %v5551_v61 = vrot.slane %v5514_v49, %v8708_v38 }
0x2217   :  { %v5565_v51 = vsel %vm256_vm4, %v5543_v60, %v5564_v17 }
0x2218   :  { %v8181_v30 = vpop.f32.mrf.mxu0  ;;  %v5511_v4 = vpop.xlane.xlu0 %5510 }
0x2219   :  { %v5547_v40 = vrot.slane %v5511_v4, %v8708_v38 }
0x221a   :  { %v6028_v39 = vpop.f32.mrf.mxu0 }
0x221b   :  { %v5566_v0 = vsel %vm258_vm5, %v5547_v40, %v5565_v51 }
0x221c   :  { %v8191_v34 = vpop.f32.mrf.mxu0  ;;  %v5517_v31 = vpop.xlane.xlu0 %5516  ;;  %v5567_v27 = vsel %vm260_vm6, %v5551_v61, %v5566_v0 }
0x221d   :  { %v5555_v48 = vrot.slane %v5517_v31, %v8708_v38 }
0x221f   :  { %v5568_v57 = vsel %vm262_vm7, %v5555_v48, %v5567_v27 }
0x224d   :  { %v5852_v33 = vpop.xlane.xlu1 %5851 }
0x224e   :  { %v5885_v47 = vrot.slane %v5852_v33, %v8708_v38 }
0x2251   :  { %v5855_v52 = vpop.xlane.xlu0 %5854  ;;  %v5520_v44 = vpop.xlane.xlu1 %5519 }
0x2252   :  { %v5559_v58 = vrot.slane %v5520_v44, %v8708_v38  ;;  %v5889_v63 = vrot.slane %v5855_v52, %v8708_v38 }
0x2254   :  { %v5569_v16 = vsel %vm264_vm8, %v5559_v58, %v5568_v57  ;;  %v5914_v8 = vsel %vm254_vm3, %v5889_v63, %v5885_v47 }
0x2255   :  { %v5858_v41 = vpop.xlane.xlu0 %5857  ;;  %v5523_v24 = vpop.xlane.xlu1 %5522 }
0x2256   :  { %v5563_v2 = vrot.slane %v5523_v24, %v8708_v38  ;;  %v5893_v26 = vrot.slane %v5858_v41, %v8708_v38 }
0x2258   :  { %v5570_v53 = vsel %vm266_vm9, %v5563_v2, %v5569_v16  ;;  %v5915_v30 = vsel %vm256_vm4, %v5893_v26, %v5914_v8 }
0x2259   :  { %v5861_v32 = vpop.xlane.xlu0 %5860  ;;  %5572 = vxpose.xlu1.b32.start.end [1/1] (short) (narrow) %v5570_v53, 8  ;;  %v5864_v23 = vpop.xlane.xlu1 %5863 }
0x225a   :  { %v5897_v45 = vrot.slane %v5861_v32, %v8708_v38  ;;  %v5901_v34 = vrot.slane %v5864_v23, %v8708_v38 }
0x225c   :  { %v5916_v59 = vsel %vm258_vm5, %v5897_v45, %v5915_v30 }
0x225d   :  { %v5867_v54 = vpop.xlane.xlu0 %5866  ;;  %v5917_v49 = vsel %vm260_vm6, %v5901_v34, %v5916_v59 }
0x225e   :  { %v5905_v46 = vrot.slane %v5867_v54, %v8708_v38 }
0x2260   :  { %v5918_v9 = vsel %vm262_vm7, %v5905_v46, %v5917_v49 }
0x2261   :  { %v5870_v10 = vpop.xlane.xlu1 %5869 }
0x2262   :  { %v5909_v4 = vrot.slane %v5870_v10, %v8708_v38 }
0x2264   :  { %v5919_v31 = vsel %vm264_vm8, %v5909_v4, %v5918_v9 }
0x2265   :  { %v5873_v13 = vpop.xlane.xlu0 %5872 }
0x2266   :  { %v5913_v60 = vrot.slane %v5873_v13, %v8708_v38 }
0x2268   :  { %v5920_v33 = vsel %vm266_vm9, %v5913_v60, %v5919_v31 }
0x2269   :  { %5922 = vxpose.xlu0.b32.start.end [1/1] (short) (narrow) %v5920_v33, 8 }
0x22d3   :  { %v5478_v40 = vpop.f32.mrf.mxu1 }
0x22d4   :  { %v5482_v17 = vadd.f32 %v5478_v40, %v9923_v15 }
0x22d5   :  { %v8176_v51 = vpop.f32.mrf.mxu1  ;;  %v5588_v52 = vpop.trf.xlu1 }
0x22d6   :  { %5483 = vst.msk [vmem:[#allocation2] sm:$0xff] %vm85_vm0, %v5482_v17  ;;  %v5678_v44 = vadd.f32 %v5677_v29, %v5588_v52 }
0x22d8   :  { %v5681_v0 = vmul.f32 0.35355338, %v5678_v44 }
0x22da   :  { %v5682_v48 = vadd.f32 %v9801_v62, %v5681_v0 }
0x22dc   :  { %v5683_v61 = vsel %vm187_vm2, %v5682_v48, -inf }
0x22dd   :  { %5684 = vmax.xlane.f32.xlu0 %v5683_v61 }
0x22e5   :  { %v5938_v58 = vpop.trf.xlu0 }
0x22e6   :  { %v6029_v27 = vadd.f32 %v6028_v39, %v5938_v58 }
0x22e8   :  { %v6032_v41 = vmul.f32 0.35355338, %v6029_v27 }
0x22ea   :  { %v6033_v24 = vadd.f32 %v9801_v62, %v6032_v41 }
0x22ec   :  { %v6034_v57 = vsel %vm187_vm2, %v6033_v24, -inf }
0x22ed   :  { %6035 = vmax.xlane.f32.xlu1 %v6034_v57 }
0x2366   :  { %v5685_v15 = vpop.xlane.xlu0 %5684 }
0x2367   :  { %v5686_v2 = vsub.f32 %v5682_v48, %v5685_v15 }
0x2369   :  { %v5687_v16 = vmul.f32 1.442695, %v5686_v2 }
0x236b   :  { %8350 = vpow2.f32 %v5687_v16 }
0x2376   :  { %v6036_v53 = vpop.xlane.xlu1 %6035 }
0x2377   :  { %v6037_v29 = vsub.f32 %v6033_v24, %v6036_v53 }
0x2378   :  { %v8351_v32 = vpop.eup %8350 }
0x2379   :  { %v6038_v63 = vmul.f32 1.442695, %v6037_v29  ;;  %v5689_v26 = vsel %vm187_vm2, %v8351_v32, 0.0 }
0x237a   :  { %5690 = vadd.xlane.f32.xlu1 %v5689_v26 }
0x237b   :  { %8352 = vpow2.f32 %v6038_v63 }
0x2388   :  { %v8353_v23 = vpop.eup %8352 }
0x2389   :  { %v6040_v39 = vsel %vm187_vm2, %v8353_v23, 0.0 }
0x238a   :  { %6041 = vadd.xlane.f32.xlu0 %v6040_v39 }
0x238b   :  { %5694 = vrot.lane.b32.xlu1 %v9450_v5, %s10425_s0  ;;  %s10442_s0 = sld [smem:[#allocation12_spill]] }
0x238f   :  { %6453 = vrot.lane.b32.xlu1 %v9450_v5, %s10434_s19 }
0x2393   :  { %6451 = vrot.lane.b32.xlu1 %v9450_v5, %s10426_s24 }
0x2397   :  { %6283 = vrot.lane.b32.xlu1 %v9655_v37, %s10427_s7 }
0x239b   :  { %6287 = vrot.lane.b32.xlu1 %v9662_v55, %s10427_s7 }
0x239f   :  { %6291 = vrot.lane.b32.xlu1 %v9669_v20, %s10427_s7 }
0x23a0   :  { %6045 = vrot.lane.b32.xlu0 %v9450_v5, %s10428_s29 }
0x23a3   :  { %6295 = vrot.lane.b32.xlu1 %v9676_v43, %s10427_s7 }
0x23a4   :  { %6285 = vrot.lane.b32.xlu0 %v9690_v25, %s10427_s7 }
0x23a8   :  { %6289 = vrot.lane.b32.xlu0 %v9697_v1, %s10427_s7 }
0x23ac   :  { %6293 = vrot.lane.b32.xlu0 %v9704_v35, %s10427_s7 }
0x23b0   :  { %6297 = vrot.lane.b32.xlu0 %v9711_v36, %s10427_s7 }
0x2403   :  { %v5691_v37 = vpop.xlane.xlu1 %5690 }
0x2404   :  { %8354 = vrcp.f32 %v5691_v37 }
0x2407   :  { %v5695_v55 = vpop.permute.xlu1 %5694 }
0x2408   :  { %8183 = vmatpush3.msra.mxu1 %v5695_v55 }
0x2409   :  { %8192 = vmatprep.subr.mxu1 %v8381_v12 }
0x240b   :  { %v10088_v20 = vpop.permute.xlu1 %6453 }
0x240f   :  { %v10090_v43 = vpop.permute.xlu1 %6451 }
0x2411   :  { %v8355_v25 = vpop.eup %8354 }
0x2412   :  { %v5693_v47 = vmul.f32 %v8355_v25, %v8351_v32 }
0x2413   :  { %v6042_v45 = vpop.xlane.xlu0 %6041  ;;  %v6284_v1 = vpop.permute.xlu1 %6283 }
0x2414   :  { %8356 = vrcp.f32 %v6042_v45  ;;  %v6307_v35 = vmul.f32 %v6284_v1, %v9450_v5  ;;  %8185 = vmatmul.mubr.msk.f32.vlgmr.msra.gmra.mxu1 %vm187_vm2, %v5693_v47 }
0x2415   :  { %8194 = vmatprep.mubr.msk.f32.mxu1 %vm8382_vm1, %v8381_v12 }
0x2416   :  { %6323 = vrot.lane.b32.xlu1 %v6307_v35, %s10426_s24 }
0x2417   :  { %v6046_v36 = vpop.permute.xlu0 %6045  ;;  %v6288_v54 = vpop.permute.xlu1 %6287 }
0x2418   :  { %v6309_v8 = vmul.f32 %v6288_v54, %v9450_v5  ;;  %8193 = vmatpush3.msra.mxu1 %v6046_v36 }
0x2419   :  { %8202 = vmatprep.subr.mxu1 %v8381_v12 }
0x241a   :  { %6327 = vrot.lane.b32.xlu1 %v6309_v8, %s10426_s24 }
0x241b   :  { %v6286_v30 = vpop.permute.xlu0 %6285  ;;  %v6292_v34 = vpop.permute.xlu1 %6291 }
0x241c   :  { %v6308_v10 = vmul.f32 %v6286_v30, %v9450_v5  ;;  %v6311_v59 = vmul.f32 %v6292_v34, %v9450_v5 }
0x241e   :  { %6325 = vrot.lane.b32.xlu0 %v6308_v10, %s10426_s24  ;;  %6331 = vrot.lane.b32.xlu1 %v6311_v59, %s10426_s24 }
0x241f   :  { %v6290_v46 = vpop.permute.xlu0 %6289  ;;  %v6296_v4 = vpop.permute.xlu1 %6295 }
0x2420   :  { %v6310_v49 = vmul.f32 %v6290_v46, %v9450_v5  ;;  %v6313_v13 = vmul.f32 %v6296_v4, %v9450_v5 }
0x2421   :  { %v8357_v9 = vpop.eup %8356 }
0x2422   :  { %6329 = vrot.lane.b32.xlu0 %v6310_v49, %s10426_s24  ;;  %6335 = vrot.lane.b32.xlu1 %v6313_v13, %s10426_s24  ;;  %v6044_v60 = vmul.f32 %v8357_v9, %v8353_v23 }
0x2423   :  { %v6294_v31 = vpop.permute.xlu0 %6293 }
0x2424   :  { %v6312_v33 = vmul.f32 %v6294_v31, %v9450_v5  ;;  %8195 = vmatmul.mubr.msk.f32.vlgmr.msra.gmra.mxu1 %vm187_vm2, %v6044_v60 }
0x2425   :  { %8203 = vmatpush3.msra.mxu1 %v9731_v42  ;;  %8204 = vmatprep.mubr.msk.f32.mxu1 %vm8382_vm1, %v8381_v12 }
0x2426   :  { %6333 = vrot.lane.b32.xlu0 %v6312_v33, %s10426_s24  ;;  %8212 = vmatprep.subr.mxu1 %v8381_v12 }
0x2427   :  { %v6298_v40 = vpop.permute.xlu0 %6297 }
0x2428   :  { %v6314_v17 = vmul.f32 %v6298_v40, %v9450_v5 }
0x242a   :  { %6337 = vrot.lane.b32.xlu0 %v6314_v17, %s10426_s24 }
0x2488   :  { %v6324_v51 = vpop.permute.xlu1 %6323 }
0x2489   :  { %v6347_v52 = vsel %vm187_vm2, %v6324_v51, 0.0 }
0x248a   :  { %6348 = vadd.xlane.f32.xlu1 %v6347_v52 }
0x248c   :  { %v6328_v44 = vpop.permute.xlu1 %6327 }
0x248d   :  { %v6353_v41 = vsel %vm187_vm2, %v6328_v44, 0.0 }
0x2490   :  { %v6326_v0 = vpop.permute.xlu0 %6325  ;;  %v6332_v48 = vpop.permute.xlu1 %6331 }
0x2491   :  { %v6350_v42 = vsel %vm187_vm2, %v6326_v0, 0.0  ;;  %v6359_v61 = vsel %vm187_vm2, %v6332_v48, 0.0 }
0x2492   :  { %6351 = vadd.xlane.f32.xlu0 %v6350_v42  ;;  %6360 = vadd.xlane.f32.xlu1 %v6359_v61 }
0x2494   :  { %v6330_v58 = vpop.permute.xlu0 %6329  ;;  %v6336_v27 = vpop.permute.xlu1 %6335 }
0x2495   :  { %v6365_v24 = vsel %vm187_vm2, %v6336_v27, 0.0  ;;  %v6356_v15 = vsel %vm187_vm2, %v6330_v58, 0.0 }
0x2496   :  { %6354 = vadd.xlane.f32.xlu0 %v6353_v41  ;;  %6366 = vadd.xlane.f32.xlu1 %v6365_v24 }
0x2498   :  { %v6334_v57 = vpop.permute.xlu0 %6333 }
0x2499   :  { %v6362_v2 = vsel %vm187_vm2, %v6334_v57, 0.0 }
0x249a   :  { %6357 = vadd.xlane.f32.xlu0 %v6356_v15 }
0x249c   :  { %v6338_v16 = vpop.permute.xlu0 %6337 }
0x249d   :  { %v6368_v53 = vsel %vm187_vm2, %v6338_v16, 0.0 }
0x249e   :  { %6363 = vadd.xlane.f32.xlu0 %v6362_v2 }
0x24a2   :  { %6369 = vadd.xlane.f32.xlu0 %v6368_v53 }
0x24d4   :  { %v5766_v29 = vpop.f32.mrf.mxu1 }
0x24d5   :  { %8205 = vmatmul.mubr.msk.f32.vlgmr.msra.gmra.mxu1 %vm187_vm2, %v5766_v29 }
0x24d6   :  { %v8186_v32 = vpop.f32.mrf.mxu1  ;;  %8214 = vmatprep.mubr.msk.f32.mxu1 %vm8382_vm1, %v8381_v12 }
0x24e4   :  { %v6117_v63 = vpop.f32.mrf.mxu1 }
0x24e5   :  { %8200 = vmatmul.mubr.msk.f32.vlgmr.msra.gmra.mxu0 %vm187_vm2, %v6117_v63 }
0x24e6   :  { %8208 = vmatpush3.xpose.msk.msra.mxu0 %vm187_vm2, %v10088_v20  ;;  %v8196_v26 = vpop.f32.mrf.mxu1  ;;  %8209 = vmatprep.mubr.msk.f32.mxu0 %vm8382_vm1, %v8381_v12 }
0x24e7   :  { %8217 = vmatprep.subr.mxu0 %v8381_v12 }
0x24e9   :  { %8210 = vmatmul.mubr.msk.f32.vlgmr.msra.gmra.mxu0 %vm187_vm2, %v10090_v43 }
0x24ea   :  { %8218 = vmatpush3.msra.mxu0 %v9889_v50  ;;  %8219 = vmatprep.mubr.msk.f32.mxu0 %vm8382_vm1, %v8381_v12 }
0x24eb   :  { %8227 = vmatprep.subr.mxu0 %v8381_v12 }
0x2513   :  { %v6349_v39 = vpop.xlane.xlu1 %6348 }
0x2514   :  { %v6382_v25 = vrot.slane %v6349_v39, %v8708_v38 }
0x251b   :  { %v6352_v23 = vpop.xlane.xlu0 %6351  ;;  %v6361_v47 = vpop.xlane.xlu1 %6360 }
0x251c   :  { %v6386_v55 = vrot.slane %v6352_v23, %v8708_v38  ;;  %v6398_v36 = vrot.slane %v6361_v47, %v8708_v38 }
0x251e   :  { %v6411_v43 = vsel %vm254_vm3, %v6386_v55, %v6382_v25 }
0x251f   :  { %v6355_v37 = vpop.xlane.xlu0 %6354  ;;  %v6367_v8 = vpop.xlane.xlu1 %6366 }
0x2520   :  { %v6390_v20 = vrot.slane %v6355_v37, %v8708_v38  ;;  %v6406_v59 = vrot.slane %v6367_v8, %v8708_v38 }
0x2522   :  { %v6412_v1 = vsel %vm256_vm4, %v6390_v20, %v6411_v43 }
0x2523   :  { %v6358_v45 = vpop.xlane.xlu0 %6357 }
0x2524   :  { %v6394_v50 = vrot.slane %v6358_v45, %v8708_v38 }
0x2526   :  { %v6413_v35 = vsel %vm258_vm5, %v6394_v50, %v6412_v1 }
0x2527   :  { %v6364_v54 = vpop.xlane.xlu0 %6363  ;;  %v6414_v34 = vsel %vm260_vm6, %v6398_v36, %v6413_v35 }
0x2528   :  { %v6402_v30 = vrot.slane %v6364_v54, %v8708_v38 }
0x252a   :  { %v6415_v10 = vsel %vm262_vm7, %v6402_v30, %v6414_v34 }
0x252b   :  { %v6370_v46 = vpop.xlane.xlu0 %6369  ;;  %v6416_v49 = vsel %vm264_vm8, %v6406_v59, %v6415_v10 }
0x252c   :  { %v6410_v4 = vrot.slane %v6370_v46, %v8708_v38 }
0x252e   :  { %v6417_v13 = vsel %vm266_vm9, %v6410_v4, %v6416_v49 }
0x252f   :  { %6419 = vxpose.xlu1.b32.start.end [1/1] (short) (narrow) %v6417_v13, 8 }
0x254d   :  { %6714 = vrot.lane.b32.xlu1 %v9790_v7, %s10435_s20 }
0x2595   :  { %v6263_v9 = vpop.f32.mrf.mxu1 }
0x2597   :  { %v8206_v60 = vpop.f32.mrf.mxu1 }
0x25a5   :  { %v6190_v31 = vpop.f32.mrf.mxu0 }
0x25a6   :  { %v10157_v33 = vadd.f32 %v6263_v9, %v6190_v31 }
0x25a7   :  { %v8201_v40 = vpop.f32.mrf.mxu0 }
0x25a9   :  { %v6525_v17 = vpop.f32.mrf.mxu0 }
0x25ab   :  { %v8211_v51 = vpop.f32.mrf.mxu0  ;;  %v6435_v52 = vpop.trf.xlu1 }
0x25ac   :  { %v6526_v44 = vadd.f32 %v6525_v17, %v6435_v52 }
0x25ae   :  { %v6529_v0 = vmul.f32 0.35355338, %v6526_v44 }
0x25b0   :  { %v6530_v48 = vadd.f32 %v9801_v62, %v6529_v0 }
0x25b2   :  { %v6531_v42 = vsel %vm187_vm2, %v6530_v48, -inf }
0x25b3   :  { %6532 = vmax.xlane.f32.xlu0 %v6531_v42 }
0x25bf   :  { %v6715_v61 = vpop.permute.xlu1 %6714 }
0x25c0   :  { %v6735_v58 = vmul.f32 %v6715_v61, %v9450_v5 }
0x25c2   :  { %6754 = vrot.lane.b32.xlu1 %v6735_v58, %s10436_s23 }
0x25c9   :  { %6542 = vrot.lane.b32.xlu0 %v9450_v5, %s10429_s28 }
0x25cd   :  { %6878 = vrot.lane.b32.xlu0 %v9450_v5, %s10430_s21 }
0x2634   :  { %v6755_v50 = vpop.permute.xlu1 %6754 }
0x2635   :  { %v6781_v1 = vsel %vm187_vm2, %v6755_v50, 0.0 }
0x263c   :  { %v6533_v7 = vpop.xlane.xlu0 %6532 }
0x263d   :  { %v6534_v27 = vsub.f32 %v6530_v48, %v6533_v7 }
0x263f   :  { %v6535_v41 = vmul.f32 1.442695, %v6534_v27 }
0x2640   :  { %v6543_v24 = vpop.permute.xlu0 %6542 }
0x2641   :  { %8358 = vpow2.f32 %v6535_v41  ;;  %8213 = vmatpush3.msra.mxu1 %v6543_v24 }
0x2642   :  { %8222 = vmatprep.subr.mxu1 %v8381_v12 }
0x2644   :  { %v6879_v15 = vpop.permute.xlu0 %6878 }
0x264e   :  { %v8359_v62 = vpop.eup %8358 }
0x264f   :  { %v6537_v57 = vsel %vm187_vm2, %v8359_v62, 0.0 }
0x2650   :  { %6538 = vadd.xlane.f32.xlu0 %v6537_v57 }
0x2666   :  { %6876 = vrot.lane.b32.xlu0 %v9450_v5, %s10436_s23 }
0x266a   :  { %6708 = vrot.lane.b32.xlu0 %v9816_v18, %s10435_s20 }
0x266e   :  { %6710 = vrot.lane.b32.xlu0 %v9823_v14, %s10435_s20 }
0x2672   :  { %6712 = vrot.lane.b32.xlu0 %v9830_v56, %s10435_s20 }
0x2676   :  { %6716 = vrot.lane.b32.xlu0 %v9837_v28, %s10435_s20 }
0x267a   :  { %6718 = vrot.lane.b32.xlu0 %v9844_v11, %s10435_s20 }
0x267e   :  { %6720 = vrot.lane.b32.xlu0 %v9851_v21, %s10435_s20 }
0x2682   :  { %6722 = vrot.lane.b32.xlu0 %v9858_v6, %s10435_s20 }
0x26d9   :  { %v6539_v18 = vpop.xlane.xlu0 %6538 }
0x26da   :  { %8360 = vrcp.f32 %v6539_v18 }
0x26dd   :  { %v6877_v2 = vpop.permute.xlu0 %6876 }
0x26e1   :  { %v6709_v14 = vpop.permute.xlu0 %6708 }
0x26e2   :  { %v6732_v16 = vmul.f32 %v6709_v14, %v9450_v5 }
0x26e4   :  { %6748 = vrot.lane.b32.xlu0 %v6732_v16, %s10436_s23 }
0x26e5   :  { %v6711_v56 = vpop.permute.xlu0 %6710 }
0x26e6   :  { %v6733_v28 = vmul.f32 %v6711_v56, %v9450_v5 }
0x26e7   :  { %v8361_v53 = vpop.eup %8360 }
0x26e8   :  { %6750 = vrot.lane.b32.xlu0 %v6733_v28, %s10436_s23  ;;  %v6541_v11 = vmul.f32 %v8361_v53, %v8359_v62 }
0x26e9   :  { %v6713_v21 = vpop.permute.xlu0 %6712 }
0x26ea   :  { %v6734_v29 = vmul.f32 %v6713_v21, %v9450_v5  ;;  %8215 = vmatmul.mubr.msk.f32.vlgmr.msra.gmra.mxu1 %vm187_vm2, %v6541_v11  ;;  %v8380_v21 = vld [vmem:[%s10358_s2] sm:$0xff] }
0x26eb   :  { %8223 = vmatpush3.xpose.msk.msra.mxu1 %vm187_vm2, %v6879_v15  ;;  %8224 = vmatprep.mubr.msk.f32.mxu1 %vm8382_vm1, %v8381_v12 }
0x26ec   :  { %6752 = vrot.lane.b32.xlu0 %v6734_v29, %s10436_s23  ;;  %8232 = vmatprep.subr.mxu1 %v8381_v12 }
0x26ed   :  { %v6717_v6 = vpop.permute.xlu0 %6716 }
0x26ee   :  { %v6736_v32 = vmul.f32 %v6717_v6, %v9450_v5  ;;  %8225 = vmatmul.mubr.msk.f32.vlgmr.msra.gmra.mxu1 %vm187_vm2, %v6877_v2 }
0x26ef   :  { %8233 = vmatpush3.msra.mxu1 %v10004_v19  ;;  %8234 = vmatprep.mubr.msk.f32.mxu1 %vm8382_vm1, %v8381_v12 }
0x26f0   :  { %6756 = vrot.lane.b32.xlu0 %v6736_v32, %s10436_s23 }
0x26f1   :  { %v6719_v63 = vpop.permute.xlu0 %6718 }
0x26f2   :  { %v6737_v26 = vmul.f32 %v6719_v63, %v9450_v5 }
0x26f4   :  { %6758 = vrot.lane.b32.xlu1 %v6737_v26, %s10436_s23 }
0x26f5   :  { %v6721_v23 = vpop.permute.xlu0 %6720 }
0x26f6   :  { %v6738_v39 = vmul.f32 %v6721_v23, %v9450_v5 }
0x26f8   :  { %6760 = vrot.lane.b32.xlu0 %v6738_v39, %s10436_s23  ;;  %v7765_v39 = vld [vmem:[%s10360_s6 + $0x1] ss:$0 sm:$0xff] }
0x26f9   :  { %v6723_v37 = vpop.permute.xlu0 %6722 }
0x26fa   :  { %v6739_v55 = vmul.f32 %v6723_v37, %v9450_v5 }
0x26fc   :  { %6762 = vrot.lane.b32.xlu1 %v6739_v55, %s10436_s23 }
0x2756   :  { %v6749_v19 = vpop.permute.xlu0 %6748 }
0x2757   :  { %v6772_v20 = vsel %vm187_vm2, %v6749_v19, 0.0 }
0x2758   :  { %6773 = vadd.xlane.f32.xlu0 %v6772_v20 }
0x275a   :  { %v6751_v25 = vpop.permute.xlu0 %6750 }
0x275b   :  { %v6775_v47 = vsel %vm187_vm2, %v6751_v25, 0.0 }
0x275c   :  { %6776 = vadd.xlane.f32.xlu1 %v6775_v47 }
0x275e   :  { %v6753_v45 = vpop.permute.xlu0 %6752 }
0x275f   :  { %v6778_v43 = vsel %vm187_vm2, %v6753_v45, 0.0 }
0x2760   :  { %6779 = vadd.xlane.f32.xlu0 %v6778_v43 }
0x2762   :  { %v6757_v35 = vpop.permute.xlu0 %6756 }
0x2763   :  { %v6784_v54 = vsel %vm187_vm2, %v6757_v35, 0.0 }
0x2764   :  { %6782 = vadd.xlane.f32.xlu0 %v6781_v1 }
0x2766   :  { %v6759_v36 = vpop.permute.xlu1 %6758 }
0x2767   :  { %v6787_v8 = vsel %vm187_vm2, %v6759_v36, 0.0 }
0x2768   :  { %6785 = vadd.xlane.f32.xlu0 %v6784_v54  ;;  %6788 = vadd.xlane.f32.xlu1 %v6787_v8 }
0x276a   :  { %v6761_v30 = vpop.permute.xlu0 %6760 }
0x276b   :  { %v6790_v34 = vsel %vm187_vm2, %v6761_v30, 0.0 }
0x276c   :  { %6791 = vadd.xlane.f32.xlu0 %v6790_v34 }
0x276e   :  { %v6763_v10 = vpop.permute.xlu1 %6762 }
0x276f   :  { %v6793_v59 = vsel %vm187_vm2, %v6763_v10, 0.0  ;;  %v7768_v10 = vld [vmem:[%s10361_s8 + $0x1] ss:$0 sm:$0xff] }
0x2770   :  { %6794 = vadd.xlane.f32.xlu1 %v6793_v59 }
0x27aa   :  { %v6614_v46 = vpop.f32.mrf.mxu1 }
0x27ab   :  { %8220 = vmatmul.mubr.msk.f32.vlgmr.msra.gmra.mxu0 %vm187_vm2, %v6614_v46  ;;  %v7769_v46 = vld [vmem:[%s10362_s9 + $0x1] ss:$0 sm:$0xff] }
0x27ac   :  { %v8216_v4 = vpop.f32.mrf.mxu1  ;;  %8229 = vmatprep.mubr.msk.f32.mxu0 %vm8382_vm1, %v8381_v12 }
0x27ae   :  { %v6950_v49 = vpop.f32.mrf.mxu1 }
0x27b0   :  { %v8226_v13 = vpop.f32.mrf.mxu1 }
0x27e1   :  { %v6774_v9 = vpop.xlane.xlu0 %6773 }
0x27e2   :  { %v6807_v44 = vrot.slane %v6774_v9, %v8708_v38 }
0x27e5   :  { %v6777_v31 = vpop.xlane.xlu1 %6776 }
0x27e6   :  { %v6811_v17 = vrot.slane %v6777_v31, %v8708_v38 }
0x27e8   :  { %v6836_v12 = vsel %vm254_vm3, %v6811_v17, %v6807_v44 }
0x27e9   :  { %v6780_v60 = vpop.xlane.xlu0 %6779 }
0x27ea   :  { %v6815_v51 = vrot.slane %v6780_v60, %v8708_v38 }
0x27ec   :  { %v6837_v61 = vsel %vm256_vm4, %v6815_v51, %v6836_v12  ;;  %v7773_v12 = vld [vmem:[%s10363_s10 + $0x38] sm:$0xff] }
0x27ed   :  { %v6783_v40 = vpop.xlane.xlu0 %6782 }
0x27ee   :  { %v6819_v0 = vrot.slane %v6783_v40, %v8708_v38 }
0x27f0   :  { %v6838_v7 = vsel %vm258_vm5, %v6819_v0, %v6837_v61  ;;  %v7772_v61 = vld [vmem:[%s10363_s10 + $0x30] sm:$0xff] }
0x27f1   :  { %v6786_v52 = vpop.xlane.xlu0 %6785  ;;  %v6789_v42 = vpop.xlane.xlu1 %6788 }
0x27f2   :  { %v6823_v48 = vrot.slane %v6786_v52, %v8708_v38  ;;  %v6827_v27 = vrot.slane %v6789_v42, %v8708_v38 }
0x27f4   :  { %v6839_v41 = vsel %vm260_vm6, %v6823_v48, %v6838_v7  ;;  %v7785_v7 = vld [vmem:[%s10364_s12 + $0x78] sm:$0xff] }
0x27f5   :  { %v6792_v58 = vpop.xlane.xlu0 %6791  ;;  %v6840_v57 = vsel %vm262_vm7, %v6827_v27, %v6839_v41  ;;  %v7784_v27 = vld [vmem:[%s10364_s12 + $0x70] sm:$0xff]  ;;  %8248 = vmatprep.subr.mxu1 %v7785_v7  ;;  %v7783_v41 = vld [vmem:[%s10364_s12 + $0x68] sm:$0xff] }
0x27f6   :  { %v6831_v24 = vrot.slane %v6792_v58, %v8708_v38  ;;  %v7770_v58 = vld [vmem:[%s10363_s10 + $0x20] sm:$0xff] }
0x27f8   :  { %v6841_v18 = vsel %vm264_vm8, %v6831_v24, %v6840_v57  ;;  %v7782_v24 = vld [vmem:[%s10364_s12 + $0x60] sm:$0xff] }
0x27f9   :  { %v6795_v62 = vpop.xlane.xlu1 %6794 }
0x27fa   :  { %v6835_v15 = vrot.slane %v6795_v62, %v8708_v38 }
0x27fc   :  { %v6842_v2 = vsel %vm266_vm9, %v6835_v15, %v6841_v18 }
0x27fd   :  { %6844 = vxpose.xlu0.b32.start.end [1/1] (short) (narrow) %v6842_v2, 8 }
0x286b   :  { %v6687_v14 = vpop.f32.mrf.mxu0 }
0x286c   :  { %v6691_v16 = vadd.f32 %v6687_v14, %v10157_v33  ;;  %v7118_v33 = vld [vmem:[#allocation2] sm:$0xff] }
0x286d   :  { %v8221_v56 = vpop.f32.mrf.mxu0  ;;  %v7128_v37 = vadd.f32 %v7765_v39, %v7118_v33  ;;  %v7787_v33 = vld [vmem:[%s10366_s13 + $0x1] ss:$0 sm:$0xff] }
0x286e   :  { %v7781_v56 = vld [vmem:[%s10364_s12 + $0x58] sm:$0xff] }
0x286f   :  { %v7130_v55 = vadd.f32 %v7128_v37, %v9437_v22 }
0x2871   :  { %v7136_v19 = vsel %vm85_vm0, %v7130_v55, 0.0 }
0x2879   :  { %v6860_v28 = vpop.trf.xlu0 }
0x287a   :  { %v6951_v53 = vadd.f32 %v6950_v49, %v6860_v28  ;;  %v7780_v28 = vld [vmem:[%s10364_s12 + $0x50] sm:$0xff] }
0x287c   :  { %v6954_v11 = vmul.f32 0.35355338, %v6951_v53  ;;  %v7779_v53 = vld [vmem:[%s10364_s12 + $0x48] sm:$0xff] }
0x287e   :  { %v6955_v29 = vadd.f32 %v8380_v21, %v6954_v11  ;;  %v7778_v11 = vld [vmem:[%s10364_s12 + $0x40] sm:$0xff] }
0x287f   :  { %v7775_v21 = vld [vmem:[%s10365_s11 + $0x1] ss:$0 sm:$0xff] }
0x2880   :  { %v6956_v6 = vsel %vm187_vm2, %v6955_v29, -inf }
0x2881   :  { %6957 = vmax.xlane.f32.xlu1 %v6956_v6 }
0x290a   :  { %v6958_v38 = vpop.xlane.xlu1 %6957 }
0x290b   :  { %v6959_v32 = vsub.f32 %v6955_v29, %v6958_v38 }
0x290d   :  { %v6960_v63 = vmul.f32 1.442695, %v6959_v32 }
0x290f   :  { %8362 = vpow2.f32 %v6960_v63 }
0x291c   :  { %v8363_v26 = vpop.eup %8362 }
0x291d   :  { %v6962_v23 = vsel %vm187_vm2, %v8363_v26, 0.0 }
0x291e   :  { %6963 = vadd.xlane.f32.xlu1 %v6962_v23 }
0x292f   :  { %6967 = vrot.lane.b32.xlu1 %v9450_v5, %s10437_s17  ;;  %s10440_s17 = sld [smem:[#allocation10_spill]] }
0x2953   :  { %7137 = vadd.xlane.f32.xlu1 %v7136_v19 }
0x29a7   :  { %v6964_v20 = vpop.xlane.xlu1 %6963 }
0x29a8   :  { %8364 = vrcp.f32 %v6964_v20 }
0x29ab   :  { %v6968_v25 = vpop.permute.xlu1 %6967 }
0x29ac   :  { %8228 = vmatpush3.msra.mxu0 %v6968_v25 }
0x29ad   :  { %8237 = vmatprep.subr.mxu0 %v7773_v12 }
0x29b5   :  { %v8365_v47 = vpop.eup %8364 }
0x29b6   :  { %v6966_v45 = vmul.f32 %v8365_v47, %v8363_v26 }
0x29b8   :  { %8230 = vmatmul.mubr.msk.f32.vlgmr.msra.gmra.mxu0 %vm187_vm2, %v6966_v45 }
0x29b9   :  { %8238 = vmatpush3.msra.mxu0 %v7773_v12 }
0x29ba   :  { %8239 = vmatprep.subr.mxu0 %v7772_v61 }
0x29bb   :  { %8240 = vmatpush3.msra.mxu0 %v7772_v61 }
0x29dc   :  { %v7138_v5 = vpop.xlane.xlu1 %7137 }
0x29dd   :  { %v7142_v43 = vmul.f32 0.03125, %v7138_v5 }
0x29df   :  { %v7144_v50 = vsub.f32 %v7130_v55, %v7142_v43 }
0x29e1   :  { %v7146_v1 = vmul.f32 %v7144_v50, %v7144_v50 }
0x29e3   :  { %v7148_v35 = vsel %vm85_vm0, %v7146_v1, 0.0 }
0x29e4   :  { %7149 = vadd.xlane.f32.xlu1 %v7148_v35 }
0x2a6d   :  { %v7150_v36 = vpop.xlane.xlu1 %7149 }
0x2a6e   :  { %v7154_v22 = vmul.f32 0.03125, %v7150_v36 }
0x2a70   :  { %v7156_v54 = vadd.f32 1e-06, %v7154_v22 }
0x2a72   :  { %8366 = vrsqrt.f32 %v7156_v54 }
0x2a78   :  { %v7039_v8 = vpop.f32.mrf.mxu0 }
0x2a79   :  { %8235 = vmatmul.mubr.msk.f32.vlgmr.msra.gmra.mxu1 %vm187_vm2, %v7039_v8 }
0x2a7a   :  { %v8231_v30 = vpop.f32.mrf.mxu0  ;;  %8249 = vmatpush3.msra.mxu1 %v7785_v7 }
0x2a7b   :  { %8250 = vmatprep.subr.mxu1 %v7784_v27 }
0x2a7c   :  { %8251 = vmatpush3.msra.mxu1 %v7784_v27 }
0x2a7d   :  { %8252 = vmatprep.subr.mxu1 %v7783_v41 }
0x2a7e   :  { %8253 = vmatpush3.msra.mxu1 %v7783_v41 }
0x2a7f   :  { %v8367_v34 = vpop.eup %8366  ;;  %8254 = vmatprep.subr.mxu1 %v7782_v24 }
0x2a80   :  { %v7160_v59 = vmul.f32 %v8367_v34, %v7144_v50  ;;  %8255 = vmatpush3.msra.mxu1 %v7782_v24 }
0x2a81   :  { %8256 = vmatprep.subr.mxu1 %v7781_v56 }
0x2a82   :  { %v7168_v4 = vmul.f32 %v7768_v10, %v7160_v59  ;;  %8257 = vmatpush3.msra.mxu1 %v7781_v56 }
0x2a83   :  { %8258 = vmatprep.subr.mxu1 %v7780_v28 }
0x2a84   :  { %v10256_v49 = vadd.f32 %v7769_v46, %v7168_v4  ;;  %8259 = vmatpush3.msra.mxu1 %v7780_v28 }
0x2a85   :  { %8260 = vmatprep.subr.mxu1 %v7779_v53 }
0x2a86   :  { %8245 = vmatprep.mubr.msk.f32.mxu0 %vm85_vm0, %v10256_v49  ;;  %8261 = vmatpush3.msra.mxu1 %v7779_v53 }
0x2a87   :  { %8262 = vmatprep.subr.mxu1 %v7778_v11 }
0x2a88   :  { %8263 = vmatpush3.msra.mxu1 %v7778_v11 }
0x2b39   :  { %v7112_v13 = vpop.f32.mrf.mxu1 }
0x2b3a   :  { %v7116_v9 = vadd.f32 %v7112_v13, %v6691_v16  ;;  %v7792_v13 = vld [vmem:[%s10367_s14 + $0x1] ss:$0 sm:$0xff] }
0x2b3b   :  { %v8236_v60 = vpop.f32.mrf.mxu1 }
0x2b3c   :  { %7117 = vst.msk [vmem:[#allocation2 + $0x8] sm:$0xff] %vm85_vm0, %v7116_v9  ;;  %v7793_v60 = vld [vmem:[%s10368_s15 + $0x1] ss:$0 sm:$0xff] }
0x2b43   :  { %v7119_v31 = vld [vmem:[#allocation2 + $0x8] sm:$0xff] }
0x2b44   :  { %v7129_v40 = vadd.f32 %v7765_v39, %v7119_v31 }
0x2b46   :  { %v7131_v17 = vadd.f32 %v7129_v40, %v9441_v3  ;;  %v7771_v3 = vld [vmem:[%s10363_s10 + $0x28] sm:$0xff] }
0x2b47   :  { %8241 = vmatprep.subr.mxu0 %v7771_v3 }
0x2b48   :  { %v7139_v51 = vsel %vm85_vm0, %v7131_v17, 0.0  ;;  %8242 = vmatpush3.msra.mxu0 %v7771_v3 }
0x2b49   :  { %7140 = vadd.xlane.f32.xlu0 %v7139_v51  ;;  %8243 = vmatprep.subr.mxu0 %v7770_v58 }
0x2b4a   :  { %8244 = vmatpush3.msra.mxu0 %v7770_v58 }
0x2bd2   :  { %v7141_v52 = vpop.xlane.xlu0 %7140 }
0x2bd3   :  { %v7143_v44 = vmul.f32 0.03125, %v7141_v52 }
0x2bd5   :  { %v7145_v0 = vsub.f32 %v7131_v17, %v7143_v44 }
0x2bd7   :  { %v7147_v48 = vmul.f32 %v7145_v0, %v7145_v0 }
0x2bd9   :  { %v7151_v42 = vsel %vm85_vm0, %v7147_v48, 0.0 }
0x2bda   :  { %7152 = vadd.xlane.f32.xlu1 %v7151_v42 }
0x2c63   :  { %v7153_v62 = vpop.xlane.xlu1 %7152 }
0x2c64   :  { %v7155_v57 = vmul.f32 0.03125, %v7153_v62 }
0x2c66   :  { %v7157_v15 = vadd.f32 1e-06, %v7155_v57  ;;  %v7467_v57 = vld [vmem:[%s10438_s3 + $0x18] sm:$0xff] }
0x2c67   :  { %8267 = vmatprep.subr.mxu0 %v7467_v57 }
0x2c68   :  { %8368 = vrsqrt.f32 %v7157_v15  ;;  %v7466_v15 = vld [vmem:[%s10438_s3 + $0x10] sm:$0xff] }
0x2c75   :  { %v8369_v18 = vpop.eup %8368 }
0x2c76   :  { %v7161_v2 = vmul.f32 %v8369_v18, %v7145_v0  ;;  %v7465_v18 = vld [vmem:[%s10438_s3 + $0x8] sm:$0xff] }
0x2c78   :  { %v7169_v14 = vmul.f32 %v7768_v10, %v7161_v2  ;;  %v7464_v2 = vld [vmem:[%s10438_s3] sm:$0xff] }
0x2c7a   :  { %v7177_v16 = vadd.f32 %v7769_v46, %v7169_v14 }
0x2c7c   :  { %8246 = vmatmul.mubr.msk.f32.vlgmr.msra.gmra.mxu0 %vm85_vm0, %v7177_v16 }
0x2c7d   :  { %8268 = vmatpush3.msra.mxu0 %v7467_v57 }
0x2c7e   :  { %8269 = vmatprep.subr.mxu0 %v7466_v15 }
0x2c7f   :  { %8270 = vmatpush3.msra.mxu0 %v7466_v15 }
0x2c80   :  { %8271 = vmatprep.subr.mxu0 %v7465_v18 }
0x2c81   :  { %8272 = vmatpush3.msra.mxu0 %v7465_v18 }
0x2c82   :  { %8273 = vmatprep.subr.mxu0 %v7464_v2 }
0x2c83   :  { %8274 = vmatpush3.msra.mxu0 %v7464_v2 }
0x2d3c   :  { %v8247_v29 = vpop.f32.mrf.mxu0 }
0x2d3d   :  { %v7269_v6 = vadd.f32 %v8247_v29, %v7775_v21  ;;  %v7794_v29 = vld [vmem:[%s10439_s30] ss:$0 sm:$0xff] }
0x2d3e   :  { %v7263_v38 = vpop.f32.mrf.mxu0 }
0x2d3f   :  { %v7264_v32 = vadd.f32 %v7775_v21, %v7263_v38  ;;  %v7273_v26 = vmax.f32 %v7269_v6, 0.0  ;;  %v7795_v38 = vld [vmem:[%s10440_s17] ss:$0 sm:$0xff] }
0x2d41   :  { %v7272_v63 = vmax.f32 %v7264_v32, 0.0 }
0x2d43   :  { %8264 = vmatprep.mubr.msk.f32.mxu1 %vm3619_vm10, %v7272_v63 }
0x2d44   :  { %8265 = vmatmul.mubr.msk.f32.vlgmr.msra.gmra.mxu1 %vm3619_vm10, %v7273_v26 }
0x2e04   :  { %v8266_v23 = vpop.f32.mrf.mxu1 }
0x2e05   :  { %v7369_v37 = vadd.f32 %v8266_v23, %v7787_v33 }
0x2e06   :  { %v7363_v39 = vpop.f32.mrf.mxu1 }
0x2e07   :  { %v7364_v55 = vadd.f32 %v7787_v33, %v7363_v39  ;;  %v7373_v20 = vadd.f32 %v7369_v37, %v7177_v16  ;;  %v7796_v37 = vld [vmem:[%s10441_s5] ss:$0 sm:$0xff] }
0x2e09   :  { %v7372_v19 = vadd.f32 %v7364_v55, %v10256_v49  ;;  %v7381_v47 = vsel %vm85_vm0, %v7373_v20, 0.0 }
0x2e0b   :  { %v7378_v25 = vsel %vm85_vm0, %v7372_v19, 0.0 }
0x2e0c   :  { %7379 = vadd.xlane.f32.xlu1 %v7378_v25 }
0x2e10   :  { %7382 = vadd.xlane.f32.xlu1 %v7381_v47 }
0x2e95   :  { %v7380_v45 = vpop.xlane.xlu1 %7379 }
0x2e96   :  { %v7384_v5 = vmul.f32 0.03125, %v7380_v45 }
0x2e98   :  { %v7386_v43 = vsub.f32 %v7372_v19, %v7384_v5 }
0x2e99   :  { %v7383_v50 = vpop.xlane.xlu1 %7382 }
0x2e9a   :  { %v7385_v1 = vmul.f32 0.03125, %v7383_v50  ;;  %v7388_v35 = vmul.f32 %v7386_v43, %v7386_v43 }
0x2e9c   :  { %v7387_v36 = vsub.f32 %v7373_v20, %v7385_v1  ;;  %v7390_v22 = vsel %vm85_vm0, %v7388_v35, 0.0 }
0x2e9d   :  { %7391 = vadd.xlane.f32.xlu1 %v7390_v22 }
0x2e9e   :  { %v7389_v54 = vmul.f32 %v7387_v36, %v7387_v36 }
0x2ea0   :  { %v7393_v8 = vsel %vm85_vm0, %v7389_v54, 0.0 }
0x2ea1   :  { %7394 = vadd.xlane.f32.xlu1 %v7393_v8 }
0x2f26   :  { %v7392_v30 = vpop.xlane.xlu1 %7391 }
0x2f27   :  { %v7396_v34 = vmul.f32 0.03125, %v7392_v30 }
0x2f29   :  { %v7398_v10 = vadd.f32 1e-06, %v7396_v34 }
0x2f2a   :  { %v7395_v59 = vpop.xlane.xlu1 %7394 }
0x2f2b   :  { %8370 = vrsqrt.f32 %v7398_v10  ;;  %v7397_v46 = vmul.f32 0.03125, %v7395_v59 }
0x2f2d   :  { %v7399_v4 = vadd.f32 1e-06, %v7397_v46 }
0x2f2f   :  { %8372 = vrsqrt.f32 %v7399_v4 }
0x2f38   :  { %v8371_v49 = vpop.eup %8370 }
0x2f39   :  { %v7402_v9 = vmul.f32 %v8371_v49, %v7386_v43 }
0x2f3b   :  { %v7410_v31 = vmul.f32 %v7792_v13, %v7402_v9 }
0x2f3c   :  { %v8373_v40 = vpop.eup %8372 }
0x2f3d   :  { %v7418_v17 = vadd.f32 %v7793_v60, %v7410_v31  ;;  %v7403_v51 = vmul.f32 %v8373_v40, %v7387_v36 }
0x2f3f   :  { %v7422_v52 = vsel %vm85_vm0, %v7418_v17, 0.0  ;;  %v7411_v44 = vmul.f32 %v7792_v13, %v7403_v51 }
0x2f40   :  { %7423 = vadd.xlane.f32.xlu1 %v7422_v52 }
0x2f41   :  { %v7419_v0 = vadd.f32 %v7793_v60, %v7411_v44 }
0x2f43   :  { %v7425_v48 = vsel %vm85_vm0, %v7419_v0, 0.0 }
0x2f44   :  { %7426 = vadd.xlane.f32.xlu1 %v7425_v48 }
0x2fc9   :  { %v7424_v42 = vpop.xlane.xlu1 %7423 }
0x2fca   :  { %v7428_v12 = vmul.f32 0.03125, %v7424_v42 }
0x2fcc   :  { %v7430_v61 = vsub.f32 %v7418_v17, %v7428_v12 }
0x2fcd   :  { %v7427_v3 = vpop.xlane.xlu1 %7426 }
0x2fce   :  { %v7429_v58 = vmul.f32 0.03125, %v7427_v3  ;;  %v7432_v7 = vmul.f32 %v7430_v61, %v7430_v61 }
0x2fd0   :  { %v7431_v27 = vsub.f32 %v7419_v0, %v7429_v58  ;;  %v7434_v41 = vsel %vm85_vm0, %v7432_v7, 0.0 }
0x2fd1   :  { %7435 = vadd.xlane.f32.xlu0 %v7434_v41 }
0x2fd2   :  { %v7433_v24 = vmul.f32 %v7431_v27, %v7431_v27 }
0x2fd4   :  { %v7437_v62 = vsel %vm85_vm0, %v7433_v24, 0.0 }
0x2fd5   :  { %7438 = vadd.xlane.f32.xlu1 %v7437_v62 }
0x305a   :  { %v7436_v14 = vpop.xlane.xlu0 %7435 }
0x305b   :  { %v7440_v16 = vmul.f32 0.03125, %v7436_v14 }
0x305d   :  { %v7442_v56 = vadd.f32 1e-06, %v7440_v16 }
0x305e   :  { %v7439_v28 = vpop.xlane.xlu1 %7438 }
0x305f   :  { %8374 = vrsqrt.f32 %v7442_v56  ;;  %v7441_v53 = vmul.f32 0.03125, %v7439_v28 }
0x3061   :  { %v7443_v11 = vadd.f32 1e-06, %v7441_v53 }
0x3063   :  { %8376 = vrsqrt.f32 %v7443_v11 }
0x306c   :  { %v8375_v21 = vpop.eup %8374 }
0x306d   :  { %v7446_v6 = vmul.f32 %v8375_v21, %v7430_v61 }
0x306f   :  { %v7454_v32 = vmul.f32 %v7794_v29, %v7446_v6 }
0x3070   :  { %v8377_v63 = vpop.eup %8376 }
0x3071   :  { %v7447_v26 = vmul.f32 %v8377_v63, %v7431_v27  ;;  %v7462_v23 = vadd.f32 %v7795_v38, %v7454_v32 }
0x3073   :  { %v7455_v33 = vmul.f32 %v7794_v29, %v7447_v26  ;;  %8275 = vmatprep.mubr.msk.f32.mxu0 %vm85_vm0, %v7462_v23 }
0x3075   :  { %v7463_v39 = vadd.f32 %v7795_v38, %v7455_v33 }
0x3077   :  { %8276 = vmatmul.mubr.msk.f32.vlgmr.msra.gmra.mxu0 %vm85_vm0, %v7463_v39 }
0x3137   :  { %v8277_v55 = vpop.f32.mrf.mxu0 }
0x3138   :  { %v7553_v19 = vadd.f32 %v8277_v55, %v7796_v37 }
0x3139   :  { %v7547_v20 = vpop.f32.mrf.mxu0 }
0x313a   :  { %7557 = vst [vmem:[%s10442_s0 + $0x8] sm:$0xff] %v7553_v19  ;;  %v7548_v25 = vadd.f32 %v7796_v37, %v7547_v20 }
0x313c   :  { %7556 = vst [vmem:[%s10442_s0] sm:$0xff] %v7548_v25 }

</bundles_post_ra>
